<compile_context>
chip_gen: v7x
topology: tpu7x:2x2x1
jax: 0.10.0
libtpu: 0.0.40
codegen_flags: <defaults>
</compile_context>

<pallas_src>
import functools

import jax
import jax.numpy as jnp
from jax import lax
from jax.experimental import pallas as pl
from jax.experimental.pallas import tpu as pltpu


# --------------------------------------------------------------------------- #
# Kernel
# --------------------------------------------------------------------------- #
def _law_attn_kernel(scaling, use_bf16_tanh,
                     enc_ref, len_ref, dec_ref,
                     w_cat_ref, w_dec_ref, w_out_ref, misc_ref,
                     ctx_ref, attn_ref):
    Bt, T, E = enc_ref.shape
    EKW, A = w_cat_ref.shape
    KW = EKW - E
    K = (KW - 1) // 2
    O = w_out_ref.shape[1]

    enc = enc_ref[...]                                    # [Bt, T, E] bf16
    enc_len = len_ref[...]                                # [Bt, 1]    f32
    dec = dec_ref[...]                                    # [Bt, D]    f32
    misc = misc_ref[...]                                  # [3, W]     f32
    b_sum = misc[0, :A]                                   # b_enc+b_dec+b_loc
    w_attn = misc[1, :A]
    b_out = misc[2, :O]

    # ---- length mask + analytic uniform first-step prev_attn ---------------
    safe_len = jnp.maximum(enc_len, 1.0)                  # guard enc_len == 0
    inv_len = (1.0 / safe_len).reshape(Bt, 1, 1)
    t2 = lax.broadcasted_iota(jnp.int32, (Bt, T), 1)
    mask = t2.astype(jnp.float32) < enc_len               # [Bt, T] bool

    # ---- location-conv taps, folded into the encoder matmul ----------------
    # taps[b,t,k] = prev_attn[b, t+k-K] = (0 <= t+k-K < enc_len)/enc_len
    len_i = jnp.minimum(enc_len, jnp.float32(T)).astype(jnp.int32).reshape(Bt, 1, 1)
    src = (lax.broadcasted_iota(jnp.int32, (Bt, T, KW), 1)
           + lax.broadcasted_iota(jnp.int32, (Bt, T, KW), 2) - K)
    taps = jnp.where((src >= 0) & (src < len_i), inv_len, 0.0).astype(enc.dtype)

    # One fused bf16 matmul: [Bt*T, E+KW] @ [E+KW, A] -> enc_h + attn_conv
    cat = jnp.concatenate([enc, taps], axis=-1)           # [Bt, T, E+KW] bf16
    enc_h = jnp.dot(cat.reshape(Bt * T, EKW), w_cat_ref[...],
                    preferred_element_type=jnp.float32)   # [Bt*T, A] f32

    # ---- decoder projection (biases pre-summed into b_sum) -----------------
    dec_h = jnp.dot(dec, w_dec_ref[...],
                    preferred_element_type=jnp.float32) + b_sum   # [Bt, A]

    pre = enc_h.reshape(Bt, T, A) + dec_h[:, None, :]
    if use_bf16_tanh:                                     # bf16 EUP path (v6e/v7x)
        feats = jnp.tanh(pre.astype(jnp.bfloat16)).astype(jnp.float32)
    else:                                                 # v5e: no bf16 EUP
        feats = jnp.tanh(pre)

    # ---- scores: N=1 projection as VPU multiply + lane reduce --------------
    scores = jnp.sum(feats * w_attn[None, None, :], axis=-1)       # [Bt, T]
    scores = scores * jnp.float32(scaling)
    scores = jnp.where(mask, scores, jnp.float32(-1e30))

    # ---- masked softmax (exact normalization; padded positions exactly 0) --
    m = jnp.max(scores, axis=-1, keepdims=True)
    e = jnp.exp(scores - m)
    l = jnp.sum(e, axis=-1, keepdims=True)
    attn = e * (1.0 / l)
    attn = jnp.where(mask, attn, 0.0)                               # [Bt, T]

    # ---- context: VPU multiply + sublane reduce (f32 accumulate) -----------
    ctx = jnp.sum(attn.astype(enc.dtype)[:, :, None] * enc, axis=1,
                  dtype=jnp.float32)                                # [Bt, E]
    out = jnp.dot(ctx, w_out_ref[...],
                  preferred_element_type=jnp.float32) + b_out       # [Bt, O]

    ctx_ref[...] = out.astype(ctx_ref.dtype)
    attn_ref[...] = attn.astype(attn_ref.dtype)


# --------------------------------------------------------------------------- #
# Wrapper helpers
# --------------------------------------------------------------------------- #
def _round_up(x, m):
    return ((x + m - 1) // m) * m


def _vmem_capacity_bytes():
    try:
        cap = getattr(pltpu.get_tpu_info(), "vmem_capacity_bytes", None)
        if cap:
            return int(cap)
    except Exception:
        pass
    try:
        if "v7" in jax.devices()[0].device_kind.lower():
            return 64 << 20
    except Exception:
        pass
    return 128 << 20


def _supports_bf16_eup():
    try:
        kind = jax.devices()[0].device_kind.lower()
    except Exception:
        return False
    return ("v6" in kind) or ("v7" in kind)


def _vmem_estimate(Bt, T, E, D, A, O, KW, W):
    """Honest VMEM estimate: lane padding + pipeline buffers + f32 temps."""
    lane = lambda n: _round_up(max(int(n), 1), 128)
    sub = lambda n: _round_up(max(int(n), 1), 8)
    per_row = T * (2 * 2 * lane(E)            # enc block (bf16, double-buffered)
                   + 2 * lane(E + KW)         # concatenated feature temp (bf16)
                   + 3 * 4 * lane(A)          # enc_h / pre / feats f32 temps
                   + 2 * 4 * lane(KW)         # tap-construction temporaries
                   + 4 * lane(E))             # ctx product temp
    per_row += 4 * (2 * lane(D) + 2 * lane(O) + 2 * lane(T)   # dec/ctx/attn blocks
                    + 4 * lane(T) + lane(A))                  # score/attn/dec_h temps
    weights = (2 * sub(E + KW) * lane(A) * 2
               + 2 * sub(D) * lane(A) * 4
               + 2 * sub(E) * lane(O) * 4
               + 2 * sub(3) * lane(W) * 4)
    return Bt * per_row + weights


def _auto_batch_tile(B, fits):
    cands = [bt for bt in range(1, B + 1)
             if B % bt == 0 and (bt % 8 == 0 or bt == B)]
    fitting = [bt for bt in cands if fits(bt)]
    pool = fitting if fitting else cands[:1]
    multi = [bt for bt in pool if B // bt >= 2]     # keep >=2 grid steps (megacore)
    return max(multi) if multi else max(pool)


# --------------------------------------------------------------------------- #
# Public entry point
# --------------------------------------------------------------------------- #
def location_aware_attention(enc_states, enc_len, dec_states, params,
                             scaling=1.0, batch_tile=None):
    assert scaling > 0.0, "kernel assumes scaling > 0 (scale-then-mask order)"
    B, T, E = enc_states.shape
    D = dec_states.shape[-1]
    A = params['w_enc'].shape[0]
    O = params['w_out'].shape[0]
    _C, KW = params['conv_w'].shape

    # --- weight preparation: pre-transpose, fold conv+mlp_loc, fuse into enc -
    w_eff = params['conv_w'].T @ params['w_loc'].T                        # [KW, A]
    w_cat = jnp.concatenate([params['w_enc'].T.astype(jnp.float32),
                             w_eff.astype(jnp.float32)],
                            axis=0).astype(jnp.bfloat16)                  # [E+KW, A]
    w_dec_t = params['w_dec'].T.astype(jnp.float32)                       # [D, A]
    w_out_t = params['w_out'].T.astype(jnp.float32)                       # [E, O]

    W = max(A, O)
    b_sum = (params['b_enc'] + params['b_dec'] + params['b_loc']).reshape(A)
    misc = jnp.zeros((3, W), jnp.float32)
    misc = misc.at[0, :A].set(b_sum.astype(jnp.float32))
    misc = misc.at[1, :A].set(params['w_attn'].reshape(A).astype(jnp.float32))
    misc = misc.at[2, :O].set(params['b_out'].reshape(O).astype(jnp.float32))

    enc_bf16 = enc_states.astype(jnp.bfloat16)
    len_2d = enc_len.astype(jnp.float32).reshape(B, 1)
    dec_2d = dec_states.astype(jnp.float32).reshape(B, D)

    # --- per-generation VMEM budget & batch-tile selection -------------------
    vmem_cap = _vmem_capacity_bytes()
    scoped_cap = max(16 << 20, vmem_cap - (24 << 20))     # ~40 MiB v7x, ~104 MiB v5e/v6e

    def estimate(bt):
        return _vmem_estimate(bt, T, E, D, A, O, KW, W) + (4 << 20)

    if batch_tile is None:
        batch_tile = _auto_batch_tile(B, lambda bt: estimate(bt) <= scoped_cap)
    Bt = int(batch_tile)
    assert B % Bt == 0
    grid = (B // Bt,)
    vmem_bytes = int(min(max(estimate(Bt), 16 << 20), scoped_cap))

    kernel = functools.partial(_law_attn_kernel, float(scaling),
                               _supports_bf16_eup())

    ctx, attn = pl.pallas_call(
        kernel,
        grid=grid,
        out_shape=(jax.ShapeDtypeStruct((B, O), jnp.float32),
                   jax.ShapeDtypeStruct((B, T), jnp.float32)),
        in_specs=[pl.BlockSpec((Bt, T, E), lambda b: (b, 0, 0)),   # enc (bf16)
                  pl.BlockSpec((Bt, 1), lambda b: (b, 0)),          # enc_len
                  pl.BlockSpec((Bt, D), lambda b: (b, 0)),          # dec
                  pl.BlockSpec((E + KW, A), lambda b: (0, 0)),      # fused enc/taps W
                  pl.BlockSpec((D, A), lambda b: (0, 0)),           # w_dec
                  pl.BlockSpec((E, O), lambda b: (0, 0)),           # w_out
                  pl.BlockSpec((3, W), lambda b: (0, 0))],          # packed vectors
        out_specs=(pl.BlockSpec((Bt, O), lambda b: (b, 0)),
                   pl.BlockSpec((Bt, T), lambda b: (b, 0))),
        compiler_params=pltpu.CompilerParams(
            dimension_semantics=("parallel",),
            vmem_limit_bytes=vmem_bytes),
    )(enc_bf16, len_2d, dec_2d, w_cat, w_dec_t, w_out_t, misc)

    return ctx, attn


# --------------------------------------------------------------------------- #
# Pure-JAX f32 reference (PyTorch forward, first decoder step)
# --------------------------------------------------------------------------- #
def _reference(enc_states, enc_len, dec_states, p, scaling=1.0):
    B, T, _ = enc_states.shape
    enc_len = enc_len.astype(jnp.float32)
    mask = (jnp.arange(T)[None, :] < enc_len[:, None]).astype(jnp.float32)
    prev_attn = mask * (1.0 / enc_len)[:, None]
    KW = p['conv_w'].shape[1]
    K = (KW - 1) // 2
    pa_pad = jnp.pad(prev_attn, ((0, 0), (K, K)))
    conv = jnp.stack([pa_pad[:, k:k + T] for k in range(KW)], axis=-1)    # [B,T,KW]
    conv = jnp.einsum('btk,ck->btc', conv, p['conv_w'])                   # [B,T,C]
    enc_h = enc_states @ p['w_enc'].T + p['b_enc']
    attn_conv = conv @ p['w_loc'].T + p['b_loc']
    dec_h = dec_states @ p['w_dec'].T + p['b_dec']
    s = (jnp.tanh(enc_h + dec_h[:, None, :] + attn_conv) @ p['w_attn'].T)[:, :, 0]
    s = jnp.where(mask == 0.0, -jnp.inf, s)
    attn = jax.nn.softmax(s * scaling, axis=-1)
    ctx = jnp.einsum('bt,bte->be', attn, enc_states)
    ctx = ctx @ p['w_out'].T + p['b_out']
    return ctx, attn


if __name__ == "__main__":
    # Small but lane/sublane-friendly shapes (B mult. of 8, T and attn_dim = 128).
    B, T = 16, 128
    enc_dim, dec_dim, attn_dim = 64, 32, 128
    output_dim, conv_channels, kernel_size = 16, 8, 3
    KW = 2 * kernel_size + 1
    scaling = 1.0

    key = jax.random.PRNGKey(0)
    ks = jax.random.split(key, 12)

    params = {
        'w_enc':  jax.random.normal(ks[0], (attn_dim, enc_dim), jnp.float32) * 0.1,
        'b_enc':  jax.random.normal(ks[1], (1, attn_dim), jnp.float32) * 0.1,
        'w_dec':  jax.random.normal(ks[2], (attn_dim, dec_dim), jnp.float32) * 0.1,
        'b_dec':  jax.random.normal(ks[3], (1, attn_dim), jnp.float32) * 0.1,
        'conv_w': jax.random.normal(ks[4], (conv_channels, KW), jnp.float32) * 0.1,
        'w_loc':  jax.random.normal(ks[5], (attn_dim, conv_channels), jnp.float32) * 0.1,
        'b_loc':  jax.random.normal(ks[6], (1, attn_dim), jnp.float32) * 0.1,
        'w_attn': jax.random.normal(ks[7], (1, attn_dim), jnp.float32) * 0.1,
        'w_out':  jax.random.normal(ks[8], (output_dim, enc_dim), jnp.float32) * 0.1,
        'b_out':  jax.random.normal(ks[9], (1, output_dim), jnp.float32) * 0.1,
    }

    enc_states = jax.random.normal(ks[10], (B, T, enc_dim), jnp.float32)
    dec_states = jax.random.normal(ks[11], (B, dec_dim), jnp.float32)
    enc_len = jnp.array([128, 90, 64, 128, 40, 77, 128, 100,
                         55, 128, 33, 96, 120, 128, 88, 72], dtype=jnp.float32)

    ctx, attn = location_aware_attention(enc_states, enc_len, dec_states,
                                         params, scaling)
    jax.block_until_ready((ctx, attn))

    ctx_ref, attn_ref = _reference(enc_states, enc_len, dec_states, params, scaling)
    assert ctx.shape == (B, output_dim) and attn.shape == (B, T)
    assert jnp.allclose(ctx, ctx_ref, atol=2e-2, rtol=2e-2), \
        float(jnp.max(jnp.abs(ctx - ctx_ref)))
    assert jnp.allclose(attn, attn_ref, atol=2e-2, rtol=2e-2), \
        float(jnp.max(jnp.abs(attn - attn_ref)))
    # Masked positions must carry exactly zero attention weight.
    assert float(jnp.abs(attn[1, 90:]).sum()) == 0.0
    assert float(jnp.abs(attn[4, 40:]).sum()) == 0.0

    print("KERNEL_OK")
</pallas_src>

<mosaic_0001>
module attributes {stable_mosaic.version = 11 : i64} {
  func.func @_law_attn_kernel(%arg0: i32, %arg1: memref<8x128x64xbf16, #tpu.memory_space<vmem>>, %arg2: memref<8x1xf32, #tpu.memory_space<vmem>>, %arg3: memref<8x32xf32, #tpu.memory_space<vmem>>, %arg4: memref<71x128xbf16, #tpu.memory_space<vmem>>, %arg5: memref<32x128xf32, #tpu.memory_space<vmem>>, %arg6: memref<64x16xf32, #tpu.memory_space<vmem>>, %arg7: memref<3x128xf32, #tpu.memory_space<vmem>>, %arg8: memref<8x16xf32, #tpu.memory_space<vmem>>, %arg9: memref<8x128xf32, #tpu.memory_space<vmem>>) attributes {dimension_semantics = [#tpu.dimension_semantics<parallel>], iteration_bounds = array<i64: 2>, scalar_prefetch = 0 : i64, scratch_operands = 0 : i64, tpu.core_type = #tpu.core_type<tc>, window_params = [{transform_indices = @transform_0, window_bounds = array<i64: 8, 128, 64>}, {transform_indices = @transform_1, window_bounds = array<i64: 8, 1>}, {transform_indices = @transform_2, window_bounds = array<i64: 8, 32>}, {pipeline_mode = #tpu.pipeline_mode<synchronous>, transform_indices = @transform_3, window_bounds = array<i64: 71, 128>}, {pipeline_mode = #tpu.pipeline_mode<synchronous>, transform_indices = @transform_4, window_bounds = array<i64: 32, 128>}, {pipeline_mode = #tpu.pipeline_mode<synchronous>, transform_indices = @transform_5, window_bounds = array<i64: 64, 16>}, {pipeline_mode = #tpu.pipeline_mode<synchronous>, transform_indices = @transform_6, window_bounds = array<i64: 3, 128>}, {transform_indices = @transform_7, window_bounds = array<i64: 8, 16>}, {transform_indices = @transform_8, window_bounds = array<i64: 8, 128>}]} {
    %c0 = arith.constant 0 : index
    %c0_0 = arith.constant 0 : index
    %c0_1 = arith.constant 0 : index
    %0 = vector.load %arg1[%c0, %c0_0, %c0_1] : memref<8x128x64xbf16, #tpu.memory_space<vmem>>, vector<8x128x64xbf16>
    %c0_2 = arith.constant 0 : index
    %c0_3 = arith.constant 0 : index
    %1 = vector.load %arg2[%c0_2, %c0_3] : memref<8x1xf32, #tpu.memory_space<vmem>>, vector<8x1xf32>
    %c0_4 = arith.constant 0 : index
    %c0_5 = arith.constant 0 : index
    %2 = vector.load %arg3[%c0_4, %c0_5] : memref<8x32xf32, #tpu.memory_space<vmem>>, vector<8x32xf32>
    %c0_6 = arith.constant 0 : index
    %c0_7 = arith.constant 0 : index
    %3 = vector.load %arg7[%c0_6, %c0_7] : memref<3x128xf32, #tpu.memory_space<vmem>>, vector<3x128xf32>
    %4 = vector.extract_strided_slice %3 {offsets = [0, 0], sizes = [1, 128], strides = [1, 1]} : vector<3x128xf32> to vector<1x128xf32>
    %5 = vector.shape_cast %4 : vector<1x128xf32> to vector<128xf32>
    %6 = vector.extract_strided_slice %3 {offsets = [1, 0], sizes = [1, 128], strides = [1, 1]} : vector<3x128xf32> to vector<1x128xf32>
    %7 = vector.shape_cast %6 : vector<1x128xf32> to vector<128xf32>
    %8 = vector.extract_strided_slice %3 {offsets = [2, 0], sizes = [1, 16], strides = [1, 1]} : vector<3x128xf32> to vector<1x16xf32>
    %9 = vector.shape_cast %8 : vector<1x16xf32> to vector<16xf32>
    %cst = arith.constant 1.000000e+00 : f32
    %10 = vector.broadcast %cst : f32 to vector<8x1xf32>
    %11 = arith.maximumf %1, %10 : vector<8x1xf32>
    %cst_8 = arith.constant 1.000000e+00 : f32
    %12 = vector.broadcast %cst_8 : f32 to vector<8x1xf32>
    %13 = arith.divf %12, %11 : vector<8x1xf32>
    %14 = vector.shape_cast %13 : vector<8x1xf32> to vector<8x1x1xf32>
    %15 = tpu.iota {dimensions = array<i32: 1>} : vector<8x128xi32>
    %16 = arith.sitofp %15 : vector<8x128xi32> to vector<8x128xf32>
    %17 = vector.broadcast %1 : vector<8x1xf32> to vector<8x128xf32>
    %18 = arith.cmpf olt, %16, %17 : vector<8x128xf32>
    %cst_9 = arith.constant 1.280000e+02 : f32
    %19 = vector.broadcast %cst_9 : f32 to vector<8x1xf32>
    %20 = arith.minimumf %1, %19 : vector<8x1xf32>
    %21 = arith.fptosi %20 : vector<8x1xf32> to vector<8x1xi32>
    %22 = vector.shape_cast %21 : vector<8x1xi32> to vector<8x1x1xi32>
    %23 = tpu.iota {dimensions = array<i32: 1>} : vector<8x128x7xi32>
    %24 = tpu.iota {dimensions = array<i32: 2>} : vector<8x128x7xi32>
    %25 = arith.addi %23, %24 : vector<8x128x7xi32>
    %c3_i32 = arith.constant 3 : i32
    %26 = vector.broadcast %c3_i32 : i32 to vector<8x128x7xi32>
    %27 = arith.subi %25, %26 : vector<8x128x7xi32>
    %c0_i32 = arith.constant 0 : i32
    %28 = vector.broadcast %c0_i32 : i32 to vector<8x128x7xi32>
    %29 = arith.cmpi sge, %27, %28 : vector<8x128x7xi32>
    %30 = vector.broadcast %22 : vector<8x1x1xi32> to vector<8x128x7xi32>
    %31 = arith.cmpi slt, %27, %30 : vector<8x128x7xi32>
    %32 = arith.andi %29, %31 : vector<8x128x7xi1>
    %cst_10 = arith.constant 0.000000e+00 : f32
    %33 = vector.shape_cast %14 : vector<8x1x1xf32> to vector<8x1x1xf32>
    %34 = vector.broadcast %33 : vector<8x1x1xf32> to vector<8x128x7xf32>
    %35 = vector.broadcast %cst_10 : f32 to vector<8x128x7xf32>
    %36 = arith.select %32, %34, %35 : vector<8x128x7xi1>, vector<8x128x7xf32>
    %37 = arith.truncf %36 : vector<8x128x7xf32> to vector<8x128x7xbf16>
    %38 = tpu.concatenate %0, %37 in 2 : vector<8x128x64xbf16>, vector<8x128x7xbf16> -> vector<8x128x71xbf16>
    %39 = vector.shape_cast %38 : vector<8x128x71xbf16> to vector<1024x71xbf16>
    %c0_11 = arith.constant 0 : index
    %c0_12 = arith.constant 0 : index
    %40 = vector.load %arg4[%c0_11, %c0_12] : memref<71x128xbf16, #tpu.memory_space<vmem>>, vector<71x128xbf16>
    %cst_13 = arith.constant dense<0.000000e+00> : vector<1024x128xf32>
    %41 = tpu.matmul %39, %40, %cst_13 {dimension_numbers = #tpu.dot_dimension_numbers<[1], [0], [0], [1], [0, 0, 1, 1], [], []>} : vector<1024x71xbf16>, vector<71x128xbf16>, vector<1024x128xf32> -> vector<1024x128xf32>
    %c0_14 = arith.constant 0 : index
    %c0_15 = arith.constant 0 : index
    %42 = vector.load %arg5[%c0_14, %c0_15] : memref<32x128xf32, #tpu.memory_space<vmem>>, vector<32x128xf32>
    %cst_16 = arith.constant dense<0.000000e+00> : vector<8x128xf32>
    %43 = tpu.matmul %2, %42, %cst_16 {dimension_numbers = #tpu.dot_dimension_numbers<[1], [0], [0], [1], [0, 0, 1, 1], [], []>} : vector<8x32xf32>, vector<32x128xf32>, vector<8x128xf32> -> vector<8x128xf32>
    %44 = vector.shape_cast %5 : vector<128xf32> to vector<1x128xf32>
    %45 = vector.broadcast %44 : vector<1x128xf32> to vector<8x128xf32>
    %46 = arith.addf %43, %45 : vector<8x128xf32>
    %47 = vector.shape_cast %41 : vector<1024x128xf32> to vector<8x128x128xf32>
    %48 = vector.shape_cast %46 : vector<8x128xf32> to vector<8x1x128xf32>
    %49 = vector.broadcast %48 : vector<8x1x128xf32> to vector<8x128x128xf32>
    %50 = arith.addf %47, %49 : vector<8x128x128xf32>
    %51 = math.tanh %50 : vector<8x128x128xf32>
    %52 = vector.shape_cast %7 : vector<128xf32> to vector<1x1x128xf32>
    %53 = vector.broadcast %52 : vector<1x1x128xf32> to vector<8x128x128xf32>
    %54 = arith.mulf %51, %53 : vector<8x128x128xf32>
    %cst_17 = arith.constant dense<0.000000e+00> : vector<8x128xf32>
    %55 = vector.multi_reduction <add>, %54, %cst_17 [2] : vector<8x128x128xf32> to vector<8x128xf32>
    %cst_18 = arith.constant 1.000000e+00 : f32
    %56 = vector.broadcast %cst_18 : f32 to vector<8x128xf32>
    %57 = arith.mulf %55, %56 : vector<8x128xf32>
    %cst_19 = arith.constant -1.000000e+30 : f32
    %58 = vector.broadcast %cst_19 : f32 to vector<8x128xf32>
    %59 = arith.select %18, %57, %58 : vector<8x128xi1>, vector<8x128xf32>
    %cst_20 = arith.constant dense<0xFF800000> : vector<8xf32>
    %60 = vector.multi_reduction <maximumf>, %59, %cst_20 [1] : vector<8x128xf32> to vector<8xf32>
    %61 = vector.shape_cast %60 : vector<8xf32> to vector<8x1xf32>
    %62 = vector.broadcast %61 : vector<8x1xf32> to vector<8x128xf32>
    %63 = arith.subf %59, %62 : vector<8x128xf32>
    %64 = math.exp %63 : vector<8x128xf32>
    %cst_21 = arith.constant dense<0.000000e+00> : vector<8xf32>
    %65 = vector.multi_reduction <add>, %64, %cst_21 [1] : vector<8x128xf32> to vector<8xf32>
    %66 = vector.shape_cast %65 : vector<8xf32> to vector<8x1xf32>
    %cst_22 = arith.constant 1.000000e+00 : f32
    %67 = vector.broadcast %cst_22 : f32 to vector<8x1xf32>
    %68 = arith.divf %67, %66 : vector<8x1xf32>
    %69 = vector.broadcast %68 : vector<8x1xf32> to vector<8x128xf32>
    %70 = arith.mulf %64, %69 : vector<8x128xf32>
    %cst_23 = arith.constant 0.000000e+00 : f32
    %71 = vector.broadcast %cst_23 : f32 to vector<8x128xf32>
    %72 = arith.select %18, %70, %71 : vector<8x128xi1>, vector<8x128xf32>
    %73 = arith.truncf %72 : vector<8x128xf32> to vector<8x128xbf16>
    %74 = vector.shape_cast %73 : vector<8x128xbf16> to vector<8x128x1xbf16>
    %75 = vector.broadcast %74 : vector<8x128x1xbf16> to vector<8x128x64xbf16>
    %76 = arith.mulf %75, %0 : vector<8x128x64xbf16>
    %77 = arith.extf %76 : vector<8x128x64xbf16> to vector<8x128x64xf32>
    %cst_24 = arith.constant dense<0.000000e+00> : vector<8x64xf32>
    %78 = vector.multi_reduction <add>, %77, %cst_24 [1] : vector<8x128x64xf32> to vector<8x64xf32>
    %c0_25 = arith.constant 0 : index
    %c0_26 = arith.constant 0 : index
    %79 = vector.load %arg6[%c0_25, %c0_26] : memref<64x16xf32, #tpu.memory_space<vmem>>, vector<64x16xf32>
    %cst_27 = arith.constant dense<0.000000e+00> : vector<8x16xf32>
    %80 = tpu.matmul %78, %79, %cst_27 {dimension_numbers = #tpu.dot_dimension_numbers<[1], [0], [0], [1], [0, 0, 1, 1], [], []>} : vector<8x64xf32>, vector<64x16xf32>, vector<8x16xf32> -> vector<8x16xf32>
    %81 = vector.shape_cast %9 : vector<16xf32> to vector<1x16xf32>
    %82 = vector.broadcast %81 : vector<1x16xf32> to vector<8x16xf32>
    %83 = arith.addf %80, %82 : vector<8x16xf32>
    %c0_28 = arith.constant 0 : index
    %c0_29 = arith.constant 0 : index
    %84 = vector.load %arg8[%c0_28, %c0_29] : memref<8x16xf32, #tpu.memory_space<vmem>>, vector<8x16xf32>
    tpu.vector_store %arg8[%c0_28, %c0_29], %83 {strides = array<i32>} : memref<8x16xf32, #tpu.memory_space<vmem>>, vector<8x16xf32>,
    %c0_30 = arith.constant 0 : index
    %c0_31 = arith.constant 0 : index
    %85 = vector.load %arg9[%c0_30, %c0_31] : memref<8x128xf32, #tpu.memory_space<vmem>>, vector<8x128xf32>
    tpu.vector_store %arg9[%c0_30, %c0_31], %72 {strides = array<i32>} : memref<8x128xf32, #tpu.memory_space<vmem>>, vector<8x128xf32>,
    return
  }
  func.func @transform_0(%arg0: i32) -> (i32, i32, i32) {
    %c0_i32 = arith.constant 0 : i32
    %c0_i32_0 = arith.constant 0 : i32
    %c0_i32_1 = arith.constant 0 : i32
    return %arg0, %c0_i32, %c0_i32_0 : i32, i32, i32
  }
  func.func @transform_1(%arg0: i32) -> (i32, i32) {
    %c0_i32 = arith.constant 0 : i32
    %c0_i32_0 = arith.constant 0 : i32
    return %arg0, %c0_i32 : i32, i32
  }
  func.func @transform_2(%arg0: i32) -> (i32, i32) {
    %c0_i32 = arith.constant 0 : i32
    %c0_i32_0 = arith.constant 0 : i32
    return %arg0, %c0_i32 : i32, i32
  }
  func.func @transform_3(%arg0: i32) -> (i32, i32) {
    %c0_i32 = arith.constant 0 : i32
    %c0_i32_0 = arith.constant 0 : i32
    %c0_i32_1 = arith.constant 0 : i32
    return %c0_i32, %c0_i32_0 : i32, i32
  }
  func.func @transform_4(%arg0: i32) -> (i32, i32) {
    %c0_i32 = arith.constant 0 : i32
    %c0_i32_0 = arith.constant 0 : i32
    %c0_i32_1 = arith.constant 0 : i32
    return %c0_i32, %c0_i32_0 : i32, i32
  }
  func.func @transform_5(%arg0: i32) -> (i32, i32) {
    %c0_i32 = arith.constant 0 : i32
    %c0_i32_0 = arith.constant 0 : i32
    %c0_i32_1 = arith.constant 0 : i32
    return %c0_i32, %c0_i32_0 : i32, i32
  }
  func.func @transform_6(%arg0: i32) -> (i32, i32) {
    %c0_i32 = arith.constant 0 : i32
    %c0_i32_0 = arith.constant 0 : i32
    %c0_i32_1 = arith.constant 0 : i32
    return %c0_i32, %c0_i32_0 : i32, i32
  }
  func.func @transform_7(%arg0: i32) -> (i32, i32) {
    %c0_i32 = arith.constant 0 : i32
    %c0_i32_0 = arith.constant 0 : i32
    return %arg0, %c0_i32 : i32, i32
  }
  func.func @transform_8(%arg0: i32) -> (i32, i32) {
    %c0_i32 = arith.constant 0 : i32
    %c0_i32_0 = arith.constant 0 : i32
    return %arg0, %c0_i32 : i32, i32
  }
}

</mosaic_0001>

<bundles_post_ra>
// kernel: tpu_custom_call.1
= control target key start
LH: loop header
LB: loop body
LE: loop exit
PB: predicated region body
PF: predicated region fallthrough
CT: control target
= control target key end

     0   :  { %14 = vsyncpa [#allocation3], 0  ;;  %s9369_s0 = inlined_call_operand.vmem [shape: bf16[16,128,64], index: 0, kind: input, shape index: {}]   ;;  %s9370_s1 = inlined_call_operand.vmem [shape: f32[16,1], index: 1, kind: input, shape index: {}]   ;;  %s9371_s2 = inlined_call_operand.vmem [shape: f32[16,32], index: 2, kind: input, shape index: {}]   ;;  %s9372_s3 = inlined_call_operand.vmem [shape: bf16[71,128], index: 3, kind: input, shape index: {}]   ;;  %s9373_s4 = inlined_call_operand.vmem [shape: f32[32,128], index: 4, kind: input, shape index: {}]   ;;  %s9374_s5 = inlined_call_operand.vmem [shape: f32[64,16], index: 5, kind: input, shape index: {}]   ;;  %s9375_s6 = inlined_call_operand.vmem [shape: f32[3,128], index: 6, kind: input, shape index: {}]   ;;  %s9376_s7 = inlined_call_operand.hbm [shape: f32[16,16], index: 7, kind: output, shape index: {0}]   ;;  %s9377_s8 = inlined_call_operand.hbm [shape: f32[16,128], index: 8, kind: output, shape index: {1}]  }
   0x1   :  { %16 = vsyncpa [#allocation3 + $0x1], 0 }
   0x2   :  { %17 = vsyncpa [#allocation5], 0 }
   0x3   :  { %19 = vsyncpa [#allocation5 + $0x1], 0  ;;  %s6430_s27 = smov 0   ;;  %s6432_s28 = smov 0  }
   0x4   :  { %s6434_s29 = smov 0   ;;  %s6436_s30 = smov 0  }
   0x5 LB: > { %s6451_s9 = sadd.s32 4294967295, %s6374_s30   ;;  %s5375_s10 = sadd.s32 4294967294, %s6374_s30   ;;  %s6374_s30 = sphi %s6436_s30, %s9818_s30   ;;  %s6370_s29 = sphi %s6434_s29, %s9817_s29   ;;  %s6366_s28 = sphi %s6432_s28, %s9816_s28   ;;  %s6362_s27 = sphi %s6430_s27, %s9815_s27  }
   0x6   : > { %s6455_s11 = sadd.s32 1, %s6374_s30   ;;  %s194_s12 = sadd.s32 1, %s6370_s29 }
   0x7   : > { %s191_s13 = ssub.s32 %s6374_s30, %s6455_s11  ;;  %p204_p0 = scmp.ne.s32.totalorder %s6370_s29, %s6366_s28 }
   0x8   : > { %p192_p1 = scmp.eq.s32.totalorder %s191_s13, 0  ;;  %p205_p2 = scmp.eq.s32.totalorder %s6451_s9, 1 }
   0x9   : > { %p210_p3 = scmp.ne.s32.totalorder %s6366_s28, %s6362_s27  ;;  %p211_p4 = scmp.eq.s32.totalorder %s5375_s10, 1 }
   0xa   : > { %s6466_s14 = scalar_select %p192_p1, %s6370_s29, %s194_s12  }
   0xb   : > { %p6468_p5 = por %p205_p2, %p204_p0  ;;  %p6472_p6 = por %p211_p4, %p210_p3 }
   0xc   : > { %p5378_p7 = scmp.ge.s32.totalorder %s6374_s30, 1  ;;  %p291_p8 = scmp.lt.s32.totalorder %s6374_s30, 3 }
   0xe   : > { %p292_p9 = pnand %p5378_p7, %p291_p8 }
  0x10   : > { %295 = sbr.rel (%p292_p9) target bundleno = 1942 (0x796), region = 48 }
  0x17   : > { %p346_p10 = scmp.lt.s32.totalorder %s6451_s9, 1  ;;  %v6376_v0 = vmov 0   ;;  %v6377_v1 = vmov 1966171168   ;;  %v494_v3 = vlaneseq  ;;  %v5883_v53 = vld [vmem:[%s9372_s3] sm:$0xff]   ;;  %v5884_v54 = vld [vmem:[%s9372_s3 + $0x8] sm:$0xff]  }
  0x18   : > { %5876 = vset.pattern.permute.xlu0 %v6376_v0  ;;  %v492_v2 = vunpack.c.l.s4 %v6377_v1  ;;  %5877 = vset.pattern.permute.xlu1 %v6376_v0  ;;  %vm2102_vm0 = vcmask 1042432   ;;  %v5885_v55 = vld [vmem:[%s9372_s3 + $0x10] sm:$0xff]   ;;  %vm2103_vm1 = vcmask 1043456   ;;  %v6378_v56 = vmov 65535   ;;  %v5886_v58 = vld [vmem:[%s9372_s3 + $0x18] sm:$0xff]   ;;  %s5381_s22 = sshll.u32 %s6451_s9, 3 }
  0x19   : > { %s6480_s17 = scalar_select %p346_p10, %s6451_s9, 1  ;;  %v6491_v5 = vshrl.u32 %v494_v3, 7  ;;  %5627 = vmatprep.subr.bf16.mxu0 %v5883_v53  ;;  %5813 = vmatprep.subr.bf16.mxu1 %v5883_v53  ;;  %v2104_v57 = vsel %vm2102_vm0, 4294967295, %v6378_v56  ;;  %v5887_v59 = vld [vmem:[%s9372_s3 + $0x20] ss:$0 sps:$4 sm:$0xff]   ;;  %v6548_v62 = vand.u32 127, %v494_v3 }
  0x1a   : > { %v493_v4 = vunpack.c.0.s8 %v492_v2  ;;  %5628 = vmatpush3.bf16.msra.mxu0 %v5883_v53  ;;  %5818 = vmatpush3.bf16.msra.mxu1 %v5883_v53  ;;  %v2105_v60 = vsel %vm2103_vm1, %v2104_v57, 0  ;;  %p340_p11 = scmp.lt.s32.totalorder %s5381_s22, 15  ;;  %s6379_s10 = smov 64  }
  0x1b   : > { %s5384_s18 = sshll.u32 %s6480_s17, 3  ;;  %9397 = vst [vmem:[#allocation8_spill] sm:$0xff] %v6491_v5  ;;  %v6499_v13 = vsub.s32 0, %v6491_v5  ;;  %5629 = vmatprep.subr.bf16.mxu0 %v5884_v54  ;;  %5814 = vmatprep.subr.bf16.mxu1 %v5884_v54  ;;  %v2107_v61 = vand.u32 %v5887_v59, %v2105_v60  ;;  %9399 = vst [vmem:[#allocation10_spill] sm:$0xff] %v6548_v62  ;;  %v601_v63 = vadd.s32 8, %v6491_v5  ;;  %v602_v1 = vadd.s32 16, %v6491_v5 }
  0x1c   : > { %s6488_s21 = scalar_lea.vmem %s9370_s1, %s5384_s18  ;;  %v6495_v9 = vsub.s32 %v493_v4, %v6491_v5  ;;  %v616_v0 = vadd.s32 %v6548_v62, %v6491_v5  ;;  %v603_v2 = vadd.s32 24, %v6491_v5  ;;  %v604_v4 = vadd.s32 32, %v6491_v5  ;;  %s9820_s22 = smov (!%p340_p11, %s5381_s22), 15 }
  0x1d   : > { %v483_v6 = vld [vmem:[%s6488_s21] sm:$0xff]  ;;  %9398 = vst [vmem:[#allocation9_spill] sm:$0xff] %v6499_v13  ;;  %v605_v3 = vadd.s32 40, %v6491_v5  ;;  %s5543_s23 = sshll.u32 %s9820_s22, 6  ;;  %s353_s13 = scalar_lea.vmem %s9371_s2, %s5384_s18 }
  0x1e   : > { %v548_v7 = vmin.f32 %v483_v6, 128.0  ;;  %v486_v8 = vmax.f32 %v483_v6, 1.0  ;;  %5630 = vmatpush3.bf16.msra.mxu0 %v5884_v54  ;;  %5819 = vmatpush3.bf16.msra.mxu1 %v5884_v54  ;;  %v606_v6 = vadd.s32 48, %v6491_v5  ;;  %s6599_s26 = scalar_lea.vmem %s9369_s0, %s5543_s23 }
  0x1f   : > { %5631 = vmatprep.subr.bf16.mxu0 %v5885_v55  ;;  %5815 = vmatprep.subr.bf16.mxu1 %v5885_v55 }
  0x20   : > { %v5823_v10 = vtrunc.f32 %v548_v7  ;;  %5952 = vrcp.f32 %v486_v8  ;;  %v607_v7 = vadd.s32 56, %v6491_v5  ;;  %v608_v8 = vadd.s32 64, %v6491_v5 }
  0x22   : > { %v5824_v11 = vcvt.f32.s32 %v5823_v10  ;;  %5632 = vmatpush3.bf16.msra.mxu0 %v5885_v55  ;;  %5820 = vmatpush3.bf16.msra.mxu1 %v5885_v55  ;;  %v609_v10 = vadd.s32 72, %v6491_v5 }
  0x23   : > { %5633 = vmatprep.subr.bf16.mxu0 %v5886_v58  ;;  %5816 = vmatprep.subr.bf16.mxu1 %v5886_v58 }
  0x24   : > { %v557_v12 = vrot.slane %v5824_v11, %v6495_v9  ;;  %v550_v14 = vcombine.high %v5824_v11, %v5824_v11  ;;  %v617_v11 = vadd.s32 %v601_v63, %v6548_v62 }
  0x26   : > { %v573_v15 = vrot.slane %v557_v12, %v6495_v9  ;;  %v564_v16 = vrot.slane %v550_v14, %v6495_v9  ;;  %v565_v24 = vcombine.high %v557_v12, %v557_v12  ;;  %5634 = vmatpush3.bf16.msra.mxu0 %v5886_v58  ;;  %5821 = vmatpush3.bf16.msra.mxu1 %v5886_v58  ;;  %v6562_v12 = vadd.s32 4294967293, %v616_v0 }
  0x27   : > { %5635 = vmatprep.subr.bf16.mxu0 %v2107_v61  ;;  %5817 = vmatprep.subr.bf16.mxu1 %v2107_v61  ;;  %v618_v14 = vadd.s32 %v602_v1, %v6548_v62 }
  0x28   : > { %v667_v17 = vrot.slane %v573_v15, %v6499_v13  ;;  %v580_v18 = vrot.slane %v564_v16, %v6495_v9  ;;  %v566_v19 = vcombine.high %v564_v16, %v564_v16  ;;  %v6516_v35 = vrot.slane %v565_v24, %v6495_v9 }
  0x29   : > { %v595_v45 = vcombine.high %v573_v15, %v573_v15  ;;  %v610_v15 = vadd.s32 80, %v6491_v5  ;;  %v619_v16 = vadd.s32 %v603_v2, %v6548_v62  ;;  %vm648_vm2 = vcmp.ge.s32.totalorder %v6562_v12, 0 }
  0x2a   : > { %v5953_v20 = vpop.eup %5952  ;;  %697 = vperm.xlu0 %5876, %v667_v17   ;;  %v683_v21 = vrot.slane %v580_v18, %v6499_v13  ;;  %v594_v27 = vrot.slane %v566_v19, %v6495_v9  ;;  %v596_v40 = vcombine.high %v580_v18, %v580_v18  ;;  %v671_v41 = vrot.slane %v6516_v35, %v6499_v13 }
  0x2b   : > { %v497_v22 = vrot.slane %v5953_v20, %v6495_v9  ;;  %v490_v23 = vcombine.high %v5953_v20, %v5953_v20  ;;  %v675_v49 = vrot.slane %v595_v45, %v6499_v13  ;;  %5636 = vmatpush3.bf16.msra.mxu0 %v2107_v61  ;;  %5822 = vmatpush3.bf16.msra.mxu1 %v2107_v61  ;;  %v611_v18 = vadd.s32 88, %v6491_v5 }
  0x2c   : > { %709 = vperm.xlu1 %5877, %v683_v21   ;;  %v687_v33 = vrot.slane %v594_v27, %v6499_v13  ;;  %v691_v46 = vrot.slane %v596_v40, %v6499_v13  ;;  %v598_v48 = vcombine.high %v594_v27, %v594_v27  ;;  %v620_v17 = vadd.s32 %v604_v4, %v6548_v62 }
  0x2d   : > { %v513_v25 = vrot.slane %v497_v22, %v6495_v9  ;;  %v504_v26 = vrot.slane %v490_v23, %v6495_v9  ;;  %v505_v31 = vcombine.high %v497_v22, %v497_v22  ;;  %v621_v19 = vadd.s32 %v605_v3, %v6548_v62 }
  0x2e   : > { %v695_v51 = vrot.slane %v598_v48, %v6499_v13  ;;  %v622_v20 = vadd.s32 %v606_v6, %v6548_v62  ;;  %v623_v21 = vadd.s32 %v607_v7, %v6548_v62  ;;  %v624_v22 = vadd.s32 %v608_v8, %v6548_v62 }
  0x2f   : > { %v979_v28 = vrot.slane %v513_v25, %v6499_v13  ;;  %v520_v29 = vrot.slane %v504_v26, %v6495_v9  ;;  %v506_v30 = vcombine.high %v504_v26, %v504_v26  ;;  %v6520_v37 = vrot.slane %v505_v31, %v6495_v9 }
  0x30   : > { %v535_v38 = vcombine.high %v513_v25, %v513_v25  ;;  %v625_v23 = vadd.s32 %v609_v10, %v6548_v62  ;;  %v6577_v25 = vadd.s32 4294967293, %v617_v11  ;;  %v6580_v26 = vadd.s32 4294967293, %v618_v14 }
  0x31   : > { %1009 = vperm.xlu0 %5876, %v979_v28   ;;  %v995_v32 = vrot.slane %v520_v29, %v6499_v13  ;;  %v534_v34 = vrot.slane %v506_v30, %v6495_v9  ;;  %v536_v39 = vcombine.high %v520_v29, %v520_v29  ;;  %v983_v42 = vrot.slane %v6520_v37, %v6499_v13 }
  0x32   : > { %v987_v43 = vrot.slane %v535_v38, %v6499_v13  ;;  %v626_v27 = vadd.s32 %v610_v15, %v6548_v62  ;;  %v6583_v28 = vadd.s32 4294967293, %v619_v16  ;;  %v6585_v29 = vadd.s32 4294967293, %v620_v17 }
  0x33   : > { %1025 = vperm.xlu1 %5877, %v995_v32   ;;  %v999_v36 = vrot.slane %v534_v34, %v6499_v13  ;;  %v1003_v44 = vrot.slane %v536_v39, %v6499_v13  ;;  %v538_v50 = vcombine.high %v534_v34, %v534_v34  ;;  %v627_v30 = vadd.s32 %v611_v18, %v6548_v62 }
  0x34   : > { %v612_v31 = vadd.s32 96, %v6491_v5  ;;  %v6589_v32 = vadd.s32 4294967293, %v621_v19  ;;  %v6593_v34 = vadd.s32 4294967293, %v623_v21  ;;  %v6603_v38 = vadd.s32 4294967293, %v624_v22 }
  0x35   : > { %712 = vperm.xlu0 %5876, %v687_v33   ;;  %v5878_v47 = vpack.i.bf16 %v987_v43, %v1003_v44  ;;  %v1007_v52 = vrot.slane %v538_v50, %v6499_v13  ;;  %v6591_v33 = vadd.s32 4294967293, %v622_v20  ;;  %v6605_v39 = vadd.s32 4294967293, %v625_v23 }
  0x36   : > { %v6607_v40 = vadd.s32 4294967293, %v626_v27  ;;  %v628_v43 = vadd.s32 %v612_v31, %v6548_v62  ;;  %v615_v44 = vadd.s32 120, %v6491_v5 }
  0x37   : > { %1029 = vperm.xlu1 %5877, %v999_v36   ;;  %v613_v36 = vadd.s32 104, %v6491_v5 }
  0x38   : > { %v631_v59 = vadd.s32 %v615_v44, %v6548_v62  ;;  %v6669_v4 = vadd.s32 4294967293, %v628_v43  ;;  %v597_v44 = vcombine.high %v6516_v35, %v6516_v35 }
  0x39   : > { %700 = vperm.xlu0 %5876, %v671_v41   ;;  %v614_v41 = vadd.s32 112, %v6491_v5  ;;  %v629_v57 = vadd.s32 %v613_v36, %v6548_v62 }
  0x3a   : > { %v6677_v8 = vadd.s32 4294967293, %v631_v59 }
  0x3b   : > { %1013 = vperm.xlu1 %5877, %v983_v42   ;;  %v6612_v42 = vadd.s32 4294967293, %v627_v30  ;;  %v630_v58 = vadd.s32 %v614_v41, %v6548_v62  ;;  %v6671_v3 = vadd.s32 4294967293, %v629_v57 }
  0x3d   : > { %715 = vperm.xlu0 %5876, %v691_v46   ;;  %v6675_v7 = vadd.s32 4294967293, %v630_v58 }
  0x3f   : > { %5879 = vperm.xlu1 %5877, %v5878_v47  }
  0x41   : > { %703 = vperm.xlu0 %5876, %v675_v49  }
  0x43   : > { %718 = vperm.xlu1 %5877, %v695_v51  }
  0x45   : > { %1037 = vperm.xlu0 %5876, %v1007_v52  }
  0xa9   : > { %v6575_v24 = vpop.permute.xlu0 %697 }
  0xaa   : > { %vm720_vm3 = vcmp.lt.s32.totalorder %v6562_v12, %v6575_v24  ;;  %vm721_vm4 = vcmp.lt.s32.totalorder %v6577_v25, %v6575_v24  ;;  %vm722_vm6 = vcmp.lt.s32.totalorder %v6580_v26, %v6575_v24  ;;  %vm723_vm7 = vcmp.lt.s32.totalorder %v6583_v28, %v6575_v24 }
  0xab   : > { %vm848_vm5 = vmand %vm648_vm2, %vm720_vm3  ;;  %vm724_vm8 = vcmp.lt.s32.totalorder %v6585_v29, %v6575_v24  ;;  %vm725_vm9 = vcmp.lt.s32.totalorder %v6589_v32, %v6575_v24  ;;  %vm726_vm10 = vcmp.lt.s32.totalorder %v6591_v33, %v6575_v24  ;;  %vm727_vm11 = vcmp.lt.s32.totalorder %v6593_v34, %v6575_v24  ;;  %v6636_v52 = vpop.permute.xlu1 %709 }
  0xac   : > { %vm728_vm12 = vcmp.lt.s32.totalorder %v6603_v38, %v6575_v24  ;;  %vm729_vm13 = vcmp.lt.s32.totalorder %v6605_v39, %v6575_v24  ;;  %vm730_vm14 = vcmp.lt.s32.totalorder %v6607_v40, %v6575_v24  ;;  %vm731_vm15 = vcmp.lt.s32.totalorder %v6612_v42, %v6575_v24 }
  0xad   : > { %vm792_vm0 = vcmp.lt.s32.totalorder %v6603_v38, %v6636_v52  ;;  %vm793_vm1 = vcmp.lt.s32.totalorder %v6605_v39, %v6636_v52  ;;  %vm794_vm3 = vcmp.lt.s32.totalorder %v6607_v40, %v6636_v52 }
  0xb0   : > { %v6616_v45 = vpop.permute.xlu0 %1009 }
  0xb1   : > { %v1040_v46 = vsel %vm848_vm5, %v6616_v45, 0.0  ;;  %v1041_v47 = vsel %vm721_vm4, %v6616_v45, 0.0  ;;  %v1042_v48 = vsel %vm722_vm6, %v6616_v45, 0.0  ;;  %v1043_v49 = vsel %vm723_vm7, %v6616_v45, 0.0 }
  0xb2   : > { %v1168_v50 = vpack.c.bf16 %v1041_v47, %v1040_v46  ;;  %v1169_v51 = vpack.c.bf16 %v1043_v49, %v1042_v48  ;;  %v1044_v53 = vsel %vm724_vm8, %v6616_v45, 0.0  ;;  %v1045_v54 = vsel %vm725_vm9, %v6616_v45, 0.0  ;;  %v6673_v6 = vpop.permute.xlu1 %1025 }
  0xb3   : > { %v1046_v55 = vsel %vm726_vm10, %v6616_v45, 0.0  ;;  %v1047_v56 = vsel %vm727_vm11, %v6616_v45, 0.0  ;;  %v1170_v60 = vpack.c.bf16 %v1045_v54, %v1044_v53  ;;  %v1048_v63 = vsel %vm728_vm12, %v6616_v45, 0.0 }
  0xb4   : > { %1616 = vrot.lane.b32.xlu1 %v1168_v50, %s6379_s10  ;;  %1618 = vrot.lane.b32.xlu0 %v1169_v51, %s6379_s10  ;;  %v1171_v61 = vpack.c.bf16 %v1047_v56, %v1046_v55  ;;  %v1049_v0 = vsel %vm729_vm13, %v6616_v45, 0.0  ;;  %v1050_v1 = vsel %vm730_vm14, %v6616_v45, 0.0  ;;  %v1051_v2 = vsel %vm731_vm15, %v6616_v45, 0.0  ;;  %v6700_v20 = vpop.permute.xlu0 %712 }
  0xb5   : > { %vm795_vm4 = vcmp.lt.s32.totalorder %v6612_v42, %v6636_v52  ;;  %v1172_v10 = vpack.c.bf16 %v1049_v0, %v1048_v63  ;;  %v1173_v11 = vpack.c.bf16 %v1051_v2, %v1050_v1  ;;  %v1112_v14 = vsel %vm792_vm0, %v6673_v6, 0.0 }
  0xb6   : > { %v1113_v15 = vsel %vm793_vm1, %v6673_v6, 0.0  ;;  %v1114_v16 = vsel %vm794_vm3, %v6673_v6, 0.0  ;;  %v1115_v17 = vsel %vm795_vm4, %v6673_v6, 0.0  ;;  %vm732_vm5 = vcmp.lt.s32.totalorder %v6669_v4, %v6575_v24 }
  0xb7   : > { %vm733_vm6 = vcmp.lt.s32.totalorder %v6671_v3, %v6575_v24  ;;  %v1204_v18 = vpack.c.bf16 %v1113_v15, %v1112_v14  ;;  %v1052_v19 = vsel %vm732_vm5, %v6616_v45, 0.0  ;;  %vm734_vm7 = vcmp.lt.s32.totalorder %v6675_v7, %v6575_v24 }
  0xb8   : > { %1620 = vrot.lane.b32.xlu1 %v1170_v60, %s6379_s10  ;;  %1622 = vrot.lane.b32.xlu0 %v1171_v61, %s6379_s10  ;;  %vm735_vm8 = vcmp.lt.s32.totalorder %v6677_v8, %v6575_v24  ;;  %v1205_v21 = vpack.c.bf16 %v1115_v17, %v1114_v16  ;;  %v1053_v22 = vsel %vm733_vm6, %v6616_v45, 0.0  ;;  %v1054_v23 = vsel %vm734_vm7, %v6616_v45, 0.0  ;;  %v6725_v46 = vpop.permute.xlu0 %700 }
  0xb9   : > { %v1055_v27 = vsel %vm735_vm8, %v6616_v45, 0.0  ;;  %vm796_vm9 = vcmp.lt.s32.totalorder %v6669_v4, %v6636_v52  ;;  %vm797_vm10 = vcmp.lt.s32.totalorder %v6671_v3, %v6636_v52  ;;  %vm798_vm11 = vcmp.lt.s32.totalorder %v6675_v7, %v6636_v52  ;;  %v6723_v45 = vpop.permute.xlu1 %1029 }
  0xba   : > { %vm799_vm12 = vcmp.lt.s32.totalorder %v6677_v8, %v6636_v52  ;;  %vm800_vm13 = vcmp.lt.s32.totalorder %v6562_v12, %v6700_v20  ;;  %v1174_v24 = vpack.c.bf16 %v1053_v22, %v1052_v19  ;;  %v1175_v30 = vpack.c.bf16 %v1055_v27, %v1054_v23 }
  0xbb   : > { %v1116_v31 = vsel %vm796_vm9, %v6673_v6, 0.0  ;;  %v1117_v36 = vsel %vm797_vm10, %v6673_v6, 0.0  ;;  %v1118_v41 = vsel %vm798_vm11, %v6673_v6, 0.0  ;;  %v1119_v43 = vsel %vm799_vm12, %v6673_v6, 0.0  ;;  %vm928_vm15 = vmand %vm648_vm2, %vm800_vm13 }
  0xbc   : > { %1624 = vrot.lane.b32.xlu1 %v1172_v10, %s6379_s10  ;;  %1626 = vrot.lane.b32.xlu0 %v1173_v11, %s6379_s10  ;;  %vm801_vm14 = vcmp.lt.s32.totalorder %v6577_v25, %v6700_v20  ;;  %v1206_v47 = vpack.c.bf16 %v1117_v36, %v1116_v31  ;;  %v1207_v48 = vpack.c.bf16 %v1119_v43, %v1118_v41  ;;  %v1120_v35 = vsel %vm928_vm15, %v6723_v45, 0.0  ;;  %v6823_v43 = vpop.permute.xlu0 %715 }
  0xbd   : > { %v679_v49 = vrot.slane %v597_v44, %v6499_v13  ;;  %v1121_v50 = vsel %vm801_vm14, %v6723_v45, 0.0  ;;  %vm736_vm0 = vcmp.lt.s32.totalorder %v6562_v12, %v6725_v46  ;;  %vm802_vm1 = vcmp.lt.s32.totalorder %v6580_v26, %v6700_v20  ;;  %v6746_v53 = vpop.permute.xlu1 %1013 }
  0xbe   : > { %vm803_vm3 = vcmp.lt.s32.totalorder %v6583_v28, %v6700_v20  ;;  %v537_v51 = vcombine.high %v6520_v37, %v6520_v37  ;;  %v1208_v54 = vpack.c.bf16 %v1121_v50, %v1120_v35  ;;  %vm737_vm4 = vcmp.lt.s32.totalorder %v6577_v25, %v6725_v46  ;;  %vm6752_vm5 = vmand %vm648_vm2, %vm736_vm0 }
  0xbf   : > { %v1122_v56 = vsel %vm802_vm1, %v6723_v45, 0.0  ;;  %v1123_v57 = vsel %vm803_vm3, %v6723_v45, 0.0  ;;  %vm738_vm6 = vcmp.lt.s32.totalorder %v6580_v26, %v6725_v46  ;;  %vm739_vm7 = vcmp.lt.s32.totalorder %v6583_v28, %v6725_v46 }
  0xc0   : > { %1688 = vrot.lane.b32.xlu1 %v1204_v18, %s6379_s10  ;;  %1690 = vrot.lane.b32.xlu0 %v1205_v21, %s6379_s10  ;;  %v991_v37 = vrot.slane %v537_v51, %v6499_v13  ;;  %v1056_v58 = vsel %vm6752_vm5, %v6746_v53, 0.0  ;;  %v1057_v59 = vsel %vm737_vm4, %v6746_v53, 0.0  ;;  %v1209_v60 = vpack.c.bf16 %v1123_v57, %v1122_v56 }
  0xc1   : > { %v1058_v61 = vsel %vm738_vm6, %v6746_v53, 0.0  ;;  %v1059_v63 = vsel %vm739_vm7, %v6746_v53, 0.0  ;;  %vm804_vm8 = vcmp.lt.s32.totalorder %v6585_v29, %v6700_v20  ;;  %vm805_vm9 = vcmp.lt.s32.totalorder %v6589_v32, %v6700_v20  ;;  %v5880_v51 = vpop.permute.xlu1 %5879 }
  0xc2   : > { %vm806_vm10 = vcmp.lt.s32.totalorder %v6591_v33, %v6700_v20  ;;  %vm807_vm11 = vcmp.lt.s32.totalorder %v6593_v34, %v6700_v20  ;;  %v1176_v0 = vpack.c.bf16 %v1057_v59, %v1056_v58  ;;  %v1177_v1 = vpack.c.bf16 %v1059_v63, %v1058_v61 }
  0xc3   : > { %v1124_v2 = vsel %vm804_vm8, %v6723_v45, 0.0  ;;  %v1125_v10 = vsel %vm805_vm9, %v6723_v45, 0.0  ;;  %vm740_vm12 = vcmp.lt.s32.totalorder %v6585_v29, %v6725_v46  ;;  %vm741_vm13 = vcmp.lt.s32.totalorder %v6589_v32, %v6725_v46 }
  0xc4   : > { %1628 = vrot.lane.b32.xlu1 %v1174_v24, %s6379_s10  ;;  %1630 = vrot.lane.b32.xlu0 %v1175_v30, %s6379_s10  ;;  %v1126_v11 = vsel %vm806_vm10, %v6723_v45, 0.0  ;;  %v1127_v14 = vsel %vm807_vm11, %v6723_v45, 0.0  ;;  %vm742_vm14 = vcmp.lt.s32.totalorder %v6591_v33, %v6725_v46  ;;  %vm743_vm15 = vcmp.lt.s32.totalorder %v6593_v34, %v6725_v46 }
  0xc5   : > { %v1060_v15 = vsel %vm740_vm12, %v6746_v53, 0.0  ;;  %v1061_v16 = vsel %vm741_vm13, %v6746_v53, 0.0  ;;  %v1210_v17 = vpack.c.bf16 %v1125_v10, %v1124_v2  ;;  %v1211_v18 = vpack.c.bf16 %v1127_v14, %v1126_v11 }
  0xc6   : > { %v1062_v19 = vsel %vm742_vm14, %v6746_v53, 0.0  ;;  %v1063_v21 = vsel %vm743_vm15, %v6746_v53, 0.0  ;;  %vm808_vm0 = vcmp.lt.s32.totalorder %v6603_v38, %v6700_v20  ;;  %vm809_vm1 = vcmp.lt.s32.totalorder %v6605_v39, %v6700_v20 }
  0xc7   : > { %vm810_vm3 = vcmp.lt.s32.totalorder %v6607_v40, %v6700_v20  ;;  %vm811_vm4 = vcmp.lt.s32.totalorder %v6612_v42, %v6700_v20  ;;  %v1178_v22 = vpack.c.bf16 %v1061_v16, %v1060_v15  ;;  %v1179_v23 = vpack.c.bf16 %v1063_v21, %v1062_v19 }
  0xc8   : > { %1692 = vrot.lane.b32.xlu1 %v1206_v47, %s6379_s10  ;;  %1694 = vrot.lane.b32.xlu0 %v1207_v48, %s6379_s10  ;;  %v1128_v27 = vsel %vm808_vm0, %v6723_v45, 0.0  ;;  %v1129_v24 = vsel %vm809_vm1, %v6723_v45, 0.0  ;;  %vm744_vm5 = vcmp.lt.s32.totalorder %v6603_v38, %v6725_v46  ;;  %vm745_vm6 = vcmp.lt.s32.totalorder %v6605_v39, %v6725_v46 }
  0xc9   : > { %v1130_v30 = vsel %vm810_vm3, %v6723_v45, 0.0  ;;  %v1131_v31 = vsel %vm811_vm4, %v6723_v45, 0.0  ;;  %vm746_vm7 = vcmp.lt.s32.totalorder %v6607_v40, %v6725_v46  ;;  %vm747_vm8 = vcmp.lt.s32.totalorder %v6612_v42, %v6725_v46 }
  0xca   : > { %v1064_v36 = vsel %vm744_vm5, %v6746_v53, 0.0  ;;  %v1065_v41 = vsel %vm745_vm6, %v6746_v53, 0.0  ;;  %v1212_v44 = vpack.c.bf16 %v1129_v24, %v1128_v27  ;;  %v1213_v47 = vpack.c.bf16 %v1131_v31, %v1130_v30 }
  0xcb   : > { %v1066_v48 = vsel %vm746_vm7, %v6746_v53, 0.0  ;;  %vm812_vm9 = vcmp.lt.s32.totalorder %v6669_v4, %v6700_v20  ;;  %vm813_vm10 = vcmp.lt.s32.totalorder %v6671_v3, %v6700_v20  ;;  %vm814_vm11 = vcmp.lt.s32.totalorder %v6675_v7, %v6700_v20 }
  0xcc   : > { %706 = vperm.xlu1 %5877, %v679_v49   ;;  %1696 = vrot.lane.b32.xlu0 %v1208_v54, %s6379_s10  ;;  %v1067_v49 = vsel %vm747_vm8, %v6746_v53, 0.0  ;;  %vm815_vm12 = vcmp.lt.s32.totalorder %v6677_v8, %v6700_v20  ;;  %v1180_v35 = vpack.c.bf16 %v1065_v41, %v1064_v36  ;;  %v1132_v54 = vsel %vm812_vm9, %v6723_v45, 0.0  ;;  %v6849_v20 = vpop.permute.xlu0 %703 }
  0xcd   : > { %v1181_v50 = vpack.c.bf16 %v1067_v49, %v1066_v48  ;;  %v1133_v55 = vsel %vm813_vm10, %v6723_v45, 0.0  ;;  %vm748_vm13 = vcmp.lt.s32.totalorder %v6669_v4, %v6725_v46  ;;  %vm749_vm14 = vcmp.lt.s32.totalorder %v6671_v3, %v6725_v46 }
  0xce   : > { %v1134_v56 = vsel %vm814_vm11, %v6723_v45, 0.0  ;;  %v1135_v57 = vsel %vm815_vm12, %v6723_v45, 0.0  ;;  %vm750_vm15 = vcmp.lt.s32.totalorder %v6675_v7, %v6725_v46  ;;  %vm751_vm0 = vcmp.lt.s32.totalorder %v6677_v8, %v6725_v46 }
  0xcf   : > { %v1214_v58 = vpack.c.bf16 %v1133_v55, %v1132_v54  ;;  %v1068_v59 = vsel %vm748_vm13, %v6746_v53, 0.0  ;;  %v1215_v45 = vpack.c.bf16 %v1135_v57, %v1134_v56  ;;  %v1070_v61 = vsel %vm750_vm15, %v6746_v53, 0.0 }
  0xd0   : > { %1698 = vrot.lane.b32.xlu1 %v1209_v60, %s6379_s10  ;;  %1021 = vperm.xlu0 %5876, %v991_v37   ;;  %v6853_v37 = vunpack.i.l.bf16 %v5880_v51  ;;  %v1069_v60 = vsel %vm749_vm14, %v6746_v53, 0.0  ;;  %v1071_v63 = vsel %vm751_vm0, %v6746_v53, 0.0  ;;  %vm816_vm1 = vcmp.lt.s32.totalorder %v6562_v12, %v6823_v43 }
  0xd1   : > { %vm752_vm3 = vcmp.lt.s32.totalorder %v6562_v12, %v6849_v20  ;;  %vm817_vm4 = vcmp.lt.s32.totalorder %v6577_v25, %v6823_v43  ;;  %v6867_v46 = vunpack.i.h.bf16 %v5880_v51  ;;  %vm944_vm5 = vmand %vm648_vm2, %vm816_vm1  ;;  %vm818_vm6 = vcmp.lt.s32.totalorder %v6580_v26, %v6823_v43 }
  0xd2   : > { %v1137_v53 = vsel %vm817_vm4, %v6853_v37, 0.0  ;;  %v1136_v2 = vsel %vm944_vm5, %v6853_v37, 0.0  ;;  %vm819_vm7 = vcmp.lt.s32.totalorder %v6583_v28, %v6823_v43  ;;  %vm753_vm8 = vcmp.lt.s32.totalorder %v6577_v25, %v6849_v20  ;;  %vm6881_vm9 = vmand %vm648_vm2, %vm752_vm3 }
  0xd3   : > { %v1138_v11 = vsel %vm818_vm6, %v6853_v37, 0.0  ;;  %v1139_v14 = vsel %vm819_vm7, %v6853_v37, 0.0  ;;  %vm754_vm10 = vcmp.lt.s32.totalorder %v6580_v26, %v6849_v20  ;;  %vm755_vm11 = vcmp.lt.s32.totalorder %v6583_v28, %v6849_v20 }
  0xd4   : > { %1632 = vrot.lane.b32.xlu1 %v1176_v0, %s6379_s10  ;;  %1634 = vrot.lane.b32.xlu0 %v1177_v1, %s6379_s10  ;;  %v1182_v0 = vpack.c.bf16 %v1069_v60, %v1068_v59  ;;  %v1183_v1 = vpack.c.bf16 %v1071_v63, %v1070_v61  ;;  %v1072_v15 = vsel %vm6881_vm9, %v6867_v46, 0.0  ;;  %v1073_v16 = vsel %vm753_vm8, %v6867_v46, 0.0 }
  0xd5   : > { %v1074_v19 = vsel %vm754_vm10, %v6867_v46, 0.0  ;;  %v1075_v21 = vsel %vm755_vm11, %v6867_v46, 0.0  ;;  %vm820_vm12 = vcmp.lt.s32.totalorder %v6585_v29, %v6823_v43  ;;  %vm821_vm13 = vcmp.lt.s32.totalorder %v6589_v32, %v6823_v43 }
  0xd6   : > { %v1141_v27 = vsel %vm821_vm13, %v6853_v37, 0.0  ;;  %v1185_v24 = vpack.c.bf16 %v1075_v21, %v1074_v19  ;;  %vm822_vm14 = vcmp.lt.s32.totalorder %v6591_v33, %v6823_v43  ;;  %vm756_vm15 = vcmp.lt.s32.totalorder %v6585_v29, %v6849_v20  ;;  %v6988_v19 = vpop.permute.xlu0 %1037 }
  0xd7   : > { %vm757_vm0 = vcmp.lt.s32.totalorder %v6589_v32, %v6849_v20  ;;  %vm823_vm1 = vcmp.lt.s32.totalorder %v6593_v34, %v6823_v43  ;;  %vm758_vm3 = vcmp.lt.s32.totalorder %v6591_v33, %v6849_v20  ;;  %vm759_vm4 = vcmp.lt.s32.totalorder %v6593_v34, %v6849_v20 }
  0xd8   : > { %1700 = vrot.lane.b32.xlu1 %v1210_v17, %s6379_s10  ;;  %1702 = vrot.lane.b32.xlu0 %v1211_v18, %s6379_s10  ;;  %v1216_v17 = vpack.c.bf16 %v1137_v53, %v1136_v2  ;;  %v1217_v18 = vpack.c.bf16 %v1139_v14, %v1138_v11  ;;  %v1142_v30 = vsel %vm822_vm14, %v6853_v37, 0.0  ;;  %v1143_v31 = vsel %vm823_vm1, %v6853_v37, 0.0 }
  0xd9   : > { %v9378_v36 = vmov 0.0|0.0   ;;  %v1076_v41 = vsel %vm756_vm15, %v6867_v46, 0.0  ;;  %v1079_v48 = vsel %vm759_vm4, %v6867_v46, 0.0  ;;  %vm824_vm5 = vcmp.lt.s32.totalorder %v6603_v38, %v6823_v43 }
  0xda   : > { %5795 = vmatprep.subr.bf16.mxu1 %v9378_v36  ;;  %vm825_vm6 = vcmp.lt.s32.totalorder %v6605_v39, %v6823_v43  ;;  %v1144_v54 = vsel %vm824_vm5, %v6853_v37, 0.0  ;;  %vm826_vm7 = vcmp.lt.s32.totalorder %v6607_v40, %v6823_v43  ;;  %vm827_vm8 = vcmp.lt.s32.totalorder %v6612_v42, %v6823_v43 }
  0xdb   : > { %v1145_v55 = vsel %vm825_vm6, %v6853_v37, 0.0  ;;  %v1146_v56 = vsel %vm826_vm7, %v6853_v37, 0.0  ;;  %v1147_v57 = vsel %vm827_vm8, %v6853_v37, 0.0  ;;  %vm760_vm9 = vcmp.lt.s32.totalorder %v6603_v38, %v6849_v20 }
  0xdc   : > { %1636 = vrot.lane.b32.xlu1 %v1178_v22, %s6379_s10  ;;  %1638 = vrot.lane.b32.xlu0 %v1179_v23, %s6379_s10  ;;  %v1184_v22 = vpack.c.bf16 %v1073_v16, %v1072_v15  ;;  %v1140_v23 = vsel %vm820_vm12, %v6853_v37, 0.0  ;;  %vm761_vm10 = vcmp.lt.s32.totalorder %v6605_v39, %v6849_v20  ;;  %vm762_vm11 = vcmp.lt.s32.totalorder %v6607_v40, %v6849_v20 }
  0xdd   : > { %v1218_v49 = vpack.c.bf16 %v1141_v27, %v1140_v23  ;;  %vm763_vm12 = vcmp.lt.s32.totalorder %v6612_v42, %v6849_v20  ;;  %v1221_v59 = vpack.c.bf16 %v1147_v57, %v1146_v56  ;;  %v1080_v60 = vsel %vm760_vm9, %v6867_v46, 0.0  ;;  %v5892_v56 = vld [vmem:[%s6599_s26 + $0x20] sm:$0xff]  }
  0xde   : > { %v1082_v61 = vsel %vm762_vm11, %v6867_v46, 0.0  ;;  %v1083_v63 = vsel %vm763_vm12, %v6867_v46, 0.0  ;;  %vm828_vm13 = vcmp.lt.s32.totalorder %v6669_v4, %v6823_v43  ;;  %vm829_vm14 = vcmp.lt.s32.totalorder %v6671_v3, %v6823_v43 }
  0xdf   : > { %v1189_v53 = vpack.c.bf16 %v1083_v63, %v1082_v61  ;;  %v1148_v2 = vsel %vm828_vm13, %v6853_v37, 0.0  ;;  %vm830_vm15 = vcmp.lt.s32.totalorder %v6675_v7, %v6823_v43  ;;  %v1149_v10 = vsel %vm829_vm14, %v6853_v37, 0.0  ;;  %v2655_v61 = vld [vmem:[%s9373_s4 + $0x8] sm:$0xff] }
  0xe0   : > { %1704 = vrot.lane.b32.xlu1 %v1212_v44, %s6379_s10  ;;  %1706 = vrot.lane.b32.xlu0 %v1213_v47, %s6379_s10  ;;  %v1077_v44 = vsel %vm757_vm0, %v6867_v46, 0.0  ;;  %v1078_v47 = vsel %vm758_vm3, %v6867_v46, 0.0  ;;  %vm831_vm0 = vcmp.lt.s32.totalorder %v6677_v8, %v6823_v43  ;;  %v1150_v11 = vsel %vm830_vm15, %v6853_v37, 0.0 }
  0xe1   : > { %v1187_v51 = vpack.c.bf16 %v1079_v48, %v1078_v47  ;;  %v1151_v14 = vsel %vm831_vm0, %v6853_v37, 0.0  ;;  %vm764_vm1 = vcmp.lt.s32.totalorder %v6669_v4, %v6849_v20  ;;  %vm765_vm3 = vcmp.lt.s32.totalorder %v6671_v3, %v6849_v20 }
  0xe2   : > { %vm766_vm4 = vcmp.lt.s32.totalorder %v6675_v7, %v6849_v20  ;;  %vm767_vm5 = vcmp.lt.s32.totalorder %v6677_v8, %v6849_v20  ;;  %v1222_v43 = vpack.c.bf16 %v1149_v10, %v1148_v2  ;;  %v1223_v37 = vpack.c.bf16 %v1151_v14, %v1150_v11 }
  0xe3   : > { %v1084_v15 = vsel %vm764_vm1, %v6867_v46, 0.0  ;;  %v1085_v16 = vsel %vm765_vm3, %v6867_v46, 0.0  ;;  %vm9388_vm11 = vcmask 523264   ;;  %vm1973_vm12 = vcmask 580608  }
  0xe4   : > { %1640 = vrot.lane.b32.xlu1 %v1180_v35, %s6379_s10  ;;  %1642 = vrot.lane.b32.xlu0 %v1181_v50, %s6379_s10  ;;  %v1219_v35 = vpack.c.bf16 %v1143_v31, %v1142_v30  ;;  %v1186_v50 = vpack.c.bf16 %v1077_v44, %v1076_v41  ;;  %v1190_v20 = vpack.c.bf16 %v1085_v16, %v1084_v15  ;;  %v5888_v31 = vld [vmem:[%s6599_s26 + $0x8] sm:$0xff]   ;;  %v5889_v41 = vld [vmem:[%s6599_s26] sm:$0xff]  }
  0xe5   : > { %v5893_v15 = vld [vmem:[%s6599_s26 + $0x28] sm:$0xff]   ;;  %v5896_v16 = vld [vmem:[%s6599_s26 + $0x30] sm:$0xff]  }
  0xe8   : > { %1708 = vrot.lane.b32.xlu1 %v1214_v58, %s6379_s10  ;;  %1710 = vrot.lane.b32.xlu0 %v1215_v45, %s6379_s10  ;;  %v1220_v58 = vpack.c.bf16 %v1145_v55, %v1144_v54  ;;  %v1081_v45 = vsel %vm761_vm10, %v6867_v46, 0.0  ;;  %v5891_v55 = vld [vmem:[%s6599_s26 + $0x18] sm:$0xff]  }
  0xec   : > { %1644 = vrot.lane.b32.xlu1 %v1182_v0, %s6379_s10  ;;  %1646 = vrot.lane.b32.xlu0 %v1183_v1, %s6379_s10  ;;  %v1188_v0 = vpack.c.bf16 %v1081_v45, %v1080_v60  ;;  %v6962_v1 = vpop.permute.xlu1 %718  ;;  %v5895_v60 = vld [vmem:[%s6599_s26 + $0x120] sm:$0xff]  }
  0xed   : > { %vm832_vm6 = vcmp.lt.s32.totalorder %v6562_v12, %v6962_v1  ;;  %vm834_vm7 = vcmp.lt.s32.totalorder %v6580_v26, %v6962_v1  ;;  %vm835_vm8 = vcmp.lt.s32.totalorder %v6583_v28, %v6962_v1  ;;  %vm833_vm9 = vcmp.lt.s32.totalorder %v6577_v25, %v6962_v1  ;;  %v2654_v45 = vld [vmem:[%s9373_s4] sm:$0xff] }
  0xee   : > { %vm960_vm10 = vmand %vm648_vm2, %vm832_vm6  ;;  %v1154_v21 = vsel %vm834_vm7, %v6988_v19, 0.0  ;;  %v1153_v27 = vsel %vm833_vm9, %v6988_v19, 0.0  ;;  %v5796_v10 = vpack.c.bf16 %v2655_v61, %v2654_v45  ;;  %vm838_vm14 = vcmp.lt.s32.totalorder %v6591_v33, %v6962_v1 }
  0xef   : > { %v1152_v23 = vsel %vm960_vm10, %v6988_v19, 0.0  ;;  %vm839_vm15 = vcmp.lt.s32.totalorder %v6593_v34, %v6962_v1  ;;  %vm836_vm0 = vcmp.lt.s32.totalorder %v6585_v29, %v6962_v1  ;;  %vm837_vm6 = vcmp.lt.s32.totalorder %v6589_v32, %v6962_v1 }
  0xf0   : > { %1712 = vrot.lane.b32.xlu1 %v1216_v17, %s6379_s10  ;;  %1714 = vrot.lane.b32.xlu0 %v1217_v18, %s6379_s10  ;;  %v1086_v17 = vsel %vm766_vm4, %v6867_v46, 0.0  ;;  %v1087_v18 = vsel %vm767_vm5, %v6867_v46, 0.0  ;;  %v1224_v30 = vpack.c.bf16 %v1153_v27, %v1152_v23  ;;  %vm842_vm7 = vcmp.lt.s32.totalorder %v6607_v40, %v6962_v1 }
  0xf1   : > { %v1191_v46 = vpack.c.bf16 %v1087_v18, %v1086_v17  ;;  %vm843_vm10 = vcmp.lt.s32.totalorder %v6612_v42, %v6962_v1 }
  0xf4   : > { %1648 = vrot.lane.b32.xlu1 %v1184_v22, %s6379_s10  ;;  %1650 = vrot.lane.b32.xlu0 %v1185_v24, %s6379_s10  ;;  %v1155_v22 = vsel %vm835_vm8, %v6988_v19, 0.0 }
  0xf5   : > { %v1225_v24 = vpack.c.bf16 %v1155_v22, %v1154_v21  ;;  %v5899_v21 = vld [vmem:[%s6599_s26 + $0x138] sm:$0xff]  }
  0xf8   : > { %1716 = vrot.lane.b32.xlu1 %v1218_v49, %s6379_s10  ;;  %1718 = vrot.lane.b32.xlu0 %v1219_v35, %s6379_s10  ;;  %v5890_v35 = vld [vmem:[%s6599_s26 + $0x10] sm:$0xff]  }
  0xfc   : > { %1652 = vrot.lane.b32.xlu1 %v1186_v50, %s6379_s10  ;;  %1654 = vrot.lane.b32.xlu0 %v1187_v51, %s6379_s10 }
 0x100   : > { %1720 = vrot.lane.b32.xlu1 %v1220_v58, %s6379_s10  ;;  %1722 = vrot.lane.b32.xlu0 %v1221_v59, %s6379_s10  ;;  %v5894_v59 = vld [vmem:[%s6599_s26 + $0x128] sm:$0xff]  }
 0x104   : > { %1656 = vrot.lane.b32.xlu1 %v1188_v0, %s6379_s10  ;;  %1658 = vrot.lane.b32.xlu0 %v1189_v53, %s6379_s10 }
 0x108   : > { %1724 = vrot.lane.b32.xlu1 %v1222_v43, %s6379_s10  ;;  %1726 = vrot.lane.b32.xlu0 %v1223_v37, %s6379_s10  ;;  %v2656_v43 = vld [vmem:[%s9373_s4 + $0x10] sm:$0xff]  ;;  %v2657_v37 = vld [vmem:[%s9373_s4 + $0x18] sm:$0xff] }
 0x10c   : > { %1660 = vrot.lane.b32.xlu1 %v1190_v20, %s6379_s10  ;;  %1662 = vrot.lane.b32.xlu0 %v1191_v46, %s6379_s10  ;;  %v5799_v20 = vpack.c.bf16 %v2657_v37, %v2656_v43  ;;  %v5898_v46 = vld [vmem:[%s6599_s26 + $0x130] sm:$0xff]  }
 0x110   : > { %1730 = vrot.lane.b32.xlu0 %v1225_v24, %s6379_s10  ;;  %1728 = vrot.lane.b32.xlu1 %v1224_v30, %s6379_s10 }
 0x126   : > { %v1617_v44 = vpop.permute.xlu1 %1616  ;;  %v1619_v47 = vpop.permute.xlu0 %1618 }
 0x127   : > { %v1750_v48 = vsel %vm9388_vm11, %v5888_v31, %v1619_v47  ;;  %v1747_v49 = vsel %vm9388_vm11, %v5889_v41, %v1617_v44  ;;  %v5900_v41 = vld [vmem:[%s6599_s26 + $0x140] sm:$0xff]   ;;  %v5897_v44 = vld [vmem:[%s6599_s26 + $0x38] sm:$0xff]  }
 0x128   : > { %5637 = vmatprep.mubr.msk.bf16.mxu0 %vm1973_vm12, %v1747_v49 }
 0x129   : > { %5638 = vmatmul.mubr.msk.bf16.vlgmr.msra.gmra.mrb[0].mxu0 %vm1973_vm12, %v1750_v48 }
 0x12a   : > { %v1621_v50 = vpop.permute.xlu1 %1620  ;;  %v1623_v51 = vpop.permute.xlu0 %1622 }
 0x12b   : > { %v1753_v54 = vsel %vm9388_vm11, %v5890_v35, %v1621_v50  ;;  %v1756_v63 = vsel %vm9388_vm11, %v5891_v55, %v1623_v51  ;;  %v5901_v50 = vld [vmem:[%s6599_s26 + $0x148] sm:$0xff]  }
 0x12c   : > { %5641 = vmatprep.mubr.msk.bf16.mxu0 %vm1973_vm12, %v1753_v54 }
 0x12e   : > { %v1625_v57 = vpop.permute.xlu1 %1624  ;;  %v1627_v58 = vpop.permute.xlu0 %1626 }
 0x12f   : > { %v1759_v0 = vsel %vm9388_vm11, %v5892_v56, %v1625_v57  ;;  %v1762_v22 = vsel %vm9388_vm11, %v5893_v15, %v1627_v58  ;;  %v5902_v56 = vld [vmem:[%s6599_s26 + $0x40] sm:$0xff]   ;;  %v5904_v15 = vld [vmem:[%s6599_s26 + $0x150] sm:$0xff]  }
 0x131   : > { %5642 = vmatmul.mubr.msk.bf16.gmra.mrb[4].mxu0 %vm1973_vm12, %v1756_v63  ;;  %v1158_v63 = vsel %vm838_vm14, %v6988_v19, 0.0 }
 0x132   : > { %v1689_v53 = vpop.permute.xlu1 %1688  ;;  %v1691_v2 = vpop.permute.xlu0 %1690  ;;  %5645 = vmatprep.mubr.msk.bf16.mxu0 %vm1973_vm12, %v1759_v0  ;;  %v1159_v0 = vsel %vm839_vm15, %v6988_v19, 0.0  ;;  %vm840_vm15 = vcmp.lt.s32.totalorder %v6603_v38, %v6962_v1 }
 0x133   : > { %v1858_v11 = vsel %vm9388_vm11, %v5894_v59, %v1691_v2  ;;  %v1855_v14 = vsel %vm9388_vm11, %v5895_v60, %v1689_v53  ;;  %v5903_v60 = vld [vmem:[%s6599_s26 + $0x48] sm:$0xff]   ;;  %v1156_v2 = vsel %vm836_vm0, %v6988_v19, 0.0  ;;  %vm841_vm0 = vcmp.lt.s32.totalorder %v6605_v39, %v6962_v1 }
 0x134   : > { %5709 = vmatprep.mubr.msk.bf16.mxu1 %vm1973_vm12, %v1855_v14 }
 0x135   : > { %5710 = vmatmul.mubr.msk.bf16.vlgmr.msra.gmra.mrb[0].mxu1 %vm1973_vm12, %v1858_v11 }
 0x136   : > { %v1629_v17 = vpop.permute.xlu1 %1628  ;;  %v1631_v18 = vpop.permute.xlu0 %1630  ;;  %5797 = vmatpush3.bf16.msra.mxu1 %v5796_v10  ;;  %v1157_v10 = vsel %vm837_vm6, %v6988_v19, 0.0 }
 0x137   : > { %5798 = vmatprep.subr.bf16.mxu1 %v9378_v36  ;;  %v1765_v23 = vsel %vm9388_vm11, %v5896_v16, %v1629_v17  ;;  %v1768_v49 = vsel %vm9388_vm11, %v5897_v44, %v1631_v18  ;;  %v1227_v16 = vpack.c.bf16 %v1159_v0, %v1158_v63  ;;  %v5905_v17 = vld [vmem:[%s6599_s26 + $0x158] sm:$0xff]   ;;  %v1226_v18 = vpack.c.bf16 %v1157_v10, %v1156_v2 }
 0x139   : > { %5646 = vmatmul.mubr.msk.bf16.gmra.mrb[8].mxu0 %vm1973_vm12, %v1762_v22 }
 0x13a   : > { %v1693_v27 = vpop.permute.xlu1 %1692  ;;  %v1695_v24 = vpop.permute.xlu0 %1694  ;;  %5649 = vmatprep.mubr.msk.bf16.mxu0 %vm1973_vm12, %v1765_v23  ;;  %5800 = vmatpush3.bf16.msra.mxu1 %v5799_v20 }
 0x13b   : > { %v1861_v30 = vsel %vm9388_vm11, %v5898_v46, %v1693_v27  ;;  %v1864_v31 = vsel %vm9388_vm11, %v5899_v21, %v1695_v24  ;;  %5801 = vmatprep.subr.bf16.mxu1 %v9378_v36 }
 0x13c   : > { %5713 = vmatprep.mubr.msk.bf16.mxu1 %vm1973_vm12, %v1861_v30 }
 0x13d   : > { %5714 = vmatmul.mubr.msk.bf16.gmra.mrb[4].mxu1 %vm1973_vm12, %v1864_v31  ;;  %v5906_v31 = vld [vmem:[%s6599_s26 + $0x50] sm:$0xff]  }
 0x13e   : > { %v1697_v47 = vpop.permute.xlu0 %1696 }
 0x13f   : > { %v1867_v48 = vsel %vm9388_vm11, %v5900_v41, %v1697_v47  ;;  %v5907_v41 = vld [vmem:[%s6599_s26 + $0x58] sm:$0xff]   ;;  %v1162_v47 = vsel %vm842_vm7, %v6988_v19, 0.0 }
 0x140   : > { %5717 = vmatprep.mubr.msk.bf16.mxu1 %vm1973_vm12, %v1867_v48  ;;  %v1163_v48 = vsel %vm843_vm10, %v6988_v19, 0.0  ;;  %vm784_vm10 = vcmp.lt.s32.totalorder %v6562_v12, %v6636_v52 }
 0x141   : > { %5650 = vmatmul.mubr.msk.bf16.gmra.mrb[12].mxu0 %vm1973_vm12, %v1768_v49 }
 0x14b   : > { %v7061_v35 = vpop.permute.xlu1 %706 }
 0x14c   : > { %vm768_vm13 = vcmp.lt.s32.totalorder %v6562_v12, %v7061_v35  ;;  %vm770_vm1 = vcmp.lt.s32.totalorder %v6580_v26, %v7061_v35  ;;  %vm771_vm3 = vcmp.lt.s32.totalorder %v6583_v28, %v7061_v35  ;;  %vm769_vm4 = vcmp.lt.s32.totalorder %v6577_v25, %v7061_v35 }
 0x14d   : > { %vm896_vm5 = vmand %vm648_vm2, %vm768_vm13  ;;  %vm774_vm8 = vcmp.lt.s32.totalorder %v6591_v33, %v7061_v35  ;;  %vm775_vm9 = vcmp.lt.s32.totalorder %v6593_v34, %v7061_v35  ;;  %vm772_vm13 = vcmp.lt.s32.totalorder %v6585_v29, %v7061_v35  ;;  %vm773_vm14 = vcmp.lt.s32.totalorder %v6589_v32, %v7061_v35 }
 0x14e   : > { %vm776_vm6 = vcmp.lt.s32.totalorder %v6603_v38, %v7061_v35  ;;  %vm777_vm7 = vcmp.lt.s32.totalorder %v6605_v39, %v7061_v35  ;;  %v5910_v39 = vld [vmem:[%s6599_s26 + $0x60] sm:$0xff]  }
 0x14f   : > { %v1699_v51 = vpop.permute.xlu1 %1698  ;;  %v7072_v54 = vpop.permute.xlu0 %1021 }
 0x150   : > { %v1870_v55 = vsel %vm9388_vm11, %v5901_v50, %v1699_v51  ;;  %v1090_v57 = vsel %vm770_vm1, %v7072_v54, 0.0  ;;  %v1091_v58 = vsel %vm771_vm3, %v7072_v54, 0.0  ;;  %v1088_v59 = vsel %vm896_vm5, %v7072_v54, 0.0 }
 0x151   : > { %5718 = vmatmul.mubr.msk.bf16.gmra.mrb[8].mxu1 %vm1973_vm12, %v1870_v55  ;;  %v1193_v45 = vpack.c.bf16 %v1091_v58, %v1090_v57  ;;  %v1089_v61 = vsel %vm769_vm4, %v7072_v54, 0.0  ;;  %v1094_v20 = vsel %vm774_vm8, %v7072_v54, 0.0  ;;  %v1095_v46 = vsel %vm775_vm9, %v7072_v54, 0.0 }
 0x152   : > { %v1192_v53 = vpack.c.bf16 %v1089_v61, %v1088_v59  ;;  %v1092_v23 = vsel %vm772_vm13, %v7072_v54, 0.0  ;;  %v1093_v27 = vsel %vm773_vm14, %v7072_v54, 0.0  ;;  %v1195_v44 = vpack.c.bf16 %v1095_v46, %v1094_v20  ;;  %v5908_v59 = vld [vmem:[%s6599_s26 + $0x160] sm:$0xff]  }
 0x153   : > { %v1633_v11 = vpop.permute.xlu1 %1632  ;;  %1666 = vrot.lane.b32.xlu0 %v1193_v45, %s6379_s10  ;;  %v1635_v14 = vpop.permute.xlu0 %1634  ;;  %v1194_v49 = vpack.c.bf16 %v1093_v27, %v1092_v23  ;;  %v1160_v50 = vsel %vm840_vm15, %v6988_v19, 0.0  ;;  %v1161_v51 = vsel %vm841_vm0, %v6988_v19, 0.0  ;;  %v5909_v45 = vld [vmem:[%s6599_s26 + $0x168] sm:$0xff]   ;;  %vm846_vm1 = vcmp.lt.s32.totalorder %v6675_v7, %v6962_v1  ;;  %v5913_v23 = vld [vmem:[%s6599_s26 + $0x178] sm:$0xff]  }
 0x154   : > { %v1771_v43 = vsel %vm9388_vm11, %v5902_v56, %v1633_v11  ;;  %1664 = vrot.lane.b32.xlu1 %v1192_v53, %s6379_s10  ;;  %v1774_v37 = vsel %vm9388_vm11, %v5903_v60, %v1635_v14  ;;  %v1229_v60 = vpack.c.bf16 %v1163_v48, %v1162_v47  ;;  %v1228_v61 = vpack.c.bf16 %v1161_v51, %v1160_v50  ;;  %v5911_v11 = vld [vmem:[%s6599_s26 + $0x68] sm:$0xff]  }
 0x155   : > { %5653 = vmatprep.mubr.msk.bf16.mxu0 %vm1973_vm12, %v1771_v43  ;;  %vm778_vm3 = vcmp.lt.s32.totalorder %v6607_v40, %v7061_v35  ;;  %vm779_vm4 = vcmp.lt.s32.totalorder %v6612_v42, %v7061_v35  ;;  %vm847_vm5 = vcmp.lt.s32.totalorder %v6677_v8, %v6962_v1  ;;  %v1096_v53 = vsel %vm776_vm6, %v7072_v54, 0.0 }
 0x156   : > { %5654 = vmatmul.mubr.msk.bf16.gmra.mrb[16].mxu0 %vm1973_vm12, %v1774_v37  ;;  %v1098_v63 = vsel %vm778_vm3, %v7072_v54, 0.0  ;;  %v1099_v0 = vsel %vm779_vm4, %v7072_v54, 0.0  ;;  %v1097_v2 = vsel %vm777_vm7, %v7072_v54, 0.0  ;;  %vm844_vm8 = vcmp.lt.s32.totalorder %v6669_v4, %v6962_v1 }
 0x157   : > { %v1701_v21 = vpop.permute.xlu1 %1700  ;;  %1734 = vrot.lane.b32.xlu0 %v1227_v16, %s6379_s10  ;;  %v1703_v22 = vpop.permute.xlu0 %1702  ;;  %vm845_vm9 = vcmp.lt.s32.totalorder %v6671_v3, %v6962_v1  ;;  %v1197_v14 = vpack.c.bf16 %v1099_v0, %v1098_v63  ;;  %v1166_v43 = vsel %vm846_vm1, %v6988_v19, 0.0  ;;  %v1196_v37 = vpack.c.bf16 %v1097_v2, %v1096_v53  ;;  %v5919_v63 = vld [vmem:[%s6599_s26 + $0x88] sm:$0xff]  }
 0x158   : > { %v1873_v24 = vsel %vm9388_vm11, %v5904_v15, %v1701_v21  ;;  %1732 = vrot.lane.b32.xlu1 %v1226_v18, %s6379_s10  ;;  %v1876_v30 = vsel %vm9388_vm11, %v5905_v17, %v1703_v22  ;;  %v1167_v15 = vsel %vm847_vm5, %v6988_v19, 0.0  ;;  %v1164_v16 = vsel %vm844_vm8, %v6988_v19, 0.0  ;;  %v5912_v22 = vld [vmem:[%s6599_s26 + $0x170] sm:$0xff]   ;;  %vm7236_vm5 = vmand %vm648_vm2, %vm784_vm10 }
 0x159   : > { %5721 = vmatprep.mubr.msk.bf16.mxu1 %vm1973_vm12, %v1873_v24  ;;  %v1165_v17 = vsel %vm845_vm9, %v6988_v19, 0.0  ;;  %v1231_v1 = vpack.c.bf16 %v1167_v15, %v1166_v43  ;;  %vm782_vm13 = vcmp.lt.s32.totalorder %v6675_v7, %v7061_v35  ;;  %vm783_vm14 = vcmp.lt.s32.totalorder %v6677_v8, %v7061_v35  ;;  %v5923_v15 = vld [vmem:[%s6599_s26 + $0x98] sm:$0xff]  }
 0x15a   : > { %5722 = vmatmul.mubr.msk.bf16.gmra.mrb[12].mxu1 %vm1973_vm12, %v1876_v30  ;;  %v1230_v27 = vpack.c.bf16 %v1165_v17, %v1164_v16  ;;  %v1102_v19 = vsel %vm782_vm13, %v7072_v54, 0.0  ;;  %v1103_v24 = vsel %vm783_vm14, %v7072_v54, 0.0  ;;  %vm780_vm15 = vcmp.lt.s32.totalorder %v6669_v4, %v7061_v35 }
 0x15b   : > { %v1637_v55 = vpop.permute.xlu1 %1636  ;;  %1670 = vrot.lane.b32.xlu0 %v1195_v44, %s6379_s10  ;;  %v1639_v56 = vpop.permute.xlu0 %1638  ;;  %vm781_vm0 = vcmp.lt.s32.totalorder %v6671_v3, %v7061_v35  ;;  %v1100_v8 = vsel %vm780_vm15, %v7072_v54, 0.0  ;;  %vm786_vm1 = vcmp.lt.s32.totalorder %v6580_v26, %v6636_v52  ;;  %vm787_vm3 = vcmp.lt.s32.totalorder %v6583_v28, %v6636_v52  ;;  %v5914_v3 = vld [vmem:[%s6599_s26 + $0x70] sm:$0xff]   ;;  %v5915_v35 = vld [vmem:[%s6599_s26 + $0x78] sm:$0xff]  }
 0x15c   : > { %v1777_v57 = vsel %vm9388_vm11, %v5906_v31, %v1637_v55  ;;  %1668 = vrot.lane.b32.xlu1 %v1194_v49, %s6379_s10  ;;  %v1780_v58 = vsel %vm9388_vm11, %v5907_v41, %v1639_v56  ;;  %v1101_v31 = vsel %vm781_vm0, %v7072_v54, 0.0  ;;  %vm785_vm4 = vcmp.lt.s32.totalorder %v6577_v25, %v6636_v52  ;;  %v5916_v55 = vld [vmem:[%s6599_s26 + $0x180] sm:$0xff]   ;;  %v5917_v56 = vld [vmem:[%s6599_s26 + $0x188] sm:$0xff]  }
 0x15d   : > { %5657 = vmatprep.mubr.msk.bf16.mxu0 %vm1973_vm12, %v1777_v57  ;;  %v1199_v28 = vpack.c.bf16 %v1103_v24, %v1102_v19  ;;  %v1198_v54 = vpack.c.bf16 %v1101_v31, %v1100_v8  ;;  %v1106_v44 = vsel %vm786_vm1, %v6673_v6, 0.0  ;;  %v1107_v25 = vsel %vm787_vm3, %v6673_v6, 0.0  ;;  %v5926_v19 = vld [vmem:[%s6599_s26 + $0xa0] sm:$0xff]   ;;  %v5927_v24 = vld [vmem:[%s6599_s26 + $0xa8] sm:$0xff]  }
 0x15e   : > { %5658 = vmatmul.mubr.msk.bf16.gmra.mrb[20].mxu0 %vm1973_vm12, %v1780_v58  ;;  %v1104_v48 = vsel %vm7236_vm5, %v6673_v6, 0.0  ;;  %v1105_v49 = vsel %vm785_vm4, %v6673_v6, 0.0  ;;  %vm790_vm2 = vcmp.lt.s32.totalorder %v6591_v33, %v6636_v52  ;;  %vm791_vm6 = vcmp.lt.s32.totalorder %v6593_v34, %v6636_v52 }
 0x15f   : > { %v1705_v40 = vpop.permute.xlu1 %1704  ;;  %1738 = vrot.lane.b32.xlu0 %v1229_v60, %s6379_s10  ;;  %v1707_v42 = vpop.permute.xlu0 %1706  ;;  %vm788_vm7 = vcmp.lt.s32.totalorder %v6585_v29, %v6636_v52  ;;  %vm789_vm8 = vcmp.lt.s32.totalorder %v6589_v32, %v6636_v52  ;;  %v1201_v33 = vpack.c.bf16 %v1107_v25, %v1106_v44  ;;  %v1200_v34 = vpack.c.bf16 %v1105_v49, %v1104_v48  ;;  %v5931_v44 = vld [vmem:[%s6599_s26 + $0xb8] sm:$0xff]   ;;  %v5932_v49 = vld [vmem:[%s6599_s26 + $0x1c0] sm:$0xff]  }
 0x160   : > { %v1879_v10 = vsel %vm9388_vm11, %v5908_v59, %v1705_v40  ;;  %1736 = vrot.lane.b32.xlu1 %v1228_v61, %s6379_s10  ;;  %v1882_v38 = vsel %vm9388_vm11, %v5909_v45, %v1707_v42  ;;  %v1110_v57 = vsel %vm790_vm2, %v6673_v6, 0.0  ;;  %v1111_v58 = vsel %vm791_vm6, %v6673_v6, 0.0  ;;  %v5918_v61 = vld [vmem:[%s6599_s26 + $0x80] sm:$0xff]  }
 0x161   : > { %5725 = vmatprep.mubr.msk.bf16.mxu1 %vm1973_vm12, %v1879_v10  ;;  %v1108_v29 = vsel %vm788_vm7, %v6673_v6, 0.0  ;;  %v1109_v45 = vsel %vm789_vm8, %v6673_v6, 0.0  ;;  %v1203_v0 = vpack.c.bf16 %v1111_v58, %v1110_v57  ;;  %v5920_v10 = vld [vmem:[%s6599_s26 + $0x190] sm:$0xff]   ;;  %v5934_v57 = vld [vmem:[%s6599_s26 + $0xc0] sm:$0xff]   ;;  %vm6381_vm9 = vmmov 0  }
 0x162   : > { %5726 = vmatmul.mubr.msk.bf16.gmra.mrb[16].mxu1 %vm1973_vm12, %v1882_v38  ;;  %v1202_v40 = vpack.c.bf16 %v1109_v45, %v1108_v29  ;;  %v5921_v38 = vld [vmem:[%s6599_s26 + $0x198] sm:$0xff]   ;;  %vm2662_vm10 = vcmask 261120   ;;  %vm3614_vm13 = vcmask 195712   ;;  %vm3621_vm14 = vcmask 261312  }
 0x163   : > { %v1641_v18 = vpop.permute.xlu1 %1640  ;;  %1674 = vrot.lane.b32.xlu0 %v1197_v14, %s6379_s10  ;;  %v1643_v20 = vpop.permute.xlu0 %1642  ;;  %v5937_v29 = vld [vmem:[%s6599_s26 + $0x1d8] sm:$0xff]   ;;  %vm3628_vm15 = vcmask 326912   ;;  %vm3635_vm0 = vcmask 392512   ;;  %vm3642_vm1 = vcmask 458112   ;;  %vm3649_vm3 = vcmask 523712  }
 0x164   : > { %v1783_v46 = vsel %vm9388_vm11, %v5910_v39, %v1641_v18  ;;  %1672 = vrot.lane.b32.xlu1 %v1196_v37, %s6379_s10  ;;  %v1786_v21 = vsel %vm9388_vm11, %v5911_v11, %v1643_v20  ;;  %v5922_v37 = vld [vmem:[%s6599_s26 + $0x90] sm:$0xff]   ;;  %vm3656_vm4 = vcmask 589312   ;;  %vm3663_vm5 = vcmask 654912  }
 0x165   : > { %5661 = vmatprep.mubr.msk.bf16.mxu0 %vm1973_vm12, %v1783_v46  ;;  %v5924_v46 = vld [vmem:[%s6599_s26 + $0x1a0] sm:$0xff]   ;;  %vm3670_vm2 = vcmask 720512   ;;  %vm3677_vm6 = vcmask 786112   ;;  %vm3684_vm7 = vcmask 851712   ;;  %vm3691_vm8 = vcmask 917312  }
 0x166   : > { %5662 = vmatmul.mubr.msk.bf16.gmra.mrb[24].mxu0 %vm1973_vm12, %v1786_v21  ;;  %v5925_v21 = vld [vmem:[%s6599_s26 + $0x1a8] sm:$0xff]  }
 0x167   : > { %v1709_v30 = vpop.permute.xlu1 %1708  ;;  %1742 = vrot.lane.b32.xlu0 %v1231_v1, %s6379_s10  ;;  %v1711_v7 = vpop.permute.xlu0 %1710 }
 0x168   : > { %v1885_v41 = vsel %vm9388_vm11, %v5912_v22, %v1709_v30  ;;  %1740 = vrot.lane.b32.xlu1 %v1230_v27, %s6379_s10  ;;  %v1888_v4 = vsel %vm9388_vm11, %v5913_v23, %v1711_v7 }
 0x169   : > { %5729 = vmatprep.mubr.msk.bf16.mxu1 %vm1973_vm12, %v1885_v41  ;;  %v5928_v41 = vld [vmem:[%s6599_s26 + $0x1b0] sm:$0xff]  }
 0x16a   : > { %5730 = vmatmul.mubr.msk.bf16.gmra.mrb[20].mxu1 %vm1973_vm12, %v1888_v4  ;;  %v5929_v4 = vld [vmem:[%s6599_s26 + $0x1b8] sm:$0xff]  }
 0x16b   : > { %v1645_v47 = vpop.permute.xlu1 %1644  ;;  %1678 = vrot.lane.b32.xlu0 %v1199_v28, %s6379_s10  ;;  %v1647_v12 = vpop.permute.xlu0 %1646 }
 0x16c   : > { %v1789_v50 = vsel %vm9388_vm11, %v5914_v3, %v1645_v47  ;;  %1676 = vrot.lane.b32.xlu1 %v1198_v54, %s6379_s10  ;;  %v1792_v51 = vsel %vm9388_vm11, %v5915_v35, %v1647_v12  ;;  %v5930_v54 = vld [vmem:[%s6599_s26 + $0xb0] sm:$0xff]  }
 0x16d   : > { %5665 = vmatprep.mubr.msk.bf16.mxu0 %vm1973_vm12, %v1789_v50  ;;  %v5933_v50 = vld [vmem:[%s6599_s26 + $0x1c8] sm:$0xff]  }
 0x16e   : > { %5666 = vmatmul.mubr.msk.bf16.gmra.mrb[28].mxu0 %vm1973_vm12, %v1792_v51 }
 0x16f   : > { %v1713_v59 = vpop.permute.xlu1 %1712  ;;  %1682 = vrot.lane.b32.xlu0 %v1201_v33, %s6379_s10  ;;  %v1715_v60 = vpop.permute.xlu0 %1714 }
 0x170   : > { %v1891_v32 = vsel %vm9388_vm11, %v5916_v55, %v1713_v59  ;;  %1680 = vrot.lane.b32.xlu1 %v1200_v34, %s6379_s10  ;;  %v1894_v52 = vsel %vm9388_vm11, %v5917_v56, %v1715_v60  ;;  %v5935_v34 = vld [vmem:[%s6599_s26 + $0xc8] sm:$0xff]  }
 0x171   : > { %5733 = vmatprep.mubr.msk.bf16.mxu1 %vm1973_vm12, %v1891_v32  ;;  %v5936_v32 = vld [vmem:[%s6599_s26 + $0x1d0] sm:$0xff]  }
 0x172   : > { %5734 = vmatmul.mubr.msk.bf16.gmra.mrb[24].mxu1 %vm1973_vm12, %v1894_v52 }
 0x173   : > { %v1649_v42 = vpop.permute.xlu1 %1648  ;;  %1686 = vrot.lane.b32.xlu0 %v1203_v0, %s6379_s10  ;;  %v1651_v6 = vpop.permute.xlu0 %1650  ;;  %v5939_v0 = vld [vmem:[%s6599_s26 + $0xd8] sm:$0xff]  }
 0x174   : > { %v1795_v53 = vsel %vm9388_vm11, %v5918_v61, %v1649_v42  ;;  %1684 = vrot.lane.b32.xlu1 %v1202_v40, %s6379_s10  ;;  %v1798_v2 = vsel %vm9388_vm11, %v5919_v63, %v1651_v6  ;;  %v5938_v42 = vld [vmem:[%s6599_s26 + $0xd0] sm:$0xff]   ;;  %s6383_s10 = smov [#allocation4]  }
 0x175   : > { %5669 = vmatprep.mubr.msk.bf16.mxu0 %vm1973_vm12, %v1795_v53  ;;  %s6284_s12 = sshll.u32 %s6383_s10, 4  ;;  %s6285_s12 = int_to_ptr.vmem [resolvable:$false] %s6284_s12 }
 0x176   : > { %5670 = vmatmul.mubr.msk.bf16.gmra.mrb[32].mxu0 %vm1973_vm12, %v1798_v2 }
 0x177   : > { %v1717_v39 = vpop.permute.xlu1 %1716  ;;  %v1719_v11 = vpop.permute.xlu0 %1718 }
 0x178   : > { %v1897_v14 = vsel %vm9388_vm11, %v5920_v10, %v1717_v39  ;;  %v1900_v43 = vsel %vm9388_vm11, %v5921_v38, %v1719_v11  ;;  %v5941_v10 = vld [vmem:[%s6599_s26 + $0x1e8] sm:$0xff]   ;;  %v5940_v39 = vld [vmem:[%s6599_s26 + $0x1e0] sm:$0xff]  }
 0x179   : > { %5737 = vmatprep.mubr.msk.bf16.mxu1 %vm1973_vm12, %v1897_v14 }
 0x17a   : > { %5738 = vmatmul.mubr.msk.bf16.gmra.mrb[28].mxu1 %vm1973_vm12, %v1900_v43 }
 0x17b   : > { %v1653_v16 = vpop.permute.xlu1 %1652  ;;  %v1655_v17 = vpop.permute.xlu0 %1654 }
 0x17c   : > { %v1801_v18 = vsel %vm9388_vm11, %v5922_v37, %v1653_v16  ;;  %v1804_v20 = vsel %vm9388_vm11, %v5923_v15, %v1655_v17  ;;  %v5943_v37 = vld [vmem:[%s6599_s26 + $0xe8] sm:$0xff]   ;;  %v5942_v16 = vld [vmem:[%s6599_s26 + $0xe0] sm:$0xff]  }
 0x17d   : > { %5673 = vmatprep.mubr.msk.bf16.mxu0 %vm1973_vm12, %v1801_v18 }
 0x17e   : > { %5674 = vmatmul.mubr.msk.bf16.gmra.mrb[36].mxu0 %vm1973_vm12, %v1804_v20 }
 0x17f   : > { %v1721_v22 = vpop.permute.xlu1 %1720  ;;  %v1723_v23 = vpop.permute.xlu0 %1722 }
 0x180   : > { %v1903_v1 = vsel %vm9388_vm11, %v5924_v46, %v1721_v22  ;;  %v1906_v27 = vsel %vm9388_vm11, %v5925_v21, %v1723_v23  ;;  %v5945_v46 = vld [vmem:[%s6599_s26 + $0x1f8] sm:$0xff]   ;;  %v5944_v22 = vld [vmem:[%s6599_s26 + $0x1f0] sm:$0xff]  }
 0x181   : > { %5741 = vmatprep.mubr.msk.bf16.mxu1 %vm1973_vm12, %v1903_v1 }
 0x182   : > { %5742 = vmatmul.mubr.msk.bf16.gmra.mrb[32].mxu1 %vm1973_vm12, %v1906_v27 }
 0x183   : > { %v1657_v30 = vpop.permute.xlu1 %1656  ;;  %v1659_v7 = vpop.permute.xlu0 %1658 }
 0x184   : > { %v1807_v8 = vsel %vm9388_vm11, %v5926_v19, %v1657_v30  ;;  %v1810_v31 = vsel %vm9388_vm11, %v5927_v24, %v1659_v7  ;;  %v5947_v19 = vld [vmem:[%s6599_s26 + $0xf8] sm:$0xff]   ;;  %v5946_v30 = vld [vmem:[%s6599_s26 + $0xf0] sm:$0xff]  }
 0x185   : > { %5677 = vmatprep.mubr.msk.bf16.mxu0 %vm1973_vm12, %v1807_v8 }
 0x186   : > { %5678 = vmatmul.mubr.msk.bf16.gmra.mrb[40].mxu0 %vm1973_vm12, %v1810_v31 }
 0x187   : > { %v1725_v3 = vpop.permute.xlu1 %1724  ;;  %v1727_v35 = vpop.permute.xlu0 %1726 }
 0x188   : > { %v1909_v26 = vsel %vm9388_vm11, %v5928_v41, %v1725_v3  ;;  %v1912_v28 = vsel %vm9388_vm11, %v5929_v4, %v1727_v35  ;;  %v6382_v41 = vmov 0.0   ;;  %v5948_v3 = vld [vmem:[%s6599_s26 + $0x100] sm:$0xff]  }
 0x189   : > { %5745 = vmatprep.mubr.msk.bf16.mxu1 %vm1973_vm12, %v1909_v26  ;;  %v484_v26 = vld [vmem:[%s353_s13] sm:$0xff]  ;;  %s6286_s13 = scalar_lea.vmem %s6285_s12, 256 }
 0x18a   : > { %5746 = vmatmul.mubr.msk.bf16.gmra.mrb[36].mxu1 %vm1973_vm12, %v1912_v28 }
 0x18b   : > { %v1661_v25 = vpop.permute.xlu1 %1660  ;;  %v1663_v47 = vpop.permute.xlu0 %1662 }
 0x18c   : > { %v1813_v12 = vsel %vm9388_vm11, %v5930_v54, %v1661_v25  ;;  %v1816_v48 = vsel %vm9388_vm11, %v5931_v44, %v1663_v47  ;;  %v5949_v54 = vld [vmem:[%s6599_s26 + $0x108] sm:$0xff]   ;;  %v5950_v25 = vld [vmem:[%s6599_s26 + $0x110] sm:$0xff]  }
 0x18d   : > { %5681 = vmatprep.mubr.msk.bf16.mxu0 %vm1973_vm12, %v1813_v12 }
 0x18e   : > { %5682 = vmatmul.mubr.msk.bf16.gmra.mrb[44].mxu0 %vm1973_vm12, %v1816_v48 }
 0x18f   : > { %v1729_v51 = vpop.permute.xlu1 %1728  ;;  %v1731_v55 = vpop.permute.xlu0 %1730 }
 0x190   : > { %v1915_v56 = vsel %vm9388_vm11, %v5932_v49, %v1729_v51  ;;  %v1918_v33 = vsel %vm9388_vm11, %v5933_v50, %v1731_v55  ;;  %v5951_v49 = vld [vmem:[%s6599_s26 + $0x118] sm:$0xff]  }
 0x191   : > { %5749 = vmatprep.mubr.msk.bf16.mxu1 %vm1973_vm12, %v1915_v56 }
 0x192   : > { %5750 = vmatmul.mubr.msk.bf16.gmra.mrb[40].mxu1 %vm1973_vm12, %v1918_v33 }
 0x1c5   : > { %v1667_v58 = vpop.permute.xlu0 %1666 }
 0x1c6   : > { %v1665_v59 = vpop.permute.xlu1 %1664  ;;  %v1822_v60 = vsel %vm9388_vm11, %v5935_v34, %v1667_v58 }
 0x1c7   : > { %v1819_v45 = vsel %vm9388_vm11, %v5934_v57, %v1665_v59 }
 0x1c8   : > { %5685 = vmatprep.mubr.msk.bf16.mxu0 %vm1973_vm12, %v1819_v45 }
 0x1c9   : > { %5686 = vmatmul.mubr.msk.bf16.gmra.mrb[48].mxu0 %vm1973_vm12, %v1822_v60  ;;  %v1735_v52 = vpop.permute.xlu0 %1734 }
 0x1ca   : > { %v1733_v61 = vpop.permute.xlu1 %1732  ;;  %v1924_v63 = vsel %vm9388_vm11, %v5937_v29, %v1735_v52 }
 0x1cb   : > { %v1921_v40 = vsel %vm9388_vm11, %v5936_v32, %v1733_v61 }
 0x1cc   : > { %5753 = vmatprep.mubr.msk.bf16.mxu1 %vm1973_vm12, %v1921_v40 }
 0x1cd   : > { %5754 = vmatmul.mubr.msk.bf16.gmra.mrb[44].mxu1 %vm1973_vm12, %v1924_v63  ;;  %v1671_v6 = vpop.permute.xlu0 %1670 }
 0x1ce   : > { %v1669_v53 = vpop.permute.xlu1 %1668  ;;  %v1828_v2 = vsel %vm9388_vm11, %v5939_v0, %v1671_v6 }
 0x1cf   : > { %v1825_v38 = vsel %vm9388_vm11, %v5938_v42, %v1669_v53 }
 0x1d0   : > { %5689 = vmatprep.mubr.msk.bf16.mxu0 %vm1973_vm12, %v1825_v38 }
 0x1d1   : > { %5690 = vmatmul.mubr.msk.bf16.gmra.mrb[52].mxu0 %vm1973_vm12, %v1828_v2  ;;  %v1739_v11 = vpop.permute.xlu0 %1738 }
 0x1d2   : > { %v1737_v14 = vpop.permute.xlu1 %1736  ;;  %v1930_v43 = vsel %vm9388_vm11, %v5941_v10, %v1739_v11 }
 0x1d3   : > { %v1927_v15 = vsel %vm9388_vm11, %v5940_v39, %v1737_v14 }
 0x1d4   : > { %5757 = vmatprep.mubr.msk.bf16.mxu1 %vm1973_vm12, %v1927_v15 }
 0x1d5   : > { %5758 = vmatmul.mubr.msk.bf16.gmra.mrb[48].mxu1 %vm1973_vm12, %v1930_v43  ;;  %v1675_v17 = vpop.permute.xlu0 %1674 }
 0x1d6   : > { %v1673_v18 = vpop.permute.xlu1 %1672  ;;  %v1834_v20 = vsel %vm9388_vm11, %v5943_v37, %v1675_v17 }
 0x1d7   : > { %v1831_v21 = vsel %vm9388_vm11, %v5942_v16, %v1673_v18 }
 0x1d8   : > { %5693 = vmatprep.mubr.msk.bf16.mxu0 %vm1973_vm12, %v1831_v21 }
 0x1d9   : > { %5694 = vmatmul.mubr.msk.bf16.gmra.mrb[56].mxu0 %vm1973_vm12, %v1834_v20  ;;  %v1743_v23 = vpop.permute.xlu0 %1742 }
 0x1da   : > { %v1741_v1 = vpop.permute.xlu1 %1740  ;;  %v1936_v27 = vsel %vm9388_vm11, %v5945_v46, %v1743_v23 }
 0x1db   : > { %v1933_v24 = vsel %vm9388_vm11, %v5944_v22, %v1741_v1 }
 0x1dc   : > { %5761 = vmatprep.mubr.msk.bf16.mxu1 %vm1973_vm12, %v1933_v24 }
 0x1dd   : > { %5762 = vmatmul.mubr.msk.bf16.gmra.mrb[52].mxu1 %vm1973_vm12, %v1936_v27  ;;  %v1679_v7 = vpop.permute.xlu0 %1678 }
 0x1de   : > { %v1677_v8 = vpop.permute.xlu1 %1676  ;;  %v1840_v31 = vsel %vm9388_vm11, %v5947_v19, %v1679_v7  ;;  %5773 = vmatprep.mubr.msk.f32.mxu1 %vm6381_vm9, %v6382_v41 }
 0x1df   : > { %v1837_v4 = vsel %vm9388_vm11, %v5946_v30, %v1677_v8 }
 0x1e0   : > { %5697 = vmatprep.mubr.msk.bf16.mxu0 %vm1973_vm12, %v1837_v4 }
 0x1e1   : > { %5698 = vmatmul.mubr.msk.bf16.gmra.mrb[60].mxu0 %vm1973_vm12, %v1840_v31  ;;  %v1683_v44 = vpop.permute.xlu0 %1682 }
 0x1e2   : > { %v1681_v35 = vpop.permute.xlu1 %1680  ;;  %v1846_v12 = vsel %vm9388_vm11, %v5949_v54, %v1683_v44 }
 0x1e3   : > { %v1843_v28 = vsel %vm9388_vm11, %v5948_v3, %v1681_v35 }
 0x1e4   : > { %5701 = vmatprep.mubr.msk.bf16.mxu0 %vm1973_vm12, %v1843_v28 }
 0x1e5   : > { %5774 = vmatmul.mubr.msk.f32.vlgmr.msra.gmra.mrb[56].mxu1 %vm2662_vm10, %v484_v26  ;;  %v1687_v50 = vpop.permute.xlu0 %1686  ;;  %vm3705_vm10 = vcmask 1048512  }
 0x1e6   : > { %v1685_v47 = vpop.permute.xlu1 %1684  ;;  %5792 = vmatprep.mubr.msk.f32.mxu1 %vm6381_vm9, %v6382_v41  ;;  %v1852_v51 = vsel %vm9388_vm11, %v5951_v49, %v1687_v50  ;;  %vm3698_vm9 = vcmask 982912  }
 0x1e7   : > { %v1849_v48 = vsel %vm9388_vm11, %v5950_v25, %v1685_v47  ;;  %vm9389_vm11 = vcmask 1041409  }
 0x1e9   : > { %5702 = vmatmul.mubr.msk.bf16.gmra.mrb[64].mxu0 %vm1973_vm12, %v1846_v12 }
 0x1ea   : > { %5705 = vmatprep.mubr.msk.bf16.mxu0 %vm1973_vm12, %v1849_v48 }
 0x1f1   : > { %5706 = vmatmul.mubr.msk.bf16.gmra.mrb[68].mxu0 %vm1973_vm12, %v1852_v51  ;;  %vm3607_vm12 = vcmask 130112  }
 0x1fc   : > { %v7385_v55 = vpop.f32.mrb[0].mxu0 }
 0x1fd   : > { %v7387_v56 = vpop.f32.mrb[1].mxu0 }
 0x1fe   : > { %v7389_v33 = vpop.f32.mrb[2].mxu0 }
 0x1ff   : > { %v7391_v34 = vpop.f32.mrb[3].mxu0 }
 0x204   : > { %v7393_v57 = vpop.f32.mrb[4].mxu0 }
 0x205   : > { %v7395_v58 = vpop.f32.mrb[5].mxu0 }
 0x206   : > { %v7397_v59 = vpop.f32.mrb[6].mxu0 }
 0x207   : > { %v7399_v60 = vpop.f32.mrb[7].mxu0 }
 0x208   : > { %v7401_v29 = vpop.f32.mrb[0].mxu1 }
 0x209   : > { %9406 = vst [vmem:[#allocation11_spill] sm:$0xff] %v7401_v29  ;;  %v7403_v45 = vpop.f32.mrb[1].mxu1 }
 0x20a   : > { %9407 = vst [vmem:[#allocation12_spill] sm:$0xff] %v7403_v45  ;;  %v7405_v32 = vpop.f32.mrb[2].mxu1 }
 0x20b   : > { %9408 = vst [vmem:[#allocation13_spill] sm:$0xff] %v7405_v32  ;;  %v7407_v52 = vpop.f32.mrb[3].mxu1 }
 0x20c   : > { %9409 = vst [vmem:[#allocation14_spill] sm:$0xff] %v7407_v52  ;;  %v7409_v61 = vpop.f32.mrb[8].mxu0 }
 0x20d   : > { %v7411_v63 = vpop.f32.mrb[9].mxu0 }
 0x20e   : > { %v7413_v0 = vpop.f32.mrb[10].mxu0 }
 0x20f   : > { %v7415_v40 = vpop.f32.mrb[11].mxu0 }
 0x210   : > { %v7417_v42 = vpop.f32.mrb[4].mxu1 }
 0x211   : > { %v7419_v6 = vpop.f32.mrb[5].mxu1 }
 0x212   : > { %9410 = vst [vmem:[#allocation15_spill] sm:$0xff] %v7419_v6  ;;  %v7421_v53 = vpop.f32.mrb[6].mxu1 }
 0x213   : > { %9411 = vst [vmem:[#allocation16_spill] sm:$0xff] %v7421_v53  ;;  %v7423_v2 = vpop.f32.mrb[7].mxu1 }
 0x214   : > { %9412 = vst [vmem:[#allocation17_spill] sm:$0xff] %v7423_v2  ;;  %v7425_v10 = vpop.f32.mrb[12].mxu0 }
 0x215   : > { %v7427_v38 = vpop.f32.mrb[13].mxu0 }
 0x216   : > { %v7429_v39 = vpop.f32.mrb[14].mxu0 }
 0x217   : > { %v7431_v11 = vpop.f32.mrb[15].mxu0 }
 0x224   : > { %v7433_v14 = vpop.f32.mrb[8].mxu1 }
 0x225   : > { %9413 = vst [vmem:[#allocation18_spill] sm:$0xff] %v7433_v14  ;;  %v7435_v43 = vpop.f32.mrb[9].mxu1 }
 0x226   : > { %9414 = vst [vmem:[#allocation19_spill] sm:$0xff] %v7435_v43  ;;  %v7437_v37 = vpop.f32.mrb[10].mxu1 }
 0x227   : > { %9415 = vst [vmem:[#allocation20_spill] sm:$0xff] %v7437_v37  ;;  %v7439_v15 = vpop.f32.mrb[11].mxu1 }
 0x228   : > { %9416 = vst [vmem:[#allocation21_spill] sm:$0xff] %v7439_v15 }
 0x229   : > { %v7441_v16 = vpop.f32.mrb[16].mxu0 }
 0x22a   : > { %v7443_v17 = vpop.f32.mrb[17].mxu0 }
 0x22b   : > { %v7445_v18 = vpop.f32.mrb[18].mxu0 }
 0x22c   : > { %v7447_v20 = vpop.f32.mrb[19].mxu0 }
 0x22d   : > { %v7449_v46 = vpop.f32.mrb[12].mxu1 }
 0x22e   : > { %9417 = vst [vmem:[#allocation22_spill] sm:$0xff] %v7449_v46  ;;  %v7451_v21 = vpop.f32.mrb[13].mxu1 }
 0x22f   : > { %9418 = vst [vmem:[#allocation23_spill] sm:$0xff] %v7451_v21  ;;  %v7453_v22 = vpop.f32.mrb[14].mxu1 }
 0x230   : > { %9419 = vst [vmem:[#allocation24_spill] sm:$0xff] %v7453_v22  ;;  %v7455_v23 = vpop.f32.mrb[15].mxu1 }
 0x231   : > { %9420 = vst [vmem:[#allocation25_spill] sm:$0xff] %v7455_v23  ;;  %v7457_v1 = vpop.f32.mrb[20].mxu0 }
 0x232   : > { %v7459_v27 = vpop.f32.mrb[21].mxu0 }
 0x233   : > { %v7461_v19 = vpop.f32.mrb[22].mxu0 }
 0x234   : > { %v7463_v24 = vpop.f32.mrb[23].mxu0 }
 0x235   : > { %v7465_v30 = vpop.f32.mrb[16].mxu1 }
 0x236   : > { %9421 = vst [vmem:[#allocation26_spill] sm:$0xff] %v7465_v30  ;;  %v7467_v7 = vpop.f32.mrb[17].mxu1 }
 0x237   : > { %9422 = vst [vmem:[#allocation27_spill] sm:$0xff] %v7467_v7  ;;  %v7469_v8 = vpop.f32.mrb[18].mxu1 }
 0x238   : > { %9423 = vst [vmem:[#allocation28_spill] sm:$0xff] %v7469_v8  ;;  %v7471_v31 = vpop.f32.mrb[19].mxu1 }
 0x239   : > { %9424 = vst [vmem:[#allocation29_spill] sm:$0xff] %v7471_v31  ;;  %v7473_v41 = vpop.f32.mrb[24].mxu0 }
 0x23a   : > { %v7475_v4 = vpop.f32.mrb[25].mxu0 }
 0x23b   : > { %v7477_v3 = vpop.f32.mrb[26].mxu0 }
 0x23c   : > { %v7479_v35 = vpop.f32.mrb[27].mxu0 }
 0x23d   : > { %v7481_v26 = vpop.f32.mrb[20].mxu1 }
 0x23e   : > { %9425 = vst [vmem:[#allocation30_spill] sm:$0xff] %v7481_v26  ;;  %v7483_v28 = vpop.f32.mrb[21].mxu1 }
 0x23f   : > { %9426 = vst [vmem:[#allocation31_spill] sm:$0xff] %v7483_v28  ;;  %v7485_v54 = vpop.f32.mrb[22].mxu1 }
 0x240   : > { %9427 = vst [vmem:[#allocation32_spill] sm:$0xff] %v7485_v54  ;;  %v7487_v44 = vpop.f32.mrb[23].mxu1 }
 0x241   : > { %9428 = vst [vmem:[#allocation33_spill] sm:$0xff] %v7487_v44  ;;  %v7489_v25 = vpop.f32.mrb[28].mxu0 }
 0x242   : > { %v7491_v47 = vpop.f32.mrb[29].mxu0 }
 0x243   : > { %v7493_v12 = vpop.f32.mrb[30].mxu0 }
 0x244   : > { %v7495_v48 = vpop.f32.mrb[31].mxu0 }
 0x245   : > { %v7497_v49 = vpop.f32.mrb[24].mxu1 }
 0x246   : > { %9429 = vst [vmem:[#allocation34_spill] sm:$0xff] %v7497_v49  ;;  %v7499_v50 = vpop.f32.mrb[25].mxu1 }
 0x247   : > { %9430 = vst [vmem:[#allocation35_spill] sm:$0xff] %v7499_v50  ;;  %v7501_v51 = vpop.f32.mrb[26].mxu1 }
 0x248   : > { %9431 = vst [vmem:[#allocation36_spill] sm:$0xff] %v7501_v51  ;;  %v7503_v36 = vpop.f32.mrb[27].mxu1 }
 0x249   : > { %9432 = vst [vmem:[#allocation37_spill] sm:$0xff] %v7503_v36  ;;  %v7505_v62 = vpop.f32.mrb[32].mxu0 }
 0x24a   : > { %v7507_v54 = vpop.f32.mrb[33].mxu0 }
 0x24b   : > { %v7509_v26 = vpop.f32.mrb[34].mxu0 }
 0x24c   : > { %v7511_v44 = vpop.f32.mrb[35].mxu0 }
 0x24d   : > { %v7513_v28 = vpop.f32.mrb[28].mxu1 }
 0x24e   : > { %9433 = vst [vmem:[#allocation38_spill] sm:$0xff] %v7513_v28  ;;  %v7515_v8 = vpop.f32.mrb[29].mxu1 }
 0x24f   : > { %9434 = vst [vmem:[#allocation39_spill] sm:$0xff] %v7515_v8  ;;  %v7517_v30 = vpop.f32.mrb[30].mxu1 }
 0x250   : > { %9435 = vst [vmem:[#allocation40_spill] sm:$0xff] %v7517_v30  ;;  %v7519_v37 = vpop.f32.mrb[31].mxu1 }
 0x251   : > { %9436 = vst [vmem:[#allocation41_spill] sm:$0xff] %v7519_v37  ;;  %v7521_v31 = vpop.f32.mrb[36].mxu0 }
 0x252   : > { %v7523_v51 = vpop.f32.mrb[37].mxu0 }
 0x253   : > { %v7525_v36 = vpop.f32.mrb[38].mxu0 }
 0x254   : > { %v7527_v7 = vpop.f32.mrb[39].mxu0 }
 0x255   : > { %v7529_v14 = vpop.f32.mrb[32].mxu1 }
 0x256   : > { %9437 = vst [vmem:[#allocation42_spill] sm:$0xff] %v7529_v14  ;;  %v7531_v22 = vpop.f32.mrb[33].mxu1 }
 0x257   : > { %9438 = vst [vmem:[#allocation43_spill] sm:$0xff] %v7531_v22  ;;  %v7533_v15 = vpop.f32.mrb[34].mxu1 }
 0x258   : > { %9439 = vst [vmem:[#allocation44_spill] sm:$0xff] %v7533_v15  ;;  %v7535_v28 = vpop.f32.mrb[35].mxu1 }
 0x259   : > { %9440 = vst [vmem:[#allocation45_spill] sm:$0xff] %v7535_v28  ;;  %v7537_v8 = vpop.f32.mrb[40].mxu0 }
 0x25a   : > { %9441 = vst [vmem:[#allocation46_spill] sm:$0xff] %v7537_v8  ;;  %v7539_v30 = vpop.f32.mrb[41].mxu0 }
 0x25b   : > { %v7541_v37 = vpop.f32.mrb[42].mxu0 }
 0x25c   : > { %9442 = vst [vmem:[#allocation47_spill] sm:$0xff] %v7541_v37  ;;  %v7543_v46 = vpop.f32.mrb[43].mxu0 }
 0x25d   : > { %9443 = vst [vmem:[#allocation48_spill] sm:$0xff] %v7543_v46  ;;  %v7545_v2 = vpop.f32.mrb[36].mxu1 }
 0x25e   : > { %9444 = vst [vmem:[#allocation49_spill] sm:$0xff] %v7545_v2  ;;  %v7547_v23 = vpop.f32.mrb[37].mxu1 }
 0x25f   : > { %9445 = vst [vmem:[#allocation50_spill] sm:$0xff] %v7547_v23  ;;  %v7549_v6 = vpop.f32.mrb[38].mxu1 }
 0x260   : > { %9446 = vst [vmem:[#allocation51_spill] sm:$0xff] %v7549_v6  ;;  %v7551_v14 = vpop.f32.mrb[39].mxu1 }
 0x261   : > { %9447 = vst [vmem:[#allocation52_spill] sm:$0xff] %v7551_v14  ;;  %v7553_v22 = vpop.f32.mrb[44].mxu0 }
 0x262   : > { %9448 = vst [vmem:[#allocation53_spill] sm:$0xff] %v7553_v22  ;;  %v7555_v15 = vpop.f32.mrb[45].mxu0 }
 0x263   : > { %9449 = vst [vmem:[#allocation54_spill] sm:$0xff] %v7555_v15  ;;  %v7557_v28 = vpop.f32.mrb[46].mxu0 }
 0x264   : > { %9450 = vst [vmem:[#allocation55_spill] sm:$0xff] %v7557_v28  ;;  %v7559_v21 = vpop.f32.mrb[47].mxu0 }
 0x265   : > { %9451 = vst [vmem:[#allocation56_spill] sm:$0xff] %v7559_v21  ;;  %v7561_v32 = vpop.f32.mrb[40].mxu1 }
 0x266   : > { %9452 = vst [vmem:[#allocation57_spill] sm:$0xff] %v7561_v32  ;;  %v7563_v49 = vpop.f32.mrb[41].mxu1 }
 0x267   : > { %9453 = vst [vmem:[#allocation58_spill] sm:$0xff] %v7563_v49  ;;  %v7565_v29 = vpop.f32.mrb[42].mxu1 }
 0x268   : > { %9454 = vst [vmem:[#allocation59_spill] sm:$0xff] %v7565_v29  ;;  %v7567_v2 = vpop.f32.mrb[43].mxu1 }
 0x269   : > { %9455 = vst [vmem:[#allocation60_spill] sm:$0xff] %v7567_v2 }
 0x29c   : > { %v7569_v23 = vpop.f32.mrb[48].mxu0 }
 0x29d   : > { %9456 = vst [vmem:[#allocation61_spill] sm:$0xff] %v7569_v23  ;;  %v7571_v6 = vpop.f32.mrb[49].mxu0 }
 0x29e   : > { %9457 = vst [vmem:[#allocation62_spill] sm:$0xff] %v7571_v6  ;;  %v7573_v14 = vpop.f32.mrb[50].mxu0 }
 0x29f   : > { %9458 = vst [vmem:[#allocation63_spill] sm:$0xff] %v7573_v14  ;;  %v7575_v22 = vpop.f32.mrb[51].mxu0 }
 0x2a0   : > { %9459 = vst [vmem:[#allocation64_spill] sm:$0xff] %v7575_v22  ;;  %v7577_v50 = vpop.f32.mrb[44].mxu1 }
 0x2a1   : > { %9460 = vst [vmem:[#allocation65_spill] sm:$0xff] %v7577_v50  ;;  %v7579_v28 = vpop.f32.mrb[45].mxu1 }
 0x2a2   : > { %9461 = vst [vmem:[#allocation66_spill] sm:$0xff] %v7579_v28  ;;  %v7581_v21 = vpop.f32.mrb[46].mxu1 }
 0x2a3   : > { %9462 = vst [vmem:[#allocation67_spill] sm:$0xff] %v7581_v21  ;;  %v7583_v32 = vpop.f32.mrb[47].mxu1 }
 0x2a4   : > { %9463 = vst [vmem:[#allocation68_spill] sm:$0xff] %v7583_v32  ;;  %v7585_v49 = vpop.f32.mrb[52].mxu0 }
 0x2a5   : > { %9464 = vst [vmem:[#allocation69_spill] sm:$0xff] %v7585_v49  ;;  %v7587_v29 = vpop.f32.mrb[53].mxu0 }
 0x2a6   : > { %9465 = vst [vmem:[#allocation70_spill] sm:$0xff] %v7587_v29  ;;  %v7589_v2 = vpop.f32.mrb[54].mxu0 }
 0x2a7   : > { %9466 = vst [vmem:[#allocation71_spill] sm:$0xff] %v7589_v2  ;;  %v7591_v15 = vpop.f32.mrb[55].mxu0 }
 0x2a8   : > { %9467 = vst [vmem:[#allocation72_spill] sm:$0xff] %v7591_v15  ;;  %v7593_v6 = vpop.f32.mrb[48].mxu1 }
 0x2a9   : > { %9468 = vst [vmem:[#allocation73_spill] sm:$0xff] %v7593_v6  ;;  %v7595_v43 = vpop.f32.mrb[49].mxu1  ;;  %v485_v6 = vld [vmem:[%s9375_s6] sm:$0x7] }
 0x2aa   : > { %9469 = vst [vmem:[#allocation74_spill] sm:$0xff] %v7595_v43  ;;  %v7597_v52 = vpop.f32.mrb[50].mxu1 }
 0x2ab   : > { %9470 = vst [vmem:[#allocation75_spill] sm:$0xff] %v7597_v52  ;;  %v7599_v50 = vpop.f32.mrb[51].mxu1 }
 0x2ac   : > { %9471 = vst [vmem:[#allocation76_spill] sm:$0xff] %v7599_v50  ;;  %v7601_v28 = vpop.f32.mrb[56].mxu0 }
 0x2ad   : > { %9472 = vst [vmem:[#allocation77_spill] sm:$0xff] %v7601_v28  ;;  %v7603_v21 = vpop.f32.mrb[57].mxu0 }
 0x2ae   : > { %9473 = vst [vmem:[#allocation78_spill] sm:$0xff] %v7603_v21  ;;  %v7605_v32 = vpop.f32.mrb[58].mxu0 }
 0x2af   : > { %9474 = vst [vmem:[#allocation79_spill] sm:$0xff] %v7605_v32  ;;  %v7607_v49 = vpop.f32.mrb[59].mxu0  ;;  %v2661_v32 = vrot.slane %v485_v6, %v6499_v13 }
 0x2b0   : > { %9475 = vst [vmem:[#allocation80_spill] sm:$0xff] %v7607_v49  ;;  %v7609_v29 = vpop.f32.mrb[52].mxu1 }
 0x2b1   : > { %9476 = vst [vmem:[#allocation81_spill] sm:$0xff] %v7609_v29  ;;  %v7611_v2 = vpop.f32.mrb[53].mxu1 }
 0x2b2   : > { %9477 = vst [vmem:[#allocation82_spill] sm:$0xff] %v7611_v2  ;;  %v7613_v15 = vpop.f32.mrb[54].mxu1 }
 0x2b3   : > { %9478 = vst [vmem:[#allocation83_spill] sm:$0xff] %v7613_v15  ;;  %v7618_v52 = vpop.f32.mrb[55].mxu1 }
 0x2b4   : > { %9479 = vst [vmem:[#allocation84_spill] sm:$0xff] %v7618_v52  ;;  %v7620_v50 = vpop.f32.mrb[60].mxu0 }
 0x2b5   : > { %9480 = vst [vmem:[#allocation85_spill] sm:$0xff] %v7620_v50  ;;  %v7622_v43 = vpop.f32.mrb[61].mxu0 }
 0x2b6   : > { %9481 = vst [vmem:[#allocation86_spill] sm:$0xff] %v7622_v43  ;;  %v7625_v28 = vpop.f32.mrb[62].mxu0 }
 0x2b7   : > { %9482 = vst [vmem:[#allocation87_spill] sm:$0xff] %v7625_v28  ;;  %v7627_v49 = vpop.f32.mrb[63].mxu0 }
 0x2b8   : > { %9483 = vst [vmem:[#allocation88_spill] sm:$0xff] %v7627_v49  ;;  %v2732_v29 = vpop.f32.mrb[56].mxu1 }
 0x2b9   : > { %v2733_v2 = vadd.f32 %v2732_v29, %v2661_v32  ;;  %v5775_v21 = vpop.f32.mrb[57].mxu1 }
 0x2bb   : > { %v2737_v15 = vcombine.high %v2733_v2, %v2733_v2  ;;  %v2744_v14 = vrot.slane %v2733_v2, %v6495_v9 }
 0x2bc   : > { %v5703_v37 = vpop.f32.mrb[64].mxu0 }
 0x2bd   : > { %v2751_v23 = vrot.slane %v2737_v15, %v6495_v9  ;;  %v2752_v52 = vcombine.high %v2744_v14, %v2744_v14  ;;  %v2760_v50 = vrot.slane %v2744_v14, %v6495_v9  ;;  %v2399_v45 = vpop.f32.mrb[65].mxu0  ;;  %v7644_v14 = vsub.s32 1, %v6491_v5 }
 0x2be   : > { %v5704_v43 = vpop.f32.mrb[66].mxu0 }
 0x2bf   : > { %v7633_v22 = vrot.slane %v2751_v23, %v6495_v9  ;;  %v2402_v28 = vpop.f32.mrb[67].mxu0  ;;  %v2789_v49 = vrot.slane %v2760_v50, %v6499_v13  ;;  %v2774_v29 = vrot.slane %v2752_v52, %v6495_v9  ;;  %v2782_v32 = vcombine.high %v2760_v50, %v2760_v50  ;;  %9484 = vst [vmem:[#allocation89_spill] sm:$0xff] %v7644_v14 }
 0x2c1   : > { %v7639_v2 = vrot.slane %v7633_v22, %v6499_v13  ;;  %v2826_v15 = vadd.f32 %v2789_v49, %v7387_v56  ;;  %v2827_v21 = vadd.f32 %v2789_v49, %v7391_v34  ;;  %v2793_v56 = vrot.slane %v2774_v29, %v6499_v13 }
 0x2c3   : > { %v7647_v8 = vadd.f32 %v5703_v37, %v7639_v2  ;;  %v7650_v46 = vadd.f32 %v7639_v2, %v2399_v45  ;;  %v7653_v52 = vadd.f32 %v5704_v43, %v7639_v2  ;;  %v7656_v50 = vadd.f32 %v7639_v2, %v2402_v28 }
 0x2c4   : > { %v5707_v53 = vpop.f32.mrb[68].mxu0  ;;  %5954 = vtanh.f32 %v2826_v15  ;;  %v2828_v37 = vadd.f32 %v7385_v55, %v2789_v49  ;;  %v2830_v28 = vadd.f32 %v2789_v49, %v7395_v58  ;;  %v2831_v15 = vadd.f32 %v2789_v49, %v7399_v60 }
 0x2c5   : > { %9485 = vst [vmem:[#allocation90_spill] sm:$0xff] %v7647_v8  ;;  %9486 = vst [vmem:[#allocation91_spill] sm:$0xff] %v7650_v46  ;;  %v7660_v34 = vadd.f32 %v5707_v53, %v7639_v2  ;;  %v2415_v5 = vpop.f32.mrb[69].mxu0  ;;  %v7664_v8 = vrot.slane %v2782_v32, %v6499_v13  ;;  %v7676_v55 = vadd.f32 %v7393_v57, %v2789_v49  ;;  %5956 = vtanh.f32 %v2827_v21 }
 0x2c6   : > { %9487 = vst [vmem:[#allocation92_spill] sm:$0xff] %v7653_v52  ;;  %9488 = vst [vmem:[#allocation93_spill] sm:$0xff] %v7656_v50  ;;  %v7667_v45 = vadd.f32 %v7639_v2, %v2415_v5  ;;  %v5708_v43 = vpop.f32.mrb[70].mxu0  ;;  %v2829_v50 = vadd.f32 %v7389_v33, %v2789_v49  ;;  %v2753_v52 = vcombine.high %v2751_v23, %v2751_v23  ;;  %5958 = vtanh.f32 %v2828_v37  ;;  %v9494_v37 = vld [vmem:[#allocation48_spill] sm:$0xff] }
 0x2c7   : > { %9489 = vst [vmem:[#allocation94_spill] sm:$0xff] %v7660_v34  ;;  %v7672_v46 = vadd.f32 %v5708_v43, %v7639_v2  ;;  %v2418_v53 = vpop.f32.mrb[71].mxu0  ;;  %v2834_v5 = vadd.f32 %v2789_v49, %v7411_v63  ;;  %v2784_v58 = vcombine.high %v2774_v29, %v2774_v29  ;;  %v7686_v33 = vadd.f32 %v2789_v49, %v7415_v40 }
 0x2c8   : > { %9490 = vst [vmem:[#allocation95_spill] sm:$0xff] %v7667_v45  ;;  %v7679_v32 = vadd.f32 %v7639_v2, %v2418_v53  ;;  %v7683_v45 = vadd.f32 %v7397_v59, %v2789_v49  ;;  %v7689_v23 = vadd.f32 %v7409_v61, %v2789_v49  ;;  %v7692_v60 = vadd.f32 %v2793_v56, %v7443_v17  ;;  %v9498_v53 = vld [vmem:[#allocation61_spill] sm:$0xff] }
 0x2c9   : > { %9491 = vst [vmem:[#allocation96_spill] sm:$0xff] %v7672_v46  ;;  %v7695_v57 = vrot.slane %v485_v6, %v7644_v14  ;;  %v7698_v43 = vadd.f32 %v7413_v0, %v2789_v49  ;;  %v7702_v59 = vadd.f32 %v7664_v8, %v7507_v54  ;;  %v7705_v63 = vadd.f32 %v2789_v49, %v7427_v38 }
 0x2ca   : > { %9492 = vst [vmem:[#allocation97_spill] sm:$0xff] %v7679_v32  ;;  %v7708_v40 = vrot.slane %v2753_v52, %v6495_v9  ;;  %v7712_v61 = vadd.f32 %v7505_v62, %v7664_v8  ;;  %v7715_v6 = vadd.f32 %v2789_v49, %v7431_v11  ;;  %v7718_v0 = vadd.f32 %v2793_v56, %v7459_v27 }
 0x2cb   : > { %v2783_v17 = vcombine.high %v7633_v22, %v7633_v22  ;;  %v7723_v54 = vadd.f32 %v7425_v10, %v2789_v49  ;;  %v7726_v38 = vadd.f32 %v2793_v56, %v7463_v24  ;;  %v7729_v9 = vadd.f32 %v7429_v39, %v2789_v49 }
 0x2cc   : > { %v7732_v62 = vrot.slane %v2784_v58, %v6499_v13  ;;  %v7736_v11 = vadd.f32 %v7664_v8, %v7527_v7  ;;  %v7739_v27 = vadd.f32 %v2793_v56, %v7447_v20  ;;  %v7743_v10 = vadd.f32 %v7521_v31, %v7664_v8  ;;  %v9499_v58 = vld [vmem:[#allocation47_spill] sm:$0xff] }
 0x2cd   : > { %v7746_v22 = vadd.f32 %v7441_v16, %v2793_v56  ;;  %v7749_v39 = vadd.f32 %v2793_v56, %v7475_v4  ;;  %v7753_v24 = vadd.f32 %v7664_v8, %v7511_v44  ;;  %v7756_v20 = vadd.f32 %v2793_v56, %v7479_v35 }
 0x2ce   : > { %v5955_v7 = vpop.eup %5954  ;;  %v7759_v49 = vadd.f32 %v7445_v18, %v2793_v56  ;;  %v7762_v31 = vadd.f32 %v7473_v41, %v2793_v56  ;;  %5960 = vtanh.f32 %v2830_v28  ;;  %v7767_v4 = vadd.f32 %v7509_v26, %v7664_v8  ;;  %v9496_v28 = vld [vmem:[#allocation64_spill] sm:$0xff] }
 0x2cf   : > { %v3086_v16 = vmul.f32 %v5955_v7, %v7695_v57  ;;  %v7770_v44 = vadd.f32 %v7477_v3, %v2793_v56  ;;  %v7774_v35 = vrot.slane %v7708_v40, %v6499_v13  ;;  %v7778_v18 = vadd.f32 %v7664_v8, %v7523_v51  ;;  %v9500_v7 = vld [vmem:[#allocation63_spill] sm:$0xff] }
 0x2d0   : > { %v7781_v41 = vadd.f32 %v2793_v56, %v7491_v47  ;;  %v7784_v29 = vadd.f32 %v7457_v1, %v2793_v56  ;;  %5962 = vtanh.f32 %v2831_v15  ;;  %v7787_v26 = vadd.f32 %v2793_v56, %v7495_v48 }
 0x2d1   : > { %3214 = vadd.xlane.f32.xlu1 %v3086_v16  ;;  %v7790_v3 = vadd.f32 %v7461_v19, %v2793_v56  ;;  %v7793_v21 = vadd.f32 %v7489_v25, %v2793_v56  ;;  %v7796_v51 = vrot.slane %v2783_v17, %v6499_v13  ;;  %v7800_v47 = vadd.f32 %v7525_v36, %v7664_v8  ;;  %v9493_v25 = vld [vmem:[#allocation16_spill] sm:$0xff] }
 0x2d2   : > { %v7803_v1 = vadd.f32 %v7493_v12, %v2793_v56  ;;  %v7807_v48 = vadd.f32 %v7417_v42, %v7639_v2  ;;  %5964 = vtanh.f32 %v2829_v50  ;;  %v7811_v19 = vadd.f32 %v7664_v8, %v7539_v30  ;;  %v9495_v12 = vld [vmem:[#allocation46_spill] sm:$0xff]  ;;  %v9497_v50 = vld [vmem:[#allocation12_spill] sm:$0xff] }
 0x2d3   : > { %v7815_v52 = vadd.f32 %v9493_v25, %v7639_v2  ;;  %v7819_v36 = vadd.f32 %v7664_v8, %v9494_v37  ;;  %v7823_v56 = vadd.f32 %v9495_v12, %v7664_v8  ;;  %v7827_v42 = vadd.f32 %v7732_v62, %v9496_v28  ;;  %v9501_v25 = vld [vmem:[#allocation14_spill] sm:$0xff]  ;;  %v9502_v12 = vld [vmem:[#allocation19_spill] sm:$0xff] }
 0x2d4   : > { %v7831_v30 = vadd.f32 %v7639_v2, %v9497_v50  ;;  %5966 = vtanh.f32 %v2834_v5  ;;  %v7835_v15 = vadd.f32 %v9498_v53, %v7732_v62  ;;  %v7839_v17 = vadd.f32 %v9499_v58, %v7664_v8  ;;  %v9504_v5 = vld [vmem:[#allocation54_spill] sm:$0xff]  ;;  %v5957_v53 = vpop.eup %5956  ;;  %v9506_v58 = vld [vmem:[#allocation35_spill] sm:$0xff] }
 0x2d5   : > { %v7843_v16 = vadd.f32 %v9500_v7, %v7732_v62  ;;  %v7847_v37 = vadd.f32 %v7639_v2, %v9501_v25  ;;  %v7851_v28 = vadd.f32 %v7774_v35, %v9502_v12  ;;  %v7855_v50 = vadd.f32 %v7664_v8, %v9504_v5  ;;  %v9507_v7 = vld [vmem:[#allocation11_spill] sm:$0xff]  ;;  %v9509_v25 = vld [vmem:[#allocation34_spill] sm:$0xff]  ;;  %v5959_v12 = vpop.eup %5958  ;;  %v9511_v5 = vld [vmem:[#allocation56_spill] sm:$0xff] }
 0x2d6   : > { %5968 = vtanh.f32 %v7676_v55  ;;  %v7860_v14 = vadd.f32 %v7796_v51, %v9506_v58  ;;  %v7864_v32 = vadd.f32 %v9507_v7, %v7639_v2  ;;  %v7868_v46 = vadd.f32 %v9509_v25, %v7796_v51  ;;  %v9513_v55 = vld [vmem:[#allocation69_spill] sm:$0xff]  ;;  %v9517_v25 = vld [vmem:[#allocation23_spill] sm:$0xff] }
 0x2d7   : > { %9503 = vst [vmem:[#allocation16_spill] sm:$0xff] %v7851_v28  ;;  %9505 = vst [vmem:[#allocation48_spill] sm:$0xff] %v7855_v50  ;;  %v3087_v34 = vmul.f32 %v5957_v53, %v7695_v57  ;;  %v7873_v50 = vadd.f32 %v7664_v8, %v9511_v5  ;;  %v7877_v28 = vadd.f32 %v9513_v55, %v7732_v62  ;;  %5970 = vtanh.f32 %v7686_v33  ;;  %v9515_v7 = vld [vmem:[#allocation13_spill] sm:$0xff]  ;;  %v9520_v55 = vld [vmem:[#allocation71_spill] sm:$0xff] }
 0x2d8   : > { %9508 = vst [vmem:[#allocation46_spill] sm:$0xff] %v7864_v32  ;;  %9510 = vst [vmem:[#allocation64_spill] sm:$0xff] %v7868_v46  ;;  %v5961_v58 = vpop.eup %5960  ;;  %v7882_v32 = vadd.f32 %v9515_v7, %v7639_v2  ;;  %v7886_v46 = vadd.f32 %v7774_v35, %v9517_v25  ;;  %v9518_v5 = vld [vmem:[#allocation53_spill] sm:$0xff]  ;;  %5972 = vtanh.f32 %v7683_v45  ;;  %v9522_v7 = vld [vmem:[#allocation15_spill] sm:$0xff] }
 0x2d9   : > { %9512 = vst [vmem:[#allocation12_spill] sm:$0xff] %v7873_v50  ;;  %9514 = vst [vmem:[#allocation61_spill] sm:$0xff] %v7877_v28  ;;  %3216 = vadd.xlane.f32.xlu0 %v3087_v34  ;;  %v3090_v53 = vmul.f32 %v5961_v58, %v7695_v57  ;;  %v7891_v50 = vadd.f32 %v9518_v5, %v7664_v8  ;;  %v7895_v28 = vadd.f32 %v9520_v55, %v7732_v62  ;;  %v9524_v25 = vld [vmem:[#allocation25_spill] sm:$0xff]  ;;  %v9526_v5 = vld [vmem:[#allocation55_spill] sm:$0xff] }
 0x2da   : > { %9516 = vst [vmem:[#allocation47_spill] sm:$0xff] %v7882_v32  ;;  %v5963_v33 = vpop.eup %5962  ;;  %v7900_v32 = vadd.f32 %v7639_v2, %v9522_v7  ;;  %v7904_v34 = vadd.f32 %v7774_v35, %v9524_v25  ;;  %v3088_v58 = vmul.f32 %v5959_v12, %v7695_v57  ;;  %v9527_v55 = vld [vmem:[#allocation78_spill] sm:$0xff]  ;;  %5974 = vtanh.f32 %v7689_v23  ;;  %v9528_v7 = vld [vmem:[#allocation17_spill] sm:$0xff] }
 0x2db   : > { %9519 = vst [vmem:[#allocation63_spill] sm:$0xff] %v7891_v50  ;;  %9521 = vst [vmem:[#allocation14_spill] sm:$0xff] %v7895_v28  ;;  %3222 = vadd.xlane.f32.xlu1 %v3090_v53  ;;  %v7909_v50 = vadd.f32 %v9526_v5, %v7664_v8  ;;  %v7913_v28 = vadd.f32 %v7732_v62, %v9527_v55  ;;  %v9529_v25 = vld [vmem:[#allocation22_spill] sm:$0xff]  ;;  %v3091_v12 = vmul.f32 %v5963_v33, %v7695_v57  ;;  %v9532_v5 = vld [vmem:[#allocation80_spill] sm:$0xff] }
 0x2dc   : > { %9523 = vst [vmem:[#allocation19_spill] sm:$0xff] %v7900_v32  ;;  %9525 = vst [vmem:[#allocation54_spill] sm:$0xff] %v7904_v34  ;;  %v5965_v45 = vpop.eup %5964  ;;  %v7918_v32 = vadd.f32 %v7639_v2, %v9528_v7  ;;  %v7922_v34 = vadd.f32 %v9529_v25, %v7774_v35  ;;  %v9530_v8 = vld [vmem:[#allocation62_spill] sm:$0xff]  ;;  %v7931_v55 = vadd.f32 %v7732_v62, %v9532_v5  ;;  %5976 = vtanh.f32 %v7692_v60  ;;  %v9534_v2 = vld [vmem:[#allocation21_spill] sm:$0xff] }
 0x2dd   : > { %3218 = vadd.xlane.f32.xlu0 %v3088_v58  ;;  %v7927_v53 = vadd.f32 %v7732_v62, %v9530_v8  ;;  %v7936_v7 = vadd.f32 %v7774_v35, %v9534_v2  ;;  %v9536_v25 = vld [vmem:[#allocation24_spill] sm:$0xff]  ;;  %v3089_v33 = vmul.f32 %v5965_v45, %v7695_v57  ;;  %v9538_v8 = vld [vmem:[#allocation70_spill] sm:$0xff]  ;;  %v9539_v5 = vld [vmem:[#allocation77_spill] sm:$0xff]  ;;  %5978 = vtanh.f32 %v7698_v43 }
 0x2de   : > { %9533 = vst [vmem:[#allocation11_spill] sm:$0xff] %v7931_v55  ;;  %v5967_v23 = vpop.eup %5966  ;;  %v7940_v58 = vadd.f32 %v9536_v25, %v7774_v35  ;;  %v7949_v55 = vadd.f32 %v9539_v5, %v7732_v62  ;;  %v9541_v2 = vld [vmem:[#allocation18_spill] sm:$0xff]  ;;  %v9543_v25 = vld [vmem:[#allocation27_spill] sm:$0xff]  ;;  %5980 = vtanh.f32 %v7702_v59 }
 0x2df   : > { %9531 = vst [vmem:[#allocation35_spill] sm:$0xff] %v7927_v53  ;;  %9535 = vst [vmem:[#allocation34_spill] sm:$0xff] %v7936_v7  ;;  %3224 = vadd.xlane.f32.xlu1 %v3091_v12  ;;  %v7945_v53 = vadd.f32 %v7732_v62, %v9538_v8  ;;  %v7954_v7 = vadd.f32 %v9541_v2, %v7774_v35  ;;  %v3094_v45 = vmul.f32 %v5967_v23, %v7695_v57  ;;  %v9544_v12 = vld [vmem:[#allocation37_spill] sm:$0xff]  ;;  %v9546_v5 = vld [vmem:[#allocation79_spill] sm:$0xff] }
 0x2e0   : > { %9537 = vst [vmem:[#allocation56_spill] sm:$0xff] %v7940_v58  ;;  %9540 = vst [vmem:[#allocation69_spill] sm:$0xff] %v7949_v55  ;;  %v5969_v60 = vpop.eup %5968  ;;  %v7958_v58 = vadd.f32 %v7774_v35, %v9543_v25  ;;  %v7963_v8 = vadd.f32 %v7796_v51, %v9544_v12  ;;  %v7967_v55 = vadd.f32 %v9546_v5, %v7732_v62  ;;  %v9548_v2 = vld [vmem:[#allocation72_spill] sm:$0xff]  ;;  %v9550_v25 = vld [vmem:[#allocation29_spill] sm:$0xff]  ;;  %5982 = vtanh.f32 %v7705_v63 }
 0x2e1   : > { %9542 = vst [vmem:[#allocation13_spill] sm:$0xff] %v7954_v7  ;;  %3220 = vadd.xlane.f32.xlu0 %v3089_v33  ;;  %v5971_v43 = vpop.eup %5970  ;;  %v7972_v7 = vadd.f32 %v7732_v62, %v9548_v2  ;;  %v7976_v33 = vadd.f32 %v7774_v35, %v9550_v25  ;;  %v3092_v23 = vmul.f32 %v5969_v60, %v7695_v57  ;;  %v9552_v12 = vld [vmem:[#allocation20_spill] sm:$0xff]  ;;  %v9553_v5 = vld [vmem:[#allocation86_spill] sm:$0xff]  ;;  %5984 = vtanh.f32 %v7712_v61 }
 0x2e2   : > { %9545 = vst [vmem:[#allocation23_spill] sm:$0xff] %v7963_v8  ;;  %9547 = vst [vmem:[#allocation53_spill] sm:$0xff] %v7967_v55  ;;  %v7981_v8 = vadd.f32 %v9552_v12, %v7774_v35  ;;  %v7985_v55 = vadd.f32 %v7732_v62, %v9553_v5  ;;  %v5973_v59 = vpop.eup %5972  ;;  %v9555_v2 = vld [vmem:[#allocation36_spill] sm:$0xff]  ;;  %v9557_v25 = vld [vmem:[#allocation26_spill] sm:$0xff]  ;;  %v3095_v60 = vmul.f32 %v5971_v43, %v7695_v57  ;;  %5986 = vtanh.f32 %v7715_v6 }
 0x2e3   : > { %9549 = vst [vmem:[#allocation71_spill] sm:$0xff] %v7972_v7  ;;  %9551 = vst [vmem:[#allocation15_spill] sm:$0xff] %v7976_v33  ;;  %3230 = vadd.xlane.f32.xlu1 %v3094_v45  ;;  %v7990_v7 = vadd.f32 %v9555_v2, %v7796_v51  ;;  %v7994_v33 = vadd.f32 %v9557_v25, %v7774_v35  ;;  %v9558_v12 = vld [vmem:[#allocation39_spill] sm:$0xff]  ;;  %v3093_v63 = vmul.f32 %v5973_v59, %v7695_v57  ;;  %v9562_v61 = vld [vmem:[#allocation28_spill] sm:$0xff] }
 0x2e4   : > { %9554 = vst [vmem:[#allocation25_spill] sm:$0xff] %v7985_v55  ;;  %v5975_v45 = vpop.eup %5974  ;;  %v8000_v5 = vadd.f32 %v7796_v51, %v9558_v12  ;;  %v9559_v55 = vld [vmem:[#allocation88_spill] sm:$0xff]  ;;  %v8014_v25 = vadd.f32 %v9562_v61, %v7774_v35  ;;  %5988 = vtanh.f32 %v7718_v0  ;;  %v9566_v6 = vld [vmem:[#allocation85_spill] sm:$0xff]  ;;  %v9569_v0 = vld [vmem:[#allocation31_spill] sm:$0xff] }
 0x2e5   : > { %9556 = vst [vmem:[#allocation55_spill] sm:$0xff] %v7990_v7  ;;  %3226 = vadd.xlane.f32.xlu0 %v3092_v23  ;;  %v8005_v2 = vadd.f32 %v7732_v62, %v9559_v55  ;;  %v9561_v23 = vld [vmem:[#allocation41_spill] sm:$0xff]  ;;  %v3096_v12 = vmul.f32 %v5975_v45, %v7695_v57  ;;  %v9564_v55 = vld [vmem:[#allocation38_spill] sm:$0xff]  ;;  %v9567_v61 = vld [vmem:[#allocation40_spill] sm:$0xff]  ;;  %v2785_v45 = vcombine.high %v7708_v40, %v7708_v40  ;;  %5990 = vtanh.f32 %v7723_v54 }
 0x2e6   : > { %v5977_v7 = vpop.eup %5976  ;;  %v8010_v43 = vadd.f32 %v7796_v51, %v9561_v23  ;;  %9563 = vst [vmem:[#allocation17_spill] sm:$0xff] %v8014_v25  ;;  %v8029_v25 = vadd.f32 %v9567_v61, %v7796_v51  ;;  %5992 = vtanh.f32 %v7726_v38  ;;  %v9571_v61 = vld [vmem:[#allocation50_spill] sm:$0xff] }
 0x2e7   : > { %3232 = vadd.xlane.f32.xlu1 %v3095_v60  ;;  %9560 = vst [vmem:[#allocation78_spill] sm:$0xff] %v8005_v2  ;;  %v5979_v59 = vpop.eup %5978  ;;  %v8020_v60 = vadd.f32 %v9564_v55, %v7796_v51  ;;  %v8024_v2 = vadd.f32 %v9566_v6, %v7732_v62  ;;  %v3102_v23 = vmul.f32 %v5977_v7, %v7695_v57  ;;  %5994 = vtanh.f32 %v7729_v9 }
 0x2e8   : > { %9568 = vst [vmem:[#allocation62_spill] sm:$0xff] %v8029_v25  ;;  %v8036_v55 = vadd.f32 %v7774_v35, %v9569_v0  ;;  %v3097_v7 = vmul.f32 %v5979_v59, %v7695_v57  ;;  %v8046_v25 = vadd.f32 %v7796_v51, %v9571_v61  ;;  %v8050_v0 = vrot.slane %v2785_v45, %v6499_v13  ;;  %v9574_v59 = vld [vmem:[#allocation52_spill] sm:$0xff] }
 0x2e9   : > { %3228 = vadd.xlane.f32.xlu0 %v3093_v63  ;;  %9565 = vst [vmem:[#allocation22_spill] sm:$0xff] %v8020_v60  ;;  %v5981_v63 = vpop.eup %5980  ;;  %v9570_v60 = vld [vmem:[#allocation43_spill] sm:$0xff]  ;;  %v8059_v38 = vadd.f32 %v7796_v51, %v9574_v59  ;;  %5996 = vtanh.f32 %v7736_v11  ;;  %v9577_v11 = vld [vmem:[#allocation44_spill] sm:$0xff] }
 0x2ea   : > { %v8040_v6 = vadd.f32 %v7796_v51, %v9570_v60  ;;  %9572 = vst [vmem:[#allocation80_spill] sm:$0xff] %v8046_v25  ;;  %v3118_v40 = vmul.f32 %v5981_v63, %v7695_v57  ;;  %v9573_v60 = vld [vmem:[#allocation45_spill] sm:$0xff]  ;;  %5998 = vtanh.f32 %v7739_v27 }
 0x2eb   : > { %3234 = vadd.xlane.f32.xlu1 %v3096_v12  ;;  %v5983_v12 = vpop.eup %5982  ;;  %6000 = vtanh.f32 %v7743_v10  ;;  %v9578_v27 = vld [vmem:[#allocation57_spill] sm:$0xff] }
 0x2ec   : > { %v5985_v54 = vpop.eup %5984  ;;  %v3098_v61 = vmul.f32 %v5983_v12, %v7695_v57  ;;  %6002 = vtanh.f32 %v7746_v22  ;;  %v9580_v22 = vld [vmem:[#allocation59_spill] sm:$0xff] }
 0x2ed   : > { %3246 = vadd.xlane.f32.xlu0 %v3102_v23  ;;  %v8055_v23 = vadd.f32 %v7796_v51, %v9573_v60  ;;  %v5987_v25 = vpop.eup %5986  ;;  %v3120_v9 = vmul.f32 %v5985_v54, %v7695_v57  ;;  %v9576_v60 = vld [vmem:[#allocation60_spill] sm:$0xff]  ;;  %6004 = vtanh.f32 %v7749_v39 }
 0x2ee   : > { %v5989_v45 = vpop.eup %5988  ;;  %v8071_v59 = vadd.f32 %v8050_v0, %v9576_v60  ;;  %v3099_v12 = vmul.f32 %v5987_v25, %v7695_v57  ;;  %v8083_v60 = vadd.f32 %v9578_v27, %v8050_v0  ;;  %6006 = vtanh.f32 %v7753_v24 }
 0x2ef   : > { %3236 = vadd.xlane.f32.xlu1 %v3097_v7  ;;  %v9575_v7 = vld [vmem:[#allocation42_spill] sm:$0xff]  ;;  %v8095_v27 = vadd.f32 %v9580_v22, %v8050_v0  ;;  %6008 = vtanh.f32 %v7756_v20  ;;  %v9585_v22 = vld [vmem:[#allocation68_spill] sm:$0xff] }
 0x2f0   : > { %v8064_v63 = vadd.f32 %v9575_v7, %v7796_v51  ;;  %v3106_v7 = vmul.f32 %v5989_v45, %v7695_v57  ;;  %6010 = vtanh.f32 %v7759_v49  ;;  %v8115_v20 = vadd.f32 %v8050_v0, %v9585_v22  ;;  %v9591_v22 = vld [vmem:[#allocation74_spill] sm:$0xff] }
 0x2f1   : > { %3278 = vadd.xlane.f32.xlu0 %v3118_v40  ;;  %v5991_v40 = vpop.eup %5990  ;;  %6012 = vtanh.f32 %v7762_v31  ;;  %v8135_v31 = vadd.f32 %v8050_v0, %v9591_v22 }
 0x2f2   : > { %v5993_v54 = vpop.eup %5992  ;;  %v3100_v25 = vmul.f32 %v5991_v40, %v7695_v57  ;;  %6014 = vtanh.f32 %v7767_v4 }
 0x2f3   : > { %3238 = vadd.xlane.f32.xlu1 %v3098_v61  ;;  %v8078_v61 = vadd.f32 %v9577_v11, %v7796_v51  ;;  %v3107_v45 = vmul.f32 %v5993_v54, %v7695_v57  ;;  %v9582_v54 = vld [vmem:[#allocation66_spill] sm:$0xff]  ;;  %6016 = vtanh.f32 %v7770_v44 }
 0x2f4   : > { %v8106_v24 = vadd.f32 %v8050_v0, %v9582_v54  ;;  %6018 = vtanh.f32 %v7778_v18 }
 0x2f5   : > { %3282 = vadd.xlane.f32.xlu0 %v3120_v9  ;;  %v9579_v9 = vld [vmem:[#allocation87_spill] sm:$0xff]  ;;  %6020 = vtanh.f32 %v7781_v41 }
 0x2f6   : > { %v8088_v10 = vadd.f32 %v9579_v9, %v7732_v62  ;;  %v9581_v62 = vld [vmem:[#allocation33_spill] sm:$0xff]  ;;  %6022 = vtanh.f32 %v7784_v29 }
 0x2f7   : > { %3240 = vadd.xlane.f32.xlu1 %v3099_v12  ;;  %v5995_v12 = vpop.eup %5994  ;;  %v8101_v9 = vadd.f32 %v7774_v35, %v9581_v62  ;;  %6024 = vtanh.f32 %v7787_v26 }
 0x2f8   : > { %v5997_v11 = vpop.eup %5996  ;;  %v3101_v40 = vmul.f32 %v5995_v12, %v7695_v57  ;;  %6026 = vtanh.f32 %v7790_v3 }
 0x2f9   : > { %3254 = vadd.xlane.f32.xlu0 %v3106_v7  ;;  %v5999_v7 = vpop.eup %5998  ;;  %v3123_v39 = vmul.f32 %v5997_v11, %v7695_v57  ;;  %v9586_v11 = vld [vmem:[#allocation65_spill] sm:$0xff]  ;;  %6028 = vtanh.f32 %v7793_v21 }
 0x2fa   : > { %v8121_v54 = vadd.f32 %v9586_v11, %v8050_v0  ;;  %6030 = vtanh.f32 %v7800_v47 }
 0x2fb   : > { %3242 = vadd.xlane.f32.xlu1 %v3100_v25  ;;  %v6001_v25 = vpop.eup %6000  ;;  %6032 = vtanh.f32 %v7803_v1 }
 0x2fc   : > { %v6003_v62 = vpop.eup %6002  ;;  %v3124_v49 = vmul.f32 %v6001_v25, %v7695_v57  ;;  %v9592_v25 = vld [vmem:[#allocation75_spill] sm:$0xff]  ;;  %6034 = vtanh.f32 %v7811_v19 }
 0x2fd   : > { %3256 = vadd.xlane.f32.xlu0 %v3107_v45  ;;  %v9583_v45 = vld [vmem:[#allocation30_spill] sm:$0xff] }
 0x2fe   : > { %v8111_v12 = vadd.f32 %v9583_v45, %v7774_v35  ;;  %v9587_v45 = vld [vmem:[#allocation67_spill] sm:$0xff] }
 0x2ff   : > { %3244 = vadd.xlane.f32.xlu1 %v3101_v40  ;;  %v3103_v40 = vmul.f32 %v5999_v7, %v7695_v57  ;;  %v8126_v13 = vadd.f32 %v9587_v45, %v8050_v0  ;;  %v8141_v45 = vadd.f32 %v9592_v25, %v8050_v0 }
 0x300   : > { %9584 = vst [vmem:[#allocation21_spill] sm:$0xff] %v8111_v12  ;;  %v6005_v12 = vpop.eup %6004  ;;  %6036 = vtanh.f32 %v7807_v48 }
 0x301   : > { %3288 = vadd.xlane.f32.xlu0 %v3123_v39  ;;  %9588 = vst [vmem:[#allocation24_spill] sm:$0xff] %v8126_v13  ;;  %v9589_v39 = vld [vmem:[#allocation58_spill] sm:$0xff]  ;;  %v6007_v11 = vpop.eup %6006  ;;  %v9593_v13 = vld [vmem:[#allocation76_spill] sm:$0xff]  ;;  %6038 = vtanh.f32 %v7819_v36 }
 0x302   : > { %v8131_v7 = vadd.f32 %v8050_v0, %v9589_v39  ;;  %v8145_v4 = vadd.f32 %v8050_v0, %v9593_v13  ;;  %v3110_v39 = vmul.f32 %v6005_v12, %v7695_v57  ;;  %v3119_v44 = vmul.f32 %v6007_v11, %v7695_v57  ;;  %v9596_v11 = vld [vmem:[#allocation32_spill] sm:$0xff] }
 0x303   : > { %3248 = vadd.xlane.f32.xlu1 %v3103_v40  ;;  %v3104_v40 = vmul.f32 %v6003_v62, %v7695_v57 }
 0x304   : > { %9590 = vst [vmem:[#allocation70_spill] sm:$0xff] %v8131_v7  ;;  %v6009_v7 = vpop.eup %6008  ;;  %6040 = vtanh.f32 %v7815_v52 }
 0x305   : > { %3290 = vadd.xlane.f32.xlu0 %v3124_v49  ;;  %v9594_v49 = vld [vmem:[#allocation73_spill] sm:$0xff]  ;;  %v6011_v22 = vpop.eup %6010  ;;  %v3111_v13 = vmul.f32 %v6009_v7, %v7695_v57  ;;  %6042 = vtanh.f32 %v7823_v56 }
 0x306   : > { %v8151_v62 = vadd.f32 %v9594_v49, %v8050_v0  ;;  %v6013_v25 = vpop.eup %6012  ;;  %v3105_v12 = vmul.f32 %v6011_v22, %v7695_v57  ;;  %v8165_v49 = vadd.f32 %v9596_v11, %v7774_v35  ;;  %v9597_v7 = vld [vmem:[#allocation49_spill] sm:$0xff]  ;;  %v9598_v22 = vld [vmem:[#allocation84_spill] sm:$0xff]  ;;  %v9602_v11 = vld [vmem:[#allocation83_spill] sm:$0xff]  ;;  %6044 = vtanh.f32 %v7827_v42 }
 0x307   : > { %3250 = vadd.xlane.f32.xlu1 %v3104_v40  ;;  %v6015_v18 = vpop.eup %6014  ;;  %v9595_v40 = vld [vmem:[#allocation82_spill] sm:$0xff]  ;;  %v3112_v41 = vmul.f32 %v6013_v25, %v7695_v57  ;;  %v8170_v29 = vadd.f32 %v9597_v7, %v7796_v51  ;;  %v8175_v26 = vadd.f32 %v8050_v0, %v9598_v22  ;;  %v9601_v25 = vld [vmem:[#allocation81_spill] sm:$0xff]  ;;  %v8188_v7 = vadd.f32 %v9602_v11, %v8050_v0 }
 0x308   : > { %v3121_v35 = vmul.f32 %v6015_v18, %v7695_v57  ;;  %6046 = vtanh.f32 %v7831_v30 }
 0x309   : > { %3262 = vadd.xlane.f32.xlu0 %v3110_v39  ;;  %v8161_v39 = vadd.f32 %v8050_v0, %v9595_v40  ;;  %9599 = vst [vmem:[#allocation77_spill] sm:$0xff] %v8175_v26 }
 0x30b   : > { %3280 = vadd.xlane.f32.xlu1 %v3119_v44  ;;  %v6017_v44 = vpop.eup %6016  ;;  %6048 = vtanh.f32 %v7835_v15 }
 0x30c   : > { %v6019_v3 = vpop.eup %6018  ;;  %v3113_v22 = vmul.f32 %v6017_v44, %v7695_v57  ;;  %6050 = vtanh.f32 %v7839_v17 }
 0x30d   : > { %3264 = vadd.xlane.f32.xlu0 %v3111_v13  ;;  %v9600_v13 = vld [vmem:[#allocation51_spill] sm:$0xff]  ;;  %v6021_v26 = vpop.eup %6020  ;;  %6052 = vtanh.f32 %v7843_v16 }
 0x30e   : > { %v8179_v40 = vadd.f32 %v9600_v13, %v7796_v51  ;;  %v3122_v51 = vmul.f32 %v6019_v3, %v7695_v57  ;;  %v6023_v18 = vpop.eup %6022  ;;  %6054 = vtanh.f32 %v7847_v37 }
 0x30f   : > { %3252 = vadd.xlane.f32.xlu1 %v3105_v12  ;;  %v8184_v12 = vadd.f32 %v9601_v25, %v8050_v0  ;;  %v6025_v0 = vpop.eup %6024  ;;  %v3108_v21 = vmul.f32 %v6023_v18, %v7695_v57 }
 0x310   : > { %v6027_v13 = vpop.eup %6026  ;;  %v3115_v47 = vmul.f32 %v6025_v0, %v7695_v57  ;;  %v9603_v0 = vld [vmem:[#allocation16_spill] sm:$0xff] }
 0x311   : > { %3266 = vadd.xlane.f32.xlu0 %v3112_v41  ;;  %v3114_v41 = vmul.f32 %v6021_v26, %v7695_v57  ;;  %v6029_v44 = vpop.eup %6028  ;;  %v3109_v1 = vmul.f32 %v6027_v13, %v7695_v57  ;;  %6056 = vtanh.f32 %v9603_v0  ;;  %v9604_v13 = vld [vmem:[#allocation48_spill] sm:$0xff] }
 0x312   : > { %v3116_v19 = vmul.f32 %v6029_v44, %v7695_v57  ;;  %6058 = vtanh.f32 %v9604_v13 }
 0x313   : > { %3284 = vadd.xlane.f32.xlu1 %v3121_v35  ;;  %v6031_v35 = vpop.eup %6030  ;;  %6060 = vtanh.f32 %v7860_v14 }
 0x314   : > { %v6033_v26 = vpop.eup %6032  ;;  %v3125_v48 = vmul.f32 %v6031_v35, %v7695_v57 }
 0x315   : > { %3268 = vadd.xlane.f32.xlu0 %v3113_v22  ;;  %v6035_v25 = vpop.eup %6034  ;;  %v3117_v36 = vmul.f32 %v6033_v26, %v7695_v57  ;;  %v9606_v26 = vld [vmem:[#allocation64_spill] sm:$0xff] }
 0x316   : > { %v6037_v11 = vpop.eup %6036  ;;  %v3126_v52 = vmul.f32 %v6035_v25, %v7695_v57 }
 0x317   : > { %3286 = vadd.xlane.f32.xlu1 %v3122_v51  ;;  %v6039_v3 = vpop.eup %6038  ;;  %v3164_v56 = vmul.f32 %v6037_v11, %v7695_v57 }
 0x318   : > { %v6041_v22 = vpop.eup %6040  ;;  %v3127_v42 = vmul.f32 %v6039_v3, %v7695_v57 }
 0x319   : > { %3270 = vadd.xlane.f32.xlu0 %v3114_v41  ;;  %v6043_v51 = vpop.eup %6042  ;;  %v3165_v30 = vmul.f32 %v6041_v22, %v7695_v57  ;;  %v9609_v22 = vld [vmem:[#allocation47_spill] sm:$0xff] }
 0x31a   : > { %v6045_v18 = vpop.eup %6044  ;;  %v3128_v15 = vmul.f32 %v6043_v51, %v7695_v57 }
 0x31b   : > { %3258 = vadd.xlane.f32.xlu1 %v3108_v21  ;;  %v6047_v41 = vpop.eup %6046  ;;  %v3135_v17 = vmul.f32 %v6045_v18, %v7695_v57 }
 0x31c   : > { %v6049_v21 = vpop.eup %6048  ;;  %v3158_v16 = vmul.f32 %v6047_v41, %v7695_v57 }
 0x31d   : > { %3272 = vadd.xlane.f32.xlu0 %v3115_v47  ;;  %v6051_v47 = vpop.eup %6050  ;;  %v3136_v37 = vmul.f32 %v6049_v21, %v7695_v57 }
 0x31e   : > { %v6053_v44 = vpop.eup %6052  ;;  %v3129_v35 = vmul.f32 %v6051_v47, %v7695_v57 }
 0x31f   : > { %3260 = vadd.xlane.f32.xlu1 %v3109_v1  ;;  %v9605_v1 = vld [vmem:[#allocation46_spill] sm:$0xff] }
 0x320   : > { %6062 = vtanh.f32 %v9605_v1 }
 0x321   : > { %3274 = vadd.xlane.f32.xlu0 %v3116_v19  ;;  %v6055_v19 = vpop.eup %6054  ;;  %6064 = vtanh.f32 %v9606_v26 }
 0x322   : > { %v6057_v25 = vpop.eup %6056  ;;  %v3159_v14 = vmul.f32 %v6055_v19, %v7695_v57 }
 0x323   : > { %3292 = vadd.xlane.f32.xlu1 %v3125_v48  ;;  %v3137_v48 = vmul.f32 %v6053_v44, %v7695_v57  ;;  %v6059_v11 = vpop.eup %6058  ;;  %v3166_v3 = vmul.f32 %v6057_v25, %v7695_v57 }
 0x325   : > { %3276 = vadd.xlane.f32.xlu0 %v3117_v36  ;;  %v9607_v36 = vld [vmem:[#allocation12_spill] sm:$0xff] }
 0x326   : > { %6066 = vtanh.f32 %v9607_v36 }
 0x327   : > { %3294 = vadd.xlane.f32.xlu1 %v3126_v52  ;;  %v9608_v52 = vld [vmem:[#allocation61_spill] sm:$0xff] }
 0x328   : > { %6068 = vtanh.f32 %v9608_v52 }
 0x329   : > { %3370 = vadd.xlane.f32.xlu0 %v3164_v56  ;;  %v6061_v56 = vpop.eup %6060  ;;  %6070 = vtanh.f32 %v9609_v22  ;;  %v9616_v22 = vld [vmem:[#allocation34_spill] sm:$0xff] }
 0x32a   : > { %v6063_v51 = vpop.eup %6062  ;;  %6072 = vtanh.f32 %v7886_v46 }
 0x32b   : > { %3296 = vadd.xlane.f32.xlu1 %v3127_v42  ;;  %v3130_v42 = vmul.f32 %v6059_v11, %v7695_v57  ;;  %v6065_v18 = vpop.eup %6064  ;;  %v3160_v41 = vmul.f32 %v6063_v51, %v7695_v57  ;;  %v9614_v11 = vld [vmem:[#allocation35_spill] sm:$0xff]  ;;  %v9617_v51 = vld [vmem:[#allocation56_spill] sm:$0xff] }
 0x32c   : > { %v3184_v21 = vmul.f32 %v6065_v18, %v7695_v57 }
 0x32d   : > { %3372 = vadd.xlane.f32.xlu0 %v3165_v30  ;;  %v3182_v30 = vmul.f32 %v6061_v56, %v7695_v57 }
 0x32f   : > { %3298 = vadd.xlane.f32.xlu1 %v3128_v15  ;;  %v9610_v15 = vld [vmem:[#allocation63_spill] sm:$0xff] }
 0x330   : > { %6074 = vtanh.f32 %v9610_v15  ;;  %v6067_v0 = vpop.eup %6066 }
 0x331   : > { %3312 = vadd.xlane.f32.xlu0 %v3135_v17  ;;  %v9611_v17 = vld [vmem:[#allocation14_spill] sm:$0xff]  ;;  %v3131_v46 = vmul.f32 %v6067_v0, %v7695_v57  ;;  %v9618_v0 = vld [vmem:[#allocation69_spill] sm:$0xff] }
 0x332   : > { %6076 = vtanh.f32 %v9611_v17  ;;  %v6069_v13 = vpop.eup %6068 }
 0x333   : > { %3358 = vadd.xlane.f32.xlu1 %v3158_v16  ;;  %v9612_v16 = vld [vmem:[#allocation19_spill] sm:$0xff]  ;;  %v6071_v47 = vpop.eup %6070  ;;  %v3140_v44 = vmul.f32 %v6069_v13, %v7695_v57  ;;  %v9619_v13 = vld [vmem:[#allocation13_spill] sm:$0xff] }
 0x334   : > { %6078 = vtanh.f32 %v9612_v16  ;;  %v6073_v1 = vpop.eup %6072 }
 0x335   : > { %3314 = vadd.xlane.f32.xlu0 %v3136_v37  ;;  %v9613_v37 = vld [vmem:[#allocation54_spill] sm:$0xff]  ;;  %v3170_v26 = vmul.f32 %v6073_v1, %v7695_v57  ;;  %v9621_v1 = vld [vmem:[#allocation23_spill] sm:$0xff] }
 0x336   : > { %6080 = vtanh.f32 %v9613_v37 }
 0x337   : > { %3300 = vadd.xlane.f32.xlu1 %v3129_v35  ;;  %6082 = vtanh.f32 %v7909_v50  ;;  %v3161_v35 = vmul.f32 %v6071_v47, %v7695_v57  ;;  %v9620_v47 = vld [vmem:[#allocation10_spill] sm:$0xff] }
 0x338   : > { %6084 = vtanh.f32 %v7913_v28  ;;  %v3602_v37 = vadd.s32 4294967288, %v9620_v47 }
 0x339   : > { %3316 = vadd.xlane.f32.xlu0 %v3137_v48  ;;  %6086 = vtanh.f32 %v7918_v32 }
 0x33a   : > { %v6075_v19 = vpop.eup %6074  ;;  %6088 = vtanh.f32 %v7922_v34 }
 0x33b   : > { %3360 = vadd.xlane.f32.xlu1 %v3159_v14  ;;  %v3132_v25 = vmul.f32 %v6075_v19, %v7695_v57  ;;  %6090 = vtanh.f32 %v9614_v11  ;;  %v9622_v19 = vld [vmem:[#allocation8_spill] sm:$0xff] }
 0x33c   : > { %v6077_v48 = vpop.eup %6076 }
 0x33d   : > { %3374 = vadd.xlane.f32.xlu0 %v3166_v3  ;;  %v3141_v50 = vmul.f32 %v6077_v48, %v7695_v57  ;;  %v9615_v3 = vld [vmem:[#allocation11_spill] sm:$0xff] }
 0x33e   : > { %v6079_v36 = vpop.eup %6078  ;;  %6092 = vtanh.f32 %v9615_v3 }
 0x33f   : > { %3302 = vadd.xlane.f32.xlu1 %v3130_v42  ;;  %v3162_v28 = vmul.f32 %v6079_v36, %v7695_v57  ;;  %6094 = vtanh.f32 %v9616_v22  ;;  %v9623_v36 = vld [vmem:[#allocation53_spill] sm:$0xff]  ;;  %v9625_v22 = vld [vmem:[#allocation15_spill] sm:$0xff] }
 0x340   : > { %v6081_v14 = vpop.eup %6080  ;;  %6096 = vtanh.f32 %v9617_v51 }
 0x341   : > { %3406 = vadd.xlane.f32.xlu0 %v3182_v30  ;;  %v6083_v52 = vpop.eup %6082  ;;  %v3171_v32 = vmul.f32 %v6081_v14, %v7695_v57  ;;  %6098 = vtanh.f32 %v7945_v53  ;;  %v3609_v14 = vadd.s32 4294967280, %v9620_v47 }
 0x342   : > { %v6085_v56 = vpop.eup %6084  ;;  %v3133_v34 = vmul.f32 %v6083_v52, %v7695_v57  ;;  %6100 = vtanh.f32 %v9618_v0 }
 0x343   : > { %3362 = vadd.xlane.f32.xlu1 %v3160_v41  ;;  %v6087_v42 = vpop.eup %6086  ;;  %v3142_v30 = vmul.f32 %v6085_v56, %v7695_v57  ;;  %6102 = vtanh.f32 %v9619_v13  ;;  %v8288_v51 = vsub.s32 %v3609_v14, %v9622_v19 }
 0x344   : > { %v6089_v18 = vpop.eup %6088  ;;  %v3163_v15 = vmul.f32 %v6087_v42, %v7695_v57  ;;  %6104 = vtanh.f32 %v7958_v58 }
 0x345   : > { %3410 = vadd.xlane.f32.xlu0 %v3184_v21  ;;  %v6091_v41 = vpop.eup %6090  ;;  %v3172_v17 = vmul.f32 %v6089_v18, %v7695_v57  ;;  %6106 = vtanh.f32 %v9621_v1 }
 0x346   : > { %v3134_v16 = vmul.f32 %v6091_v41, %v7695_v57  ;;  %6108 = vtanh.f32 %v9623_v36 }
 0x347   : > { %3304 = vadd.xlane.f32.xlu1 %v3131_v46 }
 0x348   : > { %v6093_v21 = vpop.eup %6092 }
 0x349   : > { %3322 = vadd.xlane.f32.xlu0 %v3140_v44  ;;  %v6095_v46 = vpop.eup %6094  ;;  %v3143_v53 = vmul.f32 %v6093_v21, %v7695_v57  ;;  %v3630_v21 = vadd.s32 4294967256, %v9620_v47 }
 0x34a   : > { %v6097_v44 = vpop.eup %6096 }
 0x34b   : > { %3364 = vadd.xlane.f32.xlu1 %v3161_v35  ;;  %v3167_v35 = vmul.f32 %v6095_v46, %v7695_v57  ;;  %v6099_v48 = vpop.eup %6098  ;;  %v3173_v58 = vmul.f32 %v6097_v44, %v7695_v57  ;;  %v9626_v46 = vld [vmem:[#allocation25_spill] sm:$0xff] }
 0x34c   : > { %v6101_v11 = vpop.eup %6100  ;;  %v3138_v3 = vmul.f32 %v6099_v48, %v7695_v57 }
 0x34d   : > { %3382 = vadd.xlane.f32.xlu0 %v3170_v26  ;;  %v8273_v26 = vsub.s32 %v9620_v47, %v9622_v19  ;;  %v3144_v42 = vmul.f32 %v6101_v11, %v7695_v57 }
 0x34f   : > { %3306 = vadd.xlane.f32.xlu1 %v3132_v25 }
 0x351   : > { %3324 = vadd.xlane.f32.xlu0 %v3141_v50  ;;  %v8278_v50 = vsub.s32 %v3602_v37, %v9622_v19 }
 0x353   : > { %3366 = vadd.xlane.f32.xlu1 %v3162_v28  ;;  %v9624_v28 = vld [vmem:[#allocation71_spill] sm:$0xff] }
 0x354   : > { %6110 = vtanh.f32 %v9624_v28 }
 0x355   : > { %3384 = vadd.xlane.f32.xlu0 %v3171_v32  ;;  %v6103_v32 = vpop.eup %6102  ;;  %6112 = vtanh.f32 %v9625_v22 }
 0x356   : > { %v6105_v18 = vpop.eup %6104  ;;  %6114 = vtanh.f32 %v7981_v8  ;;  %v3637_v8 = vadd.s32 4294967248, %v9620_v47 }
 0x357   : > { %3308 = vadd.xlane.f32.xlu1 %v3133_v34  ;;  %v6107_v13 = vpop.eup %6106  ;;  %6116 = vtanh.f32 %v9626_v46  ;;  %v3174_v37 = vmul.f32 %v6105_v18, %v7695_v57  ;;  %v3658_v18 = vadd.s32 4294967224, %v9620_v47 }
 0x358   : > { %v6109_v1 = vpop.eup %6108  ;;  %v3183_v14 = vmul.f32 %v6107_v13, %v7695_v57 }
 0x359   : > { %3326 = vadd.xlane.f32.xlu0 %v3142_v30  ;;  %v3616_v30 = vadd.s32 4294967272, %v9620_v47 }
 0x35b   : > { %3368 = vadd.xlane.f32.xlu1 %v3163_v15  ;;  %v3623_v15 = vadd.s32 4294967264, %v9620_v47  ;;  %v8300_v44 = vsub.s32 %v3616_v30, %v9622_v19 }
 0x35d   : > { %3386 = vadd.xlane.f32.xlu0 %v3172_v17  ;;  %v3168_v17 = vmul.f32 %v6103_v32, %v7695_v57  ;;  %v8316_v32 = vsub.s32 %v3637_v8, %v9622_v19 }
 0x35e   : > { %v3215_v25 = vpop.xlane.xlu1 %3214  ;;  %v6111_v11 = vpop.eup %6110 }
 0x35f   : > { %3310 = vadd.xlane.f32.xlu1 %v3134_v16  ;;  %v3601_v52 = vrot.slane %v3215_v25, %v8273_v26  ;;  %v9627_v25 = vld [vmem:[#allocation55_spill] sm:$0xff]  ;;  %v6113_v22 = vpop.eup %6112 }
 0x360   : > { %6118 = vtanh.f32 %v9627_v25  ;;  %v3672_v25 = vadd.s32 4294967208, %v9620_v47 }
 0x361   : > { %3328 = vadd.xlane.f32.xlu0 %v3143_v53  ;;  %6120 = vtanh.f32 %v7994_v33 }
 0x362   : > { %6122 = vtanh.f32 %v8000_v5 }
 0x363   : > { %3376 = vadd.xlane.f32.xlu1 %v3167_v35  ;;  %v8304_v35 = vsub.s32 %v3623_v15, %v9622_v19 }
 0x365   : > { %3388 = vadd.xlane.f32.xlu0 %v3173_v58  ;;  %v8309_v58 = vsub.s32 %v3630_v21, %v9622_v19  ;;  %v6115_v21 = vpop.eup %6114 }
 0x366   : > { %v3217_v56 = vpop.xlane.xlu0 %3216  ;;  %v6117_v8 = vpop.eup %6116 }
 0x367   : > { %v3606_v34 = vrot.slane %v3217_v56, %v8278_v50  ;;  %3318 = vadd.xlane.f32.xlu1 %v3138_v3  ;;  %v3145_v3 = vmul.f32 %v6109_v1, %v7695_v57  ;;  %v3644_v56 = vadd.s32 4294967240, %v9620_v47 }
 0x368   : > { %v3223_v41 = vpop.xlane.xlu1 %3222 }
 0x369   : > { %v3608_v0 = vsel %vm3607_vm12, %v3606_v34, %v3601_v52  ;;  %3330 = vadd.xlane.f32.xlu0 %v3144_v42  ;;  %v3627_v34 = vrot.slane %v3223_v41, %v8304_v35  ;;  %v3651_v42 = vadd.s32 4294967232, %v9620_v47 }
 0x36a   : > { %v3219_v16 = vpop.xlane.xlu0 %3218 }
 0x36b   : > { %v3613_v53 = vrot.slane %v3219_v16, %v8288_v51  ;;  %3378 = vadd.xlane.f32.xlu1 %v3168_v17  ;;  %v3665_v17 = vadd.s32 4294967216, %v9620_v47  ;;  %v9628_v16 = vld [vmem:[#allocation78_spill] sm:$0xff]  ;;  %v8336_v1 = vsub.s32 %v3651_v42, %v9622_v19 }
 0x36c   : > { %v3225_v48 = vpop.xlane.xlu1 %3224  ;;  %6124 = vtanh.f32 %v9628_v16 }
 0x36d   : > { %v3615_v36 = vsel %vm3614_vm13, %v3613_v53, %v3608_v0  ;;  %3390 = vadd.xlane.f32.xlu0 %v3174_v37  ;;  %v3634_v15 = vrot.slane %v3225_v48, %v8309_v58  ;;  %v3139_v0 = vmul.f32 %v6111_v11, %v7695_v57  ;;  %v3175_v53 = vmul.f32 %v6113_v22, %v7695_v57 }
 0x36e   : > { %v3221_v28 = vpop.xlane.xlu0 %3220  ;;  %v8333_v37 = vsub.s32 %v3644_v56, %v9622_v19  ;;  %6126 = vtanh.f32 %v8010_v43  ;;  %v3169_v11 = vmul.f32 %v6115_v21, %v7695_v57  ;;  %v9629_v56 = vld [vmem:[#allocation17_spill] sm:$0xff]  ;;  %v3146_v43 = vmul.f32 %v6117_v8, %v7695_v57 }
 0x36f   : > { %v3620_v52 = vrot.slane %v3221_v28, %v8300_v44  ;;  %3408 = vadd.xlane.f32.xlu1 %v3183_v14  ;;  %v8342_v14 = vsub.s32 %v3658_v18, %v9622_v19  ;;  %v8346_v28 = vsub.s32 %v3665_v17, %v9622_v19  ;;  %6128 = vtanh.f32 %v9629_v56 }
 0x370   : > { %v3231_v30 = vpop.xlane.xlu1 %3230 }
 0x371   : > { %v3622_v33 = vsel %vm3621_vm14, %v3620_v52, %v3615_v36  ;;  %3332 = vadd.xlane.f32.xlu0 %v3145_v3  ;;  %v6119_v52 = vpop.eup %6118  ;;  %v3655_v42 = vrot.slane %v3231_v30, %v8336_v1 }
 0x372   : > { %v3629_v13 = vsel %vm3628_vm15, %v3627_v34, %v3622_v33  ;;  %v3227_v41 = vpop.xlane.xlu0 %3226  ;;  %v6121_v34 = vpop.eup %6120  ;;  %v8353_v33 = vsub.s32 %v3672_v25, %v9622_v19 }
 0x373   : > { %v3636_v46 = vsel %vm3635_vm0, %v3634_v15, %v3629_v13  ;;  %v3641_v5 = vrot.slane %v3227_v41, %v8316_v32  ;;  %3320 = vadd.xlane.f32.xlu1 %v3139_v0  ;;  %v3679_v15 = vadd.s32 4294967200, %v9620_v47  ;;  %v9630_v0 = vld [vmem:[#allocation22_spill] sm:$0xff]  ;;  %v3185_v41 = vmul.f32 %v6119_v52, %v7695_v57  ;;  %v6123_v16 = vpop.eup %6122 }
 0x374   : > { %v3233_v48 = vpop.xlane.xlu1 %3232  ;;  %6130 = vtanh.f32 %v9630_v0  ;;  %v3186_v52 = vmul.f32 %v6123_v16, %v7695_v57 }
 0x375   : > { %v3643_v36 = vsel %vm3642_vm1, %v3641_v5, %v3636_v46  ;;  %3392 = vadd.xlane.f32.xlu0 %v3175_v53  ;;  %v3662_v21 = vrot.slane %v3233_v48, %v8342_v14  ;;  %6132 = vtanh.f32 %v8024_v2  ;;  %v3176_v53 = vmul.f32 %v6121_v34, %v7695_v57 }
 0x376   : > { %v3229_v3 = vpop.xlane.xlu0 %3228  ;;  %v6125_v8 = vpop.eup %6124  ;;  %v3686_v2 = vadd.s32 4294967192, %v9620_v47 }
 0x377   : > { %v3648_v22 = vrot.slane %v3229_v3, %v8333_v37  ;;  %3380 = vadd.xlane.f32.xlu1 %v3169_v11  ;;  %v8372_v3 = vsub.s32 %v3679_v15, %v9622_v19  ;;  %v3147_v34 = vmul.f32 %v6125_v8, %v7695_v57 }
 0x378   : > { %v3235_v18 = vpop.xlane.xlu1 %3234  ;;  %v6127_v56 = vpop.eup %6126 }
 0x379   : > { %v3650_v17 = vsel %vm3649_vm3, %v3648_v22, %v3643_v36  ;;  %3334 = vadd.xlane.f32.xlu0 %v3146_v43  ;;  %v3669_v13 = vrot.slane %v3235_v18, %v8346_v28  ;;  %v9631_v36 = vld [vmem:[#allocation62_spill] sm:$0xff]  ;;  %v3187_v0 = vmul.f32 %v6127_v56, %v7695_v57 }
 0x37a   : > { %v3657_v30 = vsel %vm3656_vm4, %v3655_v42, %v3650_v17  ;;  %v8362_v46 = vpop.xlane.xlu0 %3246  ;;  %6134 = vtanh.f32 %v9631_v36  ;;  %v6129_v42 = vpop.eup %6128  ;;  %v8384_v17 = vsub.s32 %v3686_v2, %v9622_v19 }
 0x37b   : > { %v3664_v5 = vsel %vm3663_vm5, %v3662_v21, %v3657_v30  ;;  %3412 = vadd.xlane.f32.xlu1 %v3185_v41  ;;  %6136 = vtanh.f32 %v8036_v55  ;;  %v3693_v55 = vadd.s32 4294967184, %v9620_v47  ;;  %v9632_v41 = vld [vmem:[#allocation80_spill] sm:$0xff] }
 0x37c   : > { %v3671_v48 = vsel %vm3670_vm2, %v3669_v13, %v3664_v5  ;;  %v3237_v25 = vpop.xlane.xlu1 %3236  ;;  %6138 = vtanh.f32 %v8040_v6  ;;  %v3177_v6 = vmul.f32 %v6129_v42, %v7695_v57 }
 0x37d   : > { %3394 = vadd.xlane.f32.xlu0 %v3176_v53  ;;  %v3676_v11 = vrot.slane %v3237_v25, %v8353_v33  ;;  %6140 = vtanh.f32 %v9632_v41  ;;  %v3700_v25 = vadd.s32 4294967176, %v9620_v47 }
 0x37e   : > { %v8375_v22 = vpop.xlane.xlu0 %3278  ;;  %v6131_v21 = vpop.eup %6130  ;;  %6142 = vtanh.f32 %v8055_v23 }
 0x37f   : > { %v3678_v43 = vsel %vm3677_vm6, %v3676_v11, %v3671_v48  ;;  %3414 = vadd.xlane.f32.xlu1 %v3186_v52  ;;  %v6133_v30 = vpop.eup %6132  ;;  %v3188_v8 = vmul.f32 %v6131_v21, %v7695_v57  ;;  %v8396_v48 = vsub.s32 %v3693_v55, %v9622_v19  ;;  %6144 = vtanh.f32 %v8059_v38 }
 0x380   : > { %v3239_v18 = vpop.xlane.xlu1 %3238  ;;  %v3148_v23 = vmul.f32 %v6133_v30, %v7695_v57  ;;  %6146 = vtanh.f32 %v8064_v63  ;;  %v8408_v42 = vsub.s32 %v3700_v25, %v9622_v19 }
 0x381   : > { %3336 = vadd.xlane.f32.xlu0 %v3147_v34  ;;  %v3683_v15 = vrot.slane %v3239_v18, %v8372_v3  ;;  %6148 = vtanh.f32 %v8071_v59 }
 0x382   : > { %v8387_v13 = vpop.xlane.xlu0 %3282  ;;  %6150 = vtanh.f32 %v8078_v61  ;;  %v3710_v61 = vrot.slane %v8362_v46, %v8273_v26 }
 0x383   : > { %v3685_v16 = vsel %vm3684_vm7, %v3683_v15, %v3678_v43  ;;  %3416 = vadd.xlane.f32.xlu1 %v3187_v0  ;;  %6152 = vtanh.f32 %v8083_v60 }
 0x384   : > { %v3241_v5 = vpop.xlane.xlu1 %3240  ;;  %v6135_v36 = vpop.eup %6134  ;;  %6154 = vtanh.f32 %v8088_v10 }
 0x385   : > { %3396 = vadd.xlane.f32.xlu0 %v3177_v6  ;;  %v3690_v53 = vrot.slane %v3241_v5, %v8384_v17  ;;  %v6137_v2 = vpop.eup %6136  ;;  %v3189_v34 = vmul.f32 %v6135_v36, %v7695_v57  ;;  %6156 = vtanh.f32 %v8095_v27 }
 0x386   : > { %v8399_v11 = vpop.xlane.xlu0 %3254  ;;  %v6139_v18 = vpop.eup %6138  ;;  %v3178_v0 = vmul.f32 %v6137_v2, %v7695_v57  ;;  %6158 = vtanh.f32 %v8101_v9  ;;  %v3789_v9 = vrot.slane %v8375_v22, %v8273_v26  ;;  %v9634_v22 = vld [vmem:[#allocation90_spill] sm:$0xff] }
 0x387   : > { %v3692_v52 = vsel %vm3691_vm8, %v3690_v53, %v3685_v16  ;;  %3418 = vadd.xlane.f32.xlu1 %v3188_v8  ;;  %v6141_v55 = vpop.eup %6140  ;;  %v3190_v41 = vmul.f32 %v6139_v18, %v7695_v57  ;;  %6160 = vtanh.f32 %v8106_v24  ;;  %v3798_v24 = vrot.slane %v8387_v13, %v8288_v51 }
 0x388   : > { %v3243_v56 = vpop.xlane.xlu1 %3242  ;;  %v6143_v16 = vpop.eup %6142  ;;  %v3194_v30 = vmul.f32 %v6141_v55, %v7695_v57  ;;  %v9633_v55 = vld [vmem:[#allocation21_spill] sm:$0xff] }
 0x389   : > { %3338 = vadd.xlane.f32.xlu0 %v3148_v23  ;;  %v3697_v43 = vrot.slane %v3243_v56, %v8396_v48  ;;  %v6145_v5 = vpop.eup %6144  ;;  %v3191_v25 = vmul.f32 %v6143_v16, %v7695_v57  ;;  %6162 = vtanh.f32 %v9633_v55 }
 0x38a   : > { %v8410_v38 = vpop.xlane.xlu0 %3256  ;;  %v6147_v36 = vpop.eup %6146  ;;  %v3195_v23 = vmul.f32 %v6145_v5, %v7695_v57  ;;  %6164 = vtanh.f32 %v8115_v20  ;;  %v3729_v20 = vrot.slane %v8399_v11, %v8304_v35 }
 0x38b   : > { %v3699_v15 = vsel %vm3698_vm9, %v3697_v43, %v3692_v52  ;;  %3420 = vadd.xlane.f32.xlu1 %v3189_v34  ;;  %v6149_v2 = vpop.eup %6148  ;;  %v3192_v56 = vmul.f32 %v6147_v36, %v7695_v57  ;;  %6166 = vtanh.f32 %v9634_v22 }
 0x38c   : > { %v3245_v63 = vpop.xlane.xlu1 %3244  ;;  %v6151_v43 = vpop.eup %6150  ;;  %v3199_v18 = vmul.f32 %v6149_v2, %v7695_v57  ;;  %6168 = vtanh.f32 %v8121_v54 }
 0x38d   : > { %3398 = vadd.xlane.f32.xlu0 %v3178_v0  ;;  %v3704_v21 = vrot.slane %v3245_v63, %v8408_v42 }
 0x38e   : > { %v8418_v6 = vpop.xlane.xlu0 %3288 }
 0x38f   : > { %v8422_v59 = vsel %vm3705_vm10, %v3704_v21, %v3699_v15  ;;  %3422 = vadd.xlane.f32.xlu1 %v3190_v41  ;;  %v6153_v15 = vpop.eup %6152  ;;  %v3193_v21 = vmul.f32 %v6151_v43, %v7695_v57 }
 0x390   : > { %v3249_v53 = vpop.xlane.xlu1 %3248  ;;  %v6155_v41 = vpop.eup %6154  ;;  %v3200_v5 = vmul.f32 %v6153_v15, %v7695_v57 }
 0x391   : > { %3430 = vadd.xlane.f32.xlu0 %v3194_v30  ;;  %v3714_v8 = vrot.slane %v3249_v53, %v8278_v50  ;;  %v6157_v53 = vpop.eup %6156  ;;  %v3149_v13 = vmul.f32 %v6155_v41, %v7695_v57 }
 0x392   : > { %v8430_v60 = vpop.xlane.xlu0 %3290  ;;  %v6159_v36 = vpop.eup %6158 }
 0x393   : > { %v3715_v52 = vsel %vm3607_vm12, %v3714_v8, %v3710_v61  ;;  %3424 = vadd.xlane.f32.xlu1 %v3191_v25  ;;  %v3179_v11 = vmul.f32 %v6159_v36, %v7695_v57  ;;  %v3818_v22 = vrot.slane %v8430_v60, %v8316_v32 }
 0x394   : > { %v3251_v10 = vpop.xlane.xlu1 %3250 }
 0x395   : > { %3432 = vadd.xlane.f32.xlu0 %v3195_v23  ;;  %v3719_v46 = vrot.slane %v3251_v10, %v8288_v51  ;;  %v3734_v23 = vrot.slane %v8410_v38, %v8309_v58  ;;  %v3201_v10 = vmul.f32 %v6157_v53, %v7695_v57 }
 0x396   : > { %v8438_v34 = vpop.xlane.xlu0 %3262 }
 0x397   : > { %v3720_v27 = vsel %vm3614_vm13, %v3719_v46, %v3715_v52  ;;  %3426 = vadd.xlane.f32.xlu1 %v3192_v56  ;;  %v6161_v46 = vpop.eup %6160 }
 0x398   : > { %v3281_v0 = vpop.xlane.xlu1 %3280  ;;  %v6163_v54 = vpop.eup %6162  ;;  %v3202_v55 = vmul.f32 %v6161_v46, %v7695_v57  ;;  %v9638_v46 = vld [vmem:[#allocation94_spill] sm:$0xff] }
 0x399   : > { %3440 = vadd.xlane.f32.xlu0 %v3199_v18  ;;  %v3793_v63 = vrot.slane %v3281_v0, %v8278_v50  ;;  %v9635_v18 = vld [vmem:[#allocation70_spill] sm:$0xff]  ;;  %v3180_v41 = vmul.f32 %v6163_v54, %v7695_v57  ;;  %v3749_v54 = vrot.slane %v8438_v34, %v8336_v1 }
 0x39a   : > { %v8450_v16 = vpop.xlane.xlu0 %3264  ;;  %6170 = vtanh.f32 %v9635_v18 }
 0x39b   : > { %v3794_v30 = vsel %vm3607_vm12, %v3793_v63, %v3789_v9  ;;  %3428 = vadd.xlane.f32.xlu1 %v3193_v21  ;;  %v6165_v9 = vpop.eup %6164 }
 0x39c   : > { %v3253_v61 = vpop.xlane.xlu1 %3252  ;;  %v3799_v8 = vsel %vm3614_vm13, %v3798_v24, %v3794_v30  ;;  %v6167_v24 = vpop.eup %6166  ;;  %v3813_v30 = vrot.slane %v8418_v6, %v8309_v58 }
 0x39d   : > { %3442 = vadd.xlane.f32.xlu0 %v3200_v5  ;;  %v3724_v25 = vrot.slane %v3253_v61, %v8300_v44  ;;  %v3152_v6 = vmul.f32 %v6167_v24, %v7695_v57 }
 0x39e   : > { %v8461_v52 = vpop.xlane.xlu0 %3266 }
 0x39f   : > { %v3725_v2 = vsel %vm3621_vm14, %v3724_v25, %v3720_v27  ;;  %3340 = vadd.xlane.f32.xlu1 %v3149_v13  ;;  %v9636_v27 = vld [vmem:[#allocation24_spill] sm:$0xff]  ;;  %v6169_v25 = vpop.eup %6168  ;;  %v9637_v13 = vld [vmem:[#allocation91_spill] sm:$0xff] }
 0x3a0   : > { %v3730_v56 = vsel %vm3628_vm15, %v3729_v20, %v3725_v2  ;;  %v3285_v43 = vpop.xlane.xlu1 %3284  ;;  %6172 = vtanh.f32 %v9636_v27  ;;  %v3204_v2 = vmul.f32 %v6169_v25, %v7695_v57 }
 0x3a1   : > { %3444 = vadd.xlane.f32.xlu0 %v3201_v10  ;;  %v3735_v15 = vsel %vm3635_vm0, %v3734_v23, %v3730_v56  ;;  %v3803_v0 = vrot.slane %v3285_v43, %v8300_v44  ;;  %6174 = vtanh.f32 %v8141_v45  ;;  %v3203_v45 = vmul.f32 %v6165_v9, %v7695_v57 }
 0x3a2   : > { %v8473_v38 = vpop.xlane.xlu0 %3268  ;;  %6176 = vtanh.f32 %v8135_v31 }
 0x3a3   : > { %3400 = vadd.xlane.f32.xlu1 %v3179_v11  ;;  %v3804_v5 = vsel %vm3621_vm14, %v3803_v0, %v3799_v8  ;;  %6178 = vtanh.f32 %v9637_v13 }
 0x3a4   : > { %v3287_v63 = vpop.xlane.xlu1 %3286  ;;  %v6171_v31 = vpop.eup %6170  ;;  %6180 = vtanh.f32 %v8145_v4  ;;  %v3754_v4 = vrot.slane %v8450_v16, %v8342_v14 }
 0x3a5   : > { %3446 = vadd.xlane.f32.xlu0 %v3202_v55  ;;  %v3808_v21 = vrot.slane %v3287_v63, %v8304_v35  ;;  %6182 = vtanh.f32 %v9638_v46  ;;  %v3198_v18 = vmul.f32 %v6171_v31, %v7695_v57 }
 0x3a6   : > { %v3271_v53 = vpop.xlane.xlu0 %3270  ;;  %6184 = vtanh.f32 %v8151_v62  ;;  %v3764_v62 = vrot.slane %v8473_v38, %v8353_v33 }
 0x3a7   : > { %v3809_v61 = vsel %vm3628_vm15, %v3808_v21, %v3804_v5  ;;  %3402 = vadd.xlane.f32.xlu1 %v3180_v41  ;;  %v9639_v21 = vld [vmem:[#allocation96_spill] sm:$0xff]  ;;  %v3759_v41 = vrot.slane %v8461_v52, %v8346_v28 }
 0x3a8   : > { %v3814_v36 = vsel %vm3635_vm0, %v3813_v30, %v3809_v61  ;;  %v3259_v20 = vpop.xlane.xlu1 %3258  ;;  %6186 = vtanh.f32 %v9639_v21  ;;  %v9640_v5 = vld [vmem:[#allocation92_spill] sm:$0xff] }
 0x3a9   : > { %3448 = vadd.xlane.f32.xlu0 %v3203_v45  ;;  %v8492_v8 = vsel %vm3642_vm1, %v3818_v22, %v3814_v36  ;;  %v3739_v60 = vrot.slane %v3259_v20, %v8316_v32  ;;  %6188 = vtanh.f32 %v9640_v5  ;;  %v3769_v22 = vrot.slane %v3271_v53, %v8372_v3  ;;  %v9641_v36 = vld [vmem:[#allocation97_spill] sm:$0xff] }
 0x3aa   : > { %v3273_v23 = vpop.xlane.xlu0 %3272  ;;  %v6173_v10 = vpop.eup %6172  ;;  %6190 = vtanh.f32 %v9641_v36 }
 0x3ab   : > { %3346 = vadd.xlane.f32.xlu1 %v3152_v6  ;;  %v6175_v11 = vpop.eup %6174  ;;  %v3740_v0 = vsel %vm3642_vm1, %v3739_v60, %v3735_v15  ;;  %v3205_v9 = vmul.f32 %v6173_v10, %v7695_v57  ;;  %v3774_v45 = vrot.slane %v3273_v23, %v8384_v17  ;;  %v9642_v10 = vld [vmem:[#allocation93_spill] sm:$0xff] }
 0x3ac   : > { %v3261_v56 = vpop.xlane.xlu1 %3260  ;;  %v6177_v63 = vpop.eup %6176  ;;  %v3209_v24 = vmul.f32 %v6175_v11, %v7695_v57  ;;  %6192 = vtanh.f32 %v9642_v10 }
 0x3ad   : > { %3450 = vadd.xlane.f32.xlu0 %v3204_v2  ;;  %v3744_v43 = vrot.slane %v3261_v56, %v8333_v37  ;;  %v6179_v30 = vpop.eup %6178  ;;  %v3206_v13 = vmul.f32 %v6177_v63, %v7695_v57  ;;  %6194 = vtanh.f32 %v8161_v39 }
 0x3ae   : > { %v3275_v27 = vpop.xlane.xlu0 %3274  ;;  %v6181_v38 = vpop.eup %6180  ;;  %v3150_v23 = vmul.f32 %v6179_v30, %v7695_v57 }
 0x3af   : > { %v3745_v55 = vsel %vm3649_vm3, %v3744_v43, %v3740_v0  ;;  %3438 = vadd.xlane.f32.xlu1 %v3198_v18  ;;  %v3779_v6 = vrot.slane %v3275_v27, %v8396_v48  ;;  %v6183_v2 = vpop.eup %6182  ;;  %v3207_v18 = vmul.f32 %v6181_v38, %v7695_v57 }
 0x3b0   : > { %v3750_v34 = vsel %vm3656_vm4, %v3749_v54, %v3745_v55  ;;  %v8512_v15 = vpop.xlane.xlu1 %3292  ;;  %v6185_v11 = vpop.eup %6184  ;;  %v3156_v27 = vmul.f32 %v6183_v2, %v7695_v57  ;;  %v9643_v55 = vld [vmem:[#allocation95_spill] sm:$0xff] }
 0x3b1   : > { %v3755_v16 = vsel %vm3663_vm5, %v3754_v4, %v3750_v34  ;;  %3452 = vadd.xlane.f32.xlu0 %v3205_v9  ;;  %6196 = vtanh.f32 %v9643_v55  ;;  %v3208_v63 = vmul.f32 %v6185_v11, %v7695_v57 }
 0x3b2   : > { %v3760_v61 = vsel %vm3670_vm2, %v3759_v41, %v3755_v16  ;;  %v3277_v52 = vpop.xlane.xlu0 %3276  ;;  %v6187_v4 = vpop.eup %6186  ;;  %6198 = vtanh.f32 %v8170_v29 }
 0x3b3   : > { %v3765_v25 = vsel %vm3677_vm6, %v3764_v62, %v3760_v61  ;;  %3460 = vadd.xlane.f32.xlu1 %v3209_v24  ;;  %v3784_v60 = vrot.slane %v3277_v52, %v8408_v42  ;;  %v6189_v21 = vpop.eup %6188  ;;  %6200 = vtanh.f32 %v8165_v49 }
 0x3b4   : > { %v3770_v20 = vsel %vm3684_vm7, %v3769_v22, %v3765_v25  ;;  %v8527_v31 = vpop.xlane.xlu1 %3294  ;;  %v6191_v39 = vpop.eup %6190  ;;  %v3153_v62 = vmul.f32 %v6189_v21, %v7695_v57  ;;  %6202 = vtanh.f32 %v8179_v40  ;;  %v9644_v22 = vld [vmem:[#allocation77_spill] sm:$0xff] }
 0x3b5   : > { %v3775_v53 = vsel %vm3691_vm8, %v3774_v45, %v3770_v20  ;;  %3454 = vadd.xlane.f32.xlu0 %v3206_v13  ;;  %v3155_v30 = vmul.f32 %v6191_v39, %v7695_v57  ;;  %6204 = vtanh.f32 %v9644_v22  ;;  %v3823_v39 = vrot.slane %v8512_v15, %v8333_v37 }
 0x3b6   : > { %v3780_v46 = vsel %vm3698_vm9, %v3779_v6, %v3775_v53  ;;  %v8534_v56 = vpop.xlane.xlu0 %3370  ;;  %v6193_v16 = vpop.eup %6192  ;;  %6206 = vtanh.f32 %v8188_v7 }
 0x3b7   : > { %v3785_v43 = vsel %vm3705_vm10, %v3784_v60, %v3780_v46  ;;  %3342 = vadd.xlane.f32.xlu1 %v3150_v23  ;;  %v6195_v29 = vpop.eup %6194  ;;  %v3151_v61 = vmul.f32 %v6193_v16, %v7695_v57  ;;  %6208 = vtanh.f32 %v8184_v12  ;;  %v3824_v22 = vsel %vm3649_vm3, %v3823_v39, %v8492_v8 }
 0x3b8   : > { %v8540_v54 = vsel %vm9389_vm11, %v3785_v43, %v8422_v59  ;;  %v8542_v0 = vpop.xlane.xlu1 %3296  ;;  %v3157_v59 = vmul.f32 %v6187_v4, %v7695_v57  ;;  %v3210_v45 = vmul.f32 %v6195_v29, %v7695_v57  ;;  %vm9393_vm11 = vcmask 1042434  }
 0x3b9   : > { %3456 = vadd.xlane.f32.xlu0 %v3207_v18 }
 0x3ba   : > { %v8547_v9 = vpop.xlane.xlu0 %3372 }
 0x3bb   : > { %3354 = vadd.xlane.f32.xlu1 %v3156_v27  ;;  %v6197_v49 = vpop.eup %6196 }
 0x3bc   : > { %v8550_v41 = vpop.xlane.xlu1 %3298  ;;  %v6199_v25 = vpop.eup %6198  ;;  %v3154_v13 = vmul.f32 %v6197_v49, %v7695_v57 }
 0x3bd   : > { %3458 = vadd.xlane.f32.xlu0 %v3208_v63  ;;  %v6201_v38 = vpop.eup %6200  ;;  %v3196_v20 = vmul.f32 %v6199_v25, %v7695_v57 }
 0x3be   : > { %v8554_v34 = vpop.xlane.xlu0 %3312  ;;  %v6203_v6 = vpop.eup %6202  ;;  %v3181_v7 = vmul.f32 %v6201_v38, %v7695_v57 }
 0x3bf   : > { %3356 = vadd.xlane.f32.xlu1 %v3157_v59  ;;  %v6205_v60 = vpop.eup %6204  ;;  %v3197_v12 = vmul.f32 %v6203_v6, %v7695_v57 }
 0x3c0   : > { %v8558_v24 = vpop.xlane.xlu1 %3358  ;;  %v6207_v2 = vpop.eup %6206  ;;  %v3211_v46 = vmul.f32 %v6205_v60, %v7695_v57 }
 0x3c1   : > { %3348 = vadd.xlane.f32.xlu0 %v3153_v62  ;;  %v6209_v43 = vpop.eup %6208  ;;  %v3213_v11 = vmul.f32 %v6207_v2, %v7695_v57  ;;  %v3828_v62 = vrot.slane %v8527_v31, %v8336_v1 }
 0x3c2   : > { %v8562_v5 = vpop.xlane.xlu0 %3314  ;;  %v3212_v4 = vmul.f32 %v6209_v43, %v7695_v57  ;;  %v3838_v57 = vrot.slane %v8550_v41, %v8346_v28  ;;  %v6214_v43 = vld [vmem:[%s6488_s21] sm:$0xff]  ;;  %s8973_s21 = sand.u32 1, %s6366_s28  }
 0x3c3   : > { %3352 = vadd.xlane.f32.xlu1 %v3155_v30  ;;  %v3833_v30 = vrot.slane %v8542_v0, %v8342_v14  ;;  %v3829_v49 = vsel %vm3656_vm4, %v3828_v62, %v3824_v22  ;;  %s5379_s19 = sshll.u32 %s8973_s21, 3  ;;  %s5234_s24 = scalar_lea.sflag [#allocation5], %s8973_s21 }
 0x3c4   : > { %v3301_v52 = vpop.xlane.xlu1 %3300  ;;  %s8980_s20 = scalar_lea.vmem [#allocation4], %s5379_s19 }
 0x3c5   : > { %3344 = vadd.xlane.f32.xlu0 %v3151_v61  ;;  %v3843_v61 = vrot.slane %v3301_v52, %v8353_v33  ;;  %v3834_v31 = vsel %vm3663_vm5, %v3833_v30, %v3829_v49  ;;  %s5260_s23 = sshll.u32 %s8980_s20, 4  ;;  %s5261_s23 = int_to_ptr.vmem [resolvable:$true] %s5260_s23 }
 0x3c6   : > { %v8568_v40 = vpop.xlane.xlu0 %3316  ;;  %v3839_v41 = vsel %vm3670_vm2, %v3838_v57, %v3834_v31  ;;  %s6280_s25 = scalar_lea.vmem %s5261_s23, 128  ;;  %p6287_p1 = scmp.lt.s32.totalorder %s5261_s23, %s6285_s12 }
 0x3c7   : > { %3462 = vadd.xlane.f32.xlu1 %v3210_v45  ;;  %v3844_v8 = vsel %vm3677_vm6, %v3843_v61, %v3839_v41  ;;  %p6281_p12 = scmp.ne.s32.totalorder %s5261_s23, %s6280_s25  ;;  %p6288_p2 = scmp.lt.s32.totalorder %s6286_s13, %s6280_s25 }
 0x3c8   : > { %v8572_v36 = vpop.xlane.xlu1 %3360 }
 0x3c9   : > { %3350 = vadd.xlane.f32.xlu0 %v3154_v13  ;;  %p6282_p13 = pnand %p6281_p12, %p6468_p5  ;;  %p6289_p3 = por %p6288_p2, %p6287_p1 }
 0x3ca   : > { %v8575_v53 = vpop.xlane.xlu0 %3374 }
 0x3cb   : > { %3434 = vadd.xlane.f32.xlu1 %v3196_v20  ;;  %p6283_p0 = pneg %p6282_p13 }
 0x3cc   : > { %v3303_v23 = vpop.xlane.xlu1 %3302 }
 0x3cd   : > { %3404 = vadd.xlane.f32.xlu0 %v3181_v7  ;;  %v3848_v15 = vrot.slane %v3303_v23, %v8372_v3  ;;  %p6290_p4 = pnand %p6289_p3, %p6283_p0 }
 0x3ce   : > { %v8579_v10 = vpop.xlane.xlu0 %3406 }
 0x3cf   : > { %3436 = vadd.xlane.f32.xlu1 %v3197_v12  ;;  %v3849_v52 = vsel %vm3684_vm7, %v3848_v15, %v3844_v8 }
 0x3d0   : > { %v8582_v18 = vpop.xlane.xlu1 %3362 }
 0x3d1   : > { %3464 = vadd.xlane.f32.xlu0 %v3211_v46 }
 0x3d2   : > { %v8585_v27 = vpop.xlane.xlu0 %3410 }
 0x3d3   : > { %3468 = vadd.xlane.f32.xlu1 %v3213_v11 }
 0x3d4   : > { %v3305_v55 = vpop.xlane.xlu1 %3304 }
 0x3d5   : > { %3466 = vadd.xlane.f32.xlu0 %v3212_v4  ;;  %v3853_v0 = vrot.slane %v3305_v55, %v8384_v17 }
 0x3d6   : > { %v8588_v63 = vpop.xlane.xlu0 %3322 }
 0x3d7   : > { %v3854_v20 = vsel %vm3691_vm8, %v3853_v0, %v3849_v52 }
 0x3d8   : > { %v8590_v21 = vpop.xlane.xlu1 %3364 }
 0x3da   : > { %v8592_v59 = vpop.xlane.xlu0 %3382 }
 0x3dc   : > { %v3307_v16 = vpop.xlane.xlu1 %3306 }
 0x3dd   : > { %v3858_v25 = vrot.slane %v3307_v16, %v8396_v48 }
 0x3de   : > { %v8602_v29 = vpop.xlane.xlu0 %3324 }
 0x3df   : > { %v3859_v7 = vsel %vm3698_vm9, %v3858_v25, %v3854_v20 }
 0x3e0   : > { %v8609_v45 = vpop.xlane.xlu1 %3366 }
 0x3e2   : > { %v8615_v13 = vpop.xlane.xlu0 %3384 }
 0x3e4   : > { %v3309_v38 = vpop.xlane.xlu1 %3308 }
 0x3e5   : > { %v3863_v6 = vrot.slane %v3309_v38, %v8408_v42 }
 0x3e6   : > { %v8622_v60 = vpop.xlane.xlu0 %3326 }
 0x3e7   : > { %v3864_v23 = vsel %vm3705_vm10, %v3863_v6, %v3859_v7 }
 0x3e8   : > { %v8627_v12 = vsel %vm9393_vm11, %v3864_v23, %v8540_v54  ;;  %v8629_v2 = vpop.xlane.xlu1 %3368  ;;  %vm4264_vm11 = vcmask 1043459  }
 0x3e9   : > { %9645 = vst [vmem:[#allocation18_spill] sm:$0xff] %v8627_v12  ;;  %9646 = vst [vmem:[#allocation27_spill] sm:$0xff] %v8629_v2 }
 0x3ea   : > { %v8631_v46 = vpop.xlane.xlu0 %3386 }
 0x3eb   : > { %544 = vperm.xlu0 %5876, %v6214_v43  }
 0x3ec   : > { %v3311_v11 = vpop.xlane.xlu1 %3310 }
 0x3ee   : > { %v8634_v4 = vpop.xlane.xlu0 %3328 }
 0x3f0   : > { %v3377_v55 = vpop.xlane.xlu1 %3376 }
 0x3f2   : > { %v8636_v39 = vpop.xlane.xlu0 %3388 }
 0x3f4   : > { %v3319_v62 = vpop.xlane.xlu1 %3318 }
 0x3f6   : > { %v8638_v16 = vpop.xlane.xlu0 %3330 }
 0x3f8   : > { %v3379_v30 = vpop.xlane.xlu1 %3378 }
 0x3fa   : > { %v8640_v57 = vpop.xlane.xlu0 %3390 }
 0x3fc   : > { %v8642_v54 = vpop.xlane.xlu1 %3408 }
 0x3fe   : > { %v8644_v22 = vpop.xlane.xlu0 %3332 }
 0x400   : > { %v3321_v61 = vpop.xlane.xlu1 %3320 }
 0x402   : > { %v8646_v49 = vpop.xlane.xlu0 %3392 }
 0x404   : > { %v3381_v15 = vpop.xlane.xlu1 %3380 }
 0x406   : > { %v8648_v31 = vpop.xlane.xlu0 %3334 }
 0x408   : > { %v8650_v0 = vpop.xlane.xlu1 %3412 }
 0x40a   : > { %v8652_v41 = vpop.xlane.xlu0 %3394 }
 0x40b   : > { %9647 = vst [vmem:[#allocation37_spill] sm:$0xff] %v8652_v41 }
 0x40c   : > { %v8654_v25 = vpop.xlane.xlu1 %3414 }
 0x40e   : > { %v8656_v8 = vpop.xlane.xlu0 %3336 }
 0x40f   : > { %9648 = vst [vmem:[#allocation79_spill] sm:$0xff] %v8656_v8  ;;  %v4035_v8 = vrot.slane %v3379_v30, %v8288_v51 }
 0x410   : > { %v8658_v52 = vpop.xlane.xlu1 %3416 }
 0x411   : > { %9649 = vst [vmem:[#allocation72_spill] sm:$0xff] %v8658_v52 }
 0x412   : > { %v8660_v38 = vpop.xlane.xlu0 %3396 }
 0x413   : > { %9650 = vst [vmem:[#allocation29_spill] sm:$0xff] %v8660_v38 }
 0x414   : > { %v8662_v20 = vpop.xlane.xlu1 %3418 }
 0x415   : > { %9651 = vst [vmem:[#allocation20_spill] sm:$0xff] %v8662_v20 }
 0x416   : > { %v8664_v6 = vpop.xlane.xlu0 %3338 }
 0x417   : > { %9652 = vst [vmem:[#allocation86_spill] sm:$0xff] %v8664_v6 }
 0x418   : > { %v8666_v7 = vpop.xlane.xlu1 %3420 }
 0x419   : > { %9653 = vst [vmem:[#allocation36_spill] sm:$0xff] %v8666_v7 }
 0x41a   : > { %v8668_v23 = vpop.xlane.xlu0 %3398 }
 0x41b   : > { %9654 = vst [vmem:[#allocation26_spill] sm:$0xff] %v8668_v23  ;;  %v3868_v23 = vrot.slane %v3311_v11, %v8273_v26  ;;  %v4030_v11 = vrot.slane %v3377_v55, %v8278_v50 }
 0x41c   : > { %v8670_v43 = vpop.xlane.xlu1 %3422 }
 0x41d   : > { %9655 = vst [vmem:[#allocation39_spill] sm:$0xff] %v8670_v43 }
 0x41e   : > { %v8672_v19 = vpop.xlane.xlu0 %3430 }
 0x41f   : > { %9656 = vst [vmem:[#allocation88_spill] sm:$0xff] %v8672_v19  ;;  %v3872_v19 = vrot.slane %v8554_v34, %v8278_v50  ;;  %v3882_v34 = vrot.slane %v8568_v40, %v8300_v44 }
 0x420   : > { %v8674_v47 = vpop.xlane.xlu1 %3424 }
 0x421   : > { %9657 = vst [vmem:[#allocation41_spill] sm:$0xff] %v8674_v47 }
 0x422   : > { %v8676_v12 = vpop.xlane.xlu0 %3432 }
 0x423   : > { %9658 = vst [vmem:[#allocation28_spill] sm:$0xff] %v8676_v12  ;;  %v3873_v12 = vsel %vm3607_vm12, %v3872_v19, %v3868_v23  ;;  %v3892_v19 = vrot.slane %v3321_v61, %v8309_v58 }
 0x424   : > { %v8678_v2 = vpop.xlane.xlu1 %3426 }
 0x425   : > { %9659 = vst [vmem:[#allocation38_spill] sm:$0xff] %v8678_v2 }
 0x426   : > { %v3441_v52 = vpop.xlane.xlu0 %3440 }
 0x428   : > { %v8680_v38 = vpop.xlane.xlu1 %3428 }
 0x429   : > { %9660 = vst [vmem:[#allocation85_spill] sm:$0xff] %v8680_v38  ;;  %v3877_v38 = vrot.slane %v8562_v5, %v8288_v51  ;;  %v4026_v5 = vrot.slane %v8575_v53, %v8273_v26 }
 0x42a   : > { %v3443_v20 = vpop.xlane.xlu0 %3442 }
 0x42b   : > { %v4031_v55 = vsel %vm3607_vm12, %v4030_v11, %v4026_v5 }
 0x42c   : > { %v8682_v41 = vpop.xlane.xlu1 %3340  ;;  %v4036_v40 = vsel %vm3614_vm13, %v4035_v8, %v4031_v55 }
 0x42d   : > { %9661 = vst [vmem:[#allocation40_spill] sm:$0xff] %v8682_v41  ;;  %v3878_v41 = vsel %vm3614_vm13, %v3877_v38, %v3873_v12 }
 0x42e   : > { %v8684_v6 = vpop.xlane.xlu0 %3444  ;;  %v3883_v12 = vsel %vm3621_vm14, %v3882_v34, %v3878_v41 }
 0x430   : > { %v8687_v7 = vpop.xlane.xlu1 %3400 }
 0x431   : > { %9662 = vst [vmem:[#allocation31_spill] sm:$0xff] %v8687_v7  ;;  %v3887_v7 = vrot.slane %v3319_v62, %v8304_v35 }
 0x432   : > { %v8691_v47 = vpop.xlane.xlu0 %3446 }
 0x433   : > { %v3888_v62 = vsel %vm3628_vm15, %v3887_v7, %v3883_v12  ;;  %v3902_v7 = vrot.slane %v8602_v29, %v8333_v37  ;;  %v4055_v29 = vrot.slane %v8631_v46, %v8316_v32  ;;  %v4188_v12 = vrot.slane %v3441_v52, %v8278_v50 }
 0x434   : > { %v8694_v2 = vpop.xlane.xlu1 %3402  ;;  %v3893_v30 = vsel %vm3635_vm0, %v3892_v19, %v3888_v62  ;;  %v4050_v19 = vrot.slane %v8615_v13, %v8309_v58  ;;  %v3912_v62 = vrot.slane %v8634_v4, %v8342_v14  ;;  %v4193_v46 = vrot.slane %v3443_v20, %v8288_v51 }
 0x435   : > { %9663 = vst [vmem:[#allocation43_spill] sm:$0xff] %v8694_v2  ;;  %v4040_v2 = vrot.slane %v3381_v15, %v8300_v44  ;;  %v4045_v15 = vrot.slane %v8592_v59, %v8304_v35  ;;  %v3907_v59 = vrot.slane %v8622_v60, %v8336_v1  ;;  %v4060_v60 = vrot.slane %v8636_v39, %v8333_v37 }
 0x436   : > { %v8698_v43 = vpop.xlane.xlu0 %3448  ;;  %v4016_v52 = vrot.slane %v8534_v56, %v8396_v48  ;;  %v3917_v4 = vrot.slane %v8638_v16, %v8346_v28  ;;  %v3986_v20 = vrot.slane %v8558_v24, %v8336_v1 }
 0x437   : > { %v4041_v53 = vsel %vm3621_vm14, %v4040_v2, %v4036_v40 }
 0x438   : > { %v8707_v23 = vpop.xlane.xlu1 %3346  ;;  %v4046_v8 = vsel %vm3628_vm15, %v4045_v15, %v4041_v53 }
 0x439   : > { %9664 = vst [vmem:[#allocation50_spill] sm:$0xff] %v8707_v23  ;;  %v3897_v23 = vrot.slane %v8588_v63, %v8316_v32 }
 0x43a   : > { %v8713_v38 = vpop.xlane.xlu0 %3450 }
 0x43b   : > { %v3898_v34 = vsel %vm3642_vm1, %v3897_v23, %v3893_v30  ;;  %v4051_v23 = vsel %vm3635_vm0, %v4050_v19, %v4046_v8  ;;  %v4065_v19 = vrot.slane %v8640_v57, %v8336_v1  ;;  %v3922_v57 = vrot.slane %v8644_v22, %v8353_v33 }
 0x43c   : > { %v3439_v61 = vpop.xlane.xlu1 %3438  ;;  %v3903_v63 = vsel %vm3649_vm3, %v3902_v7, %v3898_v34  ;;  %v4056_v40 = vsel %vm3642_vm1, %v4055_v29, %v4051_v23  ;;  %v4109_v34 = vrot.slane %v8642_v54, %v8278_v50  ;;  %v3991_v54 = vrot.slane %v8572_v36, %v8342_v14 }
 0x43d   : > { %v4184_v2 = vrot.slane %v3439_v61, %v8273_v26  ;;  %v3908_v13 = vsel %vm3656_vm4, %v3907_v59, %v3903_v63  ;;  %v4061_v7 = vsel %vm3649_vm3, %v4060_v60, %v4056_v40  ;;  %v4198_v63 = vrot.slane %v8684_v6, %v8300_v44 }
 0x43e   : > { %v8724_v41 = vpop.xlane.xlu0 %3452  ;;  %v3913_v53 = vsel %vm3663_vm5, %v3912_v62, %v3908_v13  ;;  %v3996_v59 = vrot.slane %v8582_v18, %v8346_v28  ;;  %v4114_v29 = vrot.slane %v8585_v27, %v8288_v51  ;;  %v4066_v6 = vsel %vm3656_vm4, %v4065_v19, %v4061_v7  ;;  %v9684_v18 = vld [vmem:[#allocation18_spill] sm:$0xff] }
 0x43f   : > { %v4189_v30 = vsel %vm3607_vm12, %v4188_v12, %v4184_v2  ;;  %v4105_v2 = vrot.slane %v8579_v10, %v8273_v26  ;;  %v3918_v23 = vsel %vm3670_vm2, %v3917_v4, %v3913_v53  ;;  %v4070_v10 = vrot.slane %v8646_v49, %v8342_v14  ;;  %v9665_v4 = vld [vmem:[#allocation79_spill] sm:$0xff] }
 0x440   : > { %v8730_v11 = vpop.xlane.xlu1 %3460  ;;  %v4194_v8 = vsel %vm3614_vm13, %v4193_v46, %v4189_v30  ;;  %v4119_v40 = vrot.slane %v8650_v0, %v8300_v44  ;;  %v4203_v27 = vrot.slane %v8691_v47, %v8304_v35  ;;  %v4001_v22 = vrot.slane %v8590_v21, %v8353_v33 }
 0x441   : > { %v4199_v12 = vsel %vm3621_vm14, %v4198_v63, %v4194_v8  ;;  %v4110_v62 = vsel %vm3607_vm12, %v4109_v34, %v4105_v2  ;;  %v4006_v30 = vrot.slane %v8609_v45, %v8372_v3  ;;  %v3923_v60 = vsel %vm3677_vm6, %v3922_v57, %v3918_v23  ;;  %v9666_v8 = vld [vmem:[#allocation37_spill] sm:$0xff]  ;;  %v9667_v63 = vld [vmem:[#allocation72_spill] sm:$0xff] }
 0x442   : > { %v8736_v5 = vpop.xlane.xlu0 %3454  ;;  %v4124_v46 = vrot.slane %v8654_v25, %v8304_v35  ;;  %v3927_v49 = vrot.slane %v8648_v31, %v8372_v3  ;;  %v4071_v0 = vsel %vm3663_vm5, %v4070_v10, %v4066_v6  ;;  %v3932_v47 = vrot.slane %v9665_v4, %v8384_v17  ;;  %v9668_v31 = vld [vmem:[#allocation27_spill] sm:$0xff]  ;;  %v9670_v4 = vld [vmem:[#allocation36_spill] sm:$0xff] }
 0x443   : > { %v4204_v34 = vsel %vm3628_vm15, %v4203_v27, %v4199_v12  ;;  %v4115_v7 = vsel %vm3614_vm13, %v4114_v29, %v4110_v62  ;;  %v4075_v19 = vrot.slane %v9666_v8, %v8346_v28  ;;  %v4129_v2 = vrot.slane %v9667_v63, %v8309_v58  ;;  %v9669_v12 = vld [vmem:[#allocation20_spill] sm:$0xff] }
 0x444   : > { %v8744_v55 = vpop.xlane.xlu1 %3342  ;;  %v4208_v25 = vrot.slane %v8698_v43, %v8309_v58  ;;  %v4011_v57 = vrot.slane %v9668_v31, %v8384_v17  ;;  %v3928_v6 = vsel %vm3684_vm7, %v3927_v49, %v3923_v60  ;;  %v4120_v10 = vsel %vm3621_vm14, %v4119_v40, %v4115_v7 }
 0x445   : > { %v4134_v29 = vrot.slane %v9669_v12, %v8316_v32  ;;  %v4076_v62 = vsel %vm3670_vm2, %v4075_v19, %v4071_v0  ;;  %v4125_v27 = vsel %vm3628_vm15, %v4124_v46, %v4120_v10  ;;  %v4139_v8 = vrot.slane %v9670_v4, %v8333_v37  ;;  %v9671_v46 = vld [vmem:[#allocation29_spill] sm:$0xff]  ;;  %v9672_v19 = vld [vmem:[#allocation39_spill] sm:$0xff] }
 0x446   : > { %v8751_v61 = vpop.xlane.xlu0 %3456  ;;  %v4209_v43 = vsel %vm3635_vm0, %v4208_v25, %v4204_v34  ;;  %v3933_v39 = vsel %vm3691_vm8, %v3932_v47, %v3928_v6  ;;  %v4213_v60 = vrot.slane %v8713_v38, %v8316_v32  ;;  %v3947_v40 = vrot.slane %v8744_v55, %v8273_v26  ;;  %v9673_v34 = vld [vmem:[#allocation50_spill] sm:$0xff] }
 0x447   : > { %v4130_v0 = vsel %vm3635_vm0, %v4129_v2, %v4125_v27  ;;  %v4080_v7 = vrot.slane %v9671_v46, %v8353_v33  ;;  %v4144_v10 = vrot.slane %v9672_v19, %v8336_v1  ;;  %v3956_v25 = vrot.slane %v9673_v34, %v8288_v51  ;;  %v9674_v55 = vld [vmem:[#allocation86_spill] sm:$0xff]  ;;  %v9678_v19 = vld [vmem:[#allocation85_spill] sm:$0xff] }
 0x448   : > { %v8759_v15 = vpop.xlane.xlu1 %3354  ;;  %v4135_v38 = vsel %vm3642_vm1, %v4134_v29, %v4130_v0  ;;  %v4214_v6 = vsel %vm3642_vm1, %v4213_v60, %v4209_v43  ;;  %v3937_v2 = vrot.slane %v9674_v55, %v8396_v48  ;;  %v4218_v27 = vrot.slane %v8724_v41, %v8333_v37  ;;  %v9675_v29 = vld [vmem:[#allocation26_spill] sm:$0xff]  ;;  %v9676_v43 = vld [vmem:[#allocation41_spill] sm:$0xff] }
 0x449   : > { %v4140_v12 = vsel %vm3649_vm3, %v4139_v8, %v4135_v38  ;;  %v9677_v8 = vld [vmem:[#allocation38_spill] sm:$0xff]  ;;  %v4159_v34 = vrot.slane %v9678_v19, %v8353_v33  ;;  %v9679_v38 = vld [vmem:[#allocation40_spill] sm:$0xff] }
 0x44a   : > { %v8775_v16 = vpop.xlane.xlu0 %3458  ;;  %v4219_v41 = vsel %vm3649_vm3, %v4218_v27, %v4214_v6  ;;  %v4228_v6 = vrot.slane %v8751_v61, %v8342_v14  ;;  %v3938_v61 = vsel %vm3698_vm9, %v3937_v2, %v3933_v39 }
 0x44c   : > { %v8790_v13 = vpop.xlane.xlu1 %3356 }
 0x44e   : > { %v3349_v53 = vpop.xlane.xlu0 %3348 }
 0x44f   : > { %v3961_v26 = vrot.slane %v3349_v53, %v8300_v44  ;;  %v4149_v44 = vrot.slane %v9676_v43, %v8342_v14  ;;  %v4238_v14 = vrot.slane %v8730_v11, %v8353_v33 }
 0x450   : > { %v3353_v23 = vpop.xlane.xlu1 %3352 }
 0x451   : > { %v3971_v0 = vrot.slane %v3353_v23, %v8309_v58  ;;  %v3981_v58 = vrot.slane %v8790_v13, %v8333_v37 }
 0x452   : > { %v3345_v63 = vpop.xlane.xlu0 %3344 }
 0x453   : > { %v3951_v49 = vrot.slane %v3345_v63, %v8278_v50  ;;  %v4085_v63 = vrot.slane %v9675_v29, %v8372_v3 }
 0x454   : > { %v8843_v47 = vpop.xlane.xlu1 %3462 }
 0x455   : > { %v3952_v50 = vsel %vm3607_vm12, %v3951_v49, %v3947_v40  ;;  %v4145_v40 = vsel %vm3656_vm4, %v4144_v10, %v4140_v12  ;;  %v4154_v49 = vrot.slane %v9677_v8, %v8346_v28  ;;  %vm4266_vm12 = vcmask 1044484  }
 0x456   : > { %v3957_v51 = vsel %vm3614_vm13, %v3956_v25, %v3952_v50  ;;  %v3351_v4 = vpop.xlane.xlu0 %3350  ;;  %v4223_v25 = vrot.slane %v8736_v5, %v8336_v1  ;;  %v4150_v5 = vsel %vm3663_vm5, %v4149_v44, %v4145_v40  ;;  %vm4268_vm13 = vcmask 1045509   ;;  %v9683_v40 = vld [vmem:[#allocation43_spill] sm:$0xff] }
 0x457   : > { %v3962_v53 = vsel %vm3621_vm14, %v3961_v26, %v3957_v51  ;;  %v3966_v60 = vrot.slane %v3351_v4, %v8304_v35  ;;  %v3976_v35 = vrot.slane %v8759_v15, %v8316_v32  ;;  %v3942_v26 = vrot.slane %v9679_v38, %v8408_v42  ;;  %v9680_v4 = vld [vmem:[#allocation88_spill] sm:$0xff] }
 0x458   : > { %v8866_v46 = vpop.xlane.xlu1 %3434  ;;  %v4224_v55 = vsel %vm3656_vm4, %v4223_v25, %v4219_v41  ;;  %v4233_v32 = vrot.slane %v8775_v16, %v8346_v28  ;;  %v4081_v12 = vsel %vm3677_vm6, %v4080_v7, %v4076_v62  ;;  %v4155_v37 = vsel %vm3670_vm2, %v4154_v49, %v4150_v5  ;;  %v9681_v62 = vld [vmem:[#allocation31_spill] sm:$0xff] }
 0x459   : > { %v3967_v10 = vsel %vm3628_vm15, %v3966_v60, %v3962_v53  ;;  %v4086_v51 = vsel %vm3684_vm7, %v4085_v63, %v4081_v12  ;;  %v4164_v29 = vrot.slane %v9680_v4, %v8372_v3  ;;  %v4160_v43 = vsel %vm3677_vm6, %v4159_v34, %v4155_v37  ;;  %v9682_v53 = vld [vmem:[#allocation28_spill] sm:$0xff] }
 0x45a   : > { %v3972_v23 = vsel %vm3635_vm0, %v3971_v0, %v3967_v10  ;;  %v3405_v50 = vpop.xlane.xlu0 %3404  ;;  %vm4270_vm14 = vcmask 1046534   ;;  %v3943_v39 = vsel %vm3705_vm10, %v3942_v26, %v3938_v61  ;;  %v4090_v7 = vrot.slane %v9681_v62, %v8384_v17  ;;  %v9686_v26 = vld [vmem:[#allocation10_spill] sm:$0xff]  ;;  %v9691_v62 = vld [vmem:[#allocation8_spill] sm:$0xff] }
 0x45b   : > { %v3977_v15 = vsel %vm3642_vm1, %v3976_v35, %v3972_v23  ;;  %v4229_v2 = vsel %vm3663_vm5, %v4228_v6, %v4224_v55  ;;  %v4169_v60 = vrot.slane %v9682_v53, %v8384_v17  ;;  %v4095_v8 = vrot.slane %v9683_v40, %v8396_v48 }
 0x45c   : > { %v3982_v13 = vsel %vm3649_vm3, %v3981_v58, %v3977_v15  ;;  %v3437_v27 = vpop.xlane.xlu1 %3436  ;;  %v4234_v1 = vsel %vm3670_vm2, %v4233_v32, %v4229_v2  ;;  %v4165_v28 = vsel %vm3684_vm7, %v4164_v29, %v4160_v43  ;;  %v4091_v41 = vsel %vm3691_vm8, %v4090_v7, %v4086_v51  ;;  %v9689_v29 = vld [vmem:[#allocation9_spill] sm:$0xff] }
 0x45d   : > { %v3987_v16 = vsel %vm3656_vm4, %v3986_v20, %v3982_v13  ;;  %v4243_v20 = vrot.slane %v8843_v47, %v8372_v3  ;;  %v4100_v47 = vrot.slane %v3405_v50, %v8408_v42  ;;  %v4239_v0 = vsel %vm3677_vm6, %v4238_v14, %v4234_v1  ;;  %v6215_v14 = vld [vmem:[%s6599_s26 + $0x80] sm:$0xff]  }
 0x45e   : > { %v3992_v63 = vsel %vm3663_vm5, %v3991_v54, %v3987_v16  ;;  %v3465_v44 = vpop.xlane.xlu0 %3464  ;;  %v4174_v33 = vrot.slane %v8866_v46, %v8396_v48  ;;  %v4179_v34 = vrot.slane %v3437_v27, %v8408_v42  ;;  %v4170_v35 = vsel %vm3691_vm8, %v4169_v60, %v4165_v28  ;;  %v9690_v16 = vld [vmem:[#allocation89_spill] sm:$0xff]  ;;  %v6216_v28 = vld [vmem:[%s6599_s26] sm:$0xff]  }
 0x45f   : > { %v3997_v24 = vsel %vm3670_vm2, %v3996_v59, %v3992_v63  ;;  %v4248_v36 = vrot.slane %v3465_v44, %v8384_v17  ;;  %v4265_v59 = vsel %vm4264_vm11, %v3943_v39, %v9684_v18  ;;  %v4244_v19 = vsel %vm3684_vm7, %v4243_v20, %v4239_v0 }
 0x460   : > { %v4002_v54 = vsel %vm3677_vm6, %v4001_v22, %v3997_v24  ;;  %v3469_v49 = vpop.xlane.xlu1 %3468  ;;  %v9685_v17 = vrot.slane %v8547_v9, %v8408_v42  ;;  %v4175_v56 = vsel %vm3698_vm9, %v4174_v33, %v4170_v35  ;;  %v541_v6 = vcvt.s32.f32 %v9686_v26 }
 0x461   : > { %v4007_v11 = vsel %vm3684_vm7, %v4006_v30, %v4002_v54  ;;  %v4096_v30 = vsel %vm3698_vm9, %v4095_v8, %v4091_v41  ;;  %v4249_v46 = vsel %vm3691_vm8, %v4248_v36, %v4244_v19  ;;  %v4258_v25 = vrot.slane %v3469_v49, %v8408_v42 }
 0x462   : > { %v3467_v21 = vpop.xlane.xlu0 %3466  ;;  %v4012_v22 = vsel %vm3691_vm8, %v4011_v57, %v4007_v11  ;;  %v4101_v57 = vsel %vm3705_vm10, %v4100_v47, %v4096_v30  ;;  %v4180_v38 = vsel %vm3705_vm10, %v4179_v34, %v4175_v56  ;;  %vm4272_vm15 = vcmask 1047559   ;;  %v6219_v56 = vld [vmem:[%s6599_s26 + $0x108] sm:$0xff]  }
 0x463   : > { %v4253_v3 = vrot.slane %v3467_v21, %v8396_v48  ;;  %v4017_v45 = vsel %vm3698_vm9, %v4016_v52, %v4012_v22  ;;  %v8986_v7 = vsub.s32 2, %v9691_v62  ;;  %v4506_v63 = vsub.s32 3, %v9691_v62  ;;  %v6217_v21 = vld [vmem:[%s6599_s26 + $0x88] sm:$0xff]  }
 0x464   : > { %v4022_v31 = vsel %vm3705_vm10, %v9685_v17, %v4017_v45  ;;  %vm9692_vm1 = vcmask 523264   ;;  %v6218_v45 = vld [vmem:[%s6599_s26 + $0x8] sm:$0xff]  }
 0x465   : > { %v4254_v10 = vsel %vm3698_vm9, %v4253_v3, %v4249_v46  ;;  %v4267_v48 = vsel %vm4266_vm12, %v4022_v31, %v4265_v59  ;;  %vm9693_vm3 = vmmov %vm9692_vm1 }
 0x466   : > { %v4269_v52 = vsel %vm4268_vm13, %v4101_v57, %v4267_v48  ;;  %v4259_v42 = vsel %vm3705_vm10, %v4258_v25, %v4254_v10  ;;  %vm9694_vm4 = vmmov %vm9692_vm1 }
 0x467   : > { %v4271_v9 = vsel %vm4270_vm14, %v4180_v38, %v4269_v52  ;;  %vm9695_vm5 = vmmov %vm9692_vm1 }
 0x468   : > { %v4273_v50 = vsel %vm4272_vm15, %v4259_v42, %v4271_v9  ;;  %vm9696_vm2 = vmmov %vm9692_vm1  ;;  %v6220_v42 = vld [vmem:[%s6599_s26 + $0x100] sm:$0xff]  }
 0x469   : > { %vm9697_vm6 = vmmov %vm9692_vm1 }
 0x46a   : > { %v545_v58 = vpop.permute.xlu0 %544  ;;  %vm9698_vm7 = vmmov %vm9692_vm1 }
 0x46b   : > { %vm8965_vm0 = vcmp.lt.f32.partialorder %v541_v6, %v545_v58  ;;  %vm9699_vm8 = vmmov %vm9692_vm1 }
 0x46c   : > { %v4275_v5 = vsel %vm8965_vm0, %v4273_v50, -1e+30  ;;  %vm9700_vm9 = vmmov %vm9692_vm1 }
 0x46d   : > { %4276 = vmax.xlane.f32.xlu1 %v4275_v5  ;;  %vm9701_vm10 = vmmov %vm9692_vm1 }
 0x4fa   : > { %v4277_v55 = vpop.xlane.xlu1 %4276 }
 0x4fb   : > { %v4278_v32 = vsub.f32 %v4275_v5, %v4277_v55 }
 0x4fd   : > { %v4279_v15 = vmul.f32 1.442695, %v4278_v32 }
 0x4ff   : > { %6210 = vpow2.f32 %v4279_v15 }
 0x509   : > { %v6211_v12 = vpop.eup %6210 }
 0x50a   : > { %4281 = vadd.xlane.f32.xlu1 %v6211_v12 }
 0x597   : > { %v4282_v61 = vpop.xlane.xlu1 %4281 }
 0x598   : > { %6212 = vrcp.f32 %v4282_v61 }
 0x5a2   : > { %v6213_v37 = vpop.eup %6212 }
 0x5a3   : > { %v4285_v13 = vmul.f32 %v6213_v37, %v6211_v12 }
 0x5a5   : > { %v4286_v27 = vsel %vm8965_vm0, %v4285_v13, 0.0  ;;  %v6221_v13 = vld [vmem:[%s6599_s26 + $0x10] sm:$0xff]   ;;  %vm9702_vm0 = vmmov %vm9692_vm1 }
 0x5a6   : > { %v4287_v51 = vpack.c.bf16 %v4286_v27, %v4286_v27  ;;  %5227 = vst [vmem:[%s8980_s20] sm:$0xff] %v4286_v27 }
 0x5a8   : > { %v4289_v4 = vpack.i.b16 %v4287_v51, %v4287_v51  ;;  %v4326_v53 = vshrl.u32 %v4287_v51, 16 }
 0x5aa   : > { %v4294_v43 = vrot.slane %v4289_v4, %v9689_v29  ;;  %v4367_v39 = vrot.slane %v4289_v4, %v9690_v16  ;;  %v4437_v2 = vrot.slane %v4289_v4, %v8986_v7  ;;  %v8990_v44 = vrot.slane %v4289_v4, %v4506_v63 }
 0x5ab   : > { %v4327_v60 = vpack.i.b16 %v4326_v53, %v4326_v53 }
 0x5ac   : > { %4369 = vbcast.lane.c.b16.xlu0 %v4367_v39, 256  ;;  %4296 = vbcast.lane.c.b16.xlu1 %v4294_v43, 256 }
 0x5ad   : > { %v4402_v1 = vrot.slane %v4327_v60, %v9690_v16  ;;  %v4332_v24 = vrot.slane %v4327_v60, %v9689_v29  ;;  %v4472_v20 = vrot.slane %v4327_v60, %v8986_v7  ;;  %v9002_v40 = vrot.slane %v4327_v60, %v4506_v63 }
 0x5b0   : > { %4373 = vbcast.lane.c.b16.xlu0 %v4367_v39, 272  ;;  %4300 = vbcast.lane.c.b16.xlu1 %v4294_v43, 272 }
 0x5b4   : > { %4443 = vbcast.lane.c.b16.xlu0 %v4437_v2, 272  ;;  %4439 = vbcast.lane.c.b16.xlu1 %v4437_v2, 256 }
 0x5b8   : > { %4304 = vbcast.lane.c.b16.xlu0 %v4294_v43, 288  ;;  %4509 = vbcast.lane.c.b16.xlu1 %v8990_v44, 256 }
 0x5bc   : > { %4377 = vbcast.lane.c.b16.xlu0 %v4367_v39, 288  ;;  %4513 = vbcast.lane.c.b16.xlu1 %v8990_v44, 272 }
 0x5c0   : > { %4447 = vbcast.lane.c.b16.xlu0 %v4437_v2, 288  ;;  %4308 = vbcast.lane.c.b16.xlu1 %v4294_v43, 304 }
 0x5c4   : > { %4381 = vbcast.lane.c.b16.xlu0 %v4367_v39, 304  ;;  %4517 = vbcast.lane.c.b16.xlu1 %v8990_v44, 288 }
 0x5c8   : > { %4451 = vbcast.lane.c.b16.xlu0 %v4437_v2, 304  ;;  %4312 = vbcast.lane.c.b16.xlu1 %v4294_v43, 320 }
 0x5cc   : > { %4385 = vbcast.lane.c.b16.xlu0 %v4367_v39, 320  ;;  %4521 = vbcast.lane.c.b16.xlu1 %v8990_v44, 304 }
 0x5d0   : > { %4455 = vbcast.lane.c.b16.xlu0 %v4437_v2, 320  ;;  %4316 = vbcast.lane.c.b16.xlu1 %v4294_v43, 336 }
 0x5d4   : > { %4389 = vbcast.lane.c.b16.xlu0 %v4367_v39, 336  ;;  %4525 = vbcast.lane.c.b16.xlu1 %v8990_v44, 320 }
 0x5d8   : > { %4459 = vbcast.lane.c.b16.xlu0 %v4437_v2, 336  ;;  %4320 = vbcast.lane.c.b16.xlu1 %v4294_v43, 352 }
 0x5dc   : > { %4393 = vbcast.lane.c.b16.xlu0 %v4367_v39, 352  ;;  %4529 = vbcast.lane.c.b16.xlu1 %v8990_v44, 336 }
 0x5e0   : > { %4463 = vbcast.lane.c.b16.xlu0 %v4437_v2, 352  ;;  %4324 = vbcast.lane.c.b16.xlu1 %v4294_v43, 368  ;;  %v6222_v43 = vld [vmem:[%s6599_s26 + $0x180] sm:$0xff]  }
 0x5e4   : > { %4397 = vbcast.lane.c.b16.xlu0 %v4367_v39, 368  ;;  %4533 = vbcast.lane.c.b16.xlu1 %v8990_v44, 352 }
 0x5e8   : > { %4467 = vbcast.lane.c.b16.xlu0 %v4437_v2, 368  ;;  %4404 = vbcast.lane.c.b16.xlu1 %v4402_v1, 256 }
 0x5ec   : > { %4334 = vbcast.lane.c.b16.xlu0 %v4332_v24, 256  ;;  %4474 = vbcast.lane.c.b16.xlu1 %v4472_v20, 256 }
 0x5f0   : > { %4338 = vbcast.lane.c.b16.xlu0 %v4332_v24, 272  ;;  %4342 = vbcast.lane.c.b16.xlu1 %v4332_v24, 288 }
 0x5f4   : > { %4408 = vbcast.lane.c.b16.xlu0 %v4402_v1, 272  ;;  %4544 = vbcast.lane.c.b16.xlu1 %v9002_v40, 256 }
 0x5f8   : > { %4478 = vbcast.lane.c.b16.xlu0 %v4472_v20, 272  ;;  %4548 = vbcast.lane.c.b16.xlu1 %v9002_v40, 272 }
 0x5fc   : > { %4412 = vbcast.lane.c.b16.xlu0 %v4402_v1, 288  ;;  %4482 = vbcast.lane.c.b16.xlu1 %v4472_v20, 288 }
 0x600   : > { %4346 = vbcast.lane.c.b16.xlu0 %v4332_v24, 304  ;;  %4552 = vbcast.lane.c.b16.xlu1 %v9002_v40, 288 }
 0x604   : > { %4416 = vbcast.lane.c.b16.xlu0 %v4402_v1, 304  ;;  %4486 = vbcast.lane.c.b16.xlu1 %v4472_v20, 304 }
 0x608   : > { %4350 = vbcast.lane.c.b16.xlu0 %v4332_v24, 320  ;;  %4556 = vbcast.lane.c.b16.xlu1 %v9002_v40, 304 }
 0x60c   : > { %4420 = vbcast.lane.c.b16.xlu0 %v4402_v1, 320  ;;  %4490 = vbcast.lane.c.b16.xlu1 %v4472_v20, 320 }
 0x610   : > { %4354 = vbcast.lane.c.b16.xlu0 %v4332_v24, 336  ;;  %4560 = vbcast.lane.c.b16.xlu1 %v9002_v40, 320 }
 0x614   : > { %4424 = vbcast.lane.c.b16.xlu0 %v4402_v1, 336  ;;  %4494 = vbcast.lane.c.b16.xlu1 %v4472_v20, 336 }
 0x618   : > { %4358 = vbcast.lane.c.b16.xlu0 %v4332_v24, 352  ;;  %4564 = vbcast.lane.c.b16.xlu1 %v9002_v40, 336 }
 0x61c   : > { %4428 = vbcast.lane.c.b16.xlu0 %v4402_v1, 352  ;;  %4498 = vbcast.lane.c.b16.xlu1 %v4472_v20, 352 }
 0x61e   : > { %v4370_v8 = vpop.permute.xlu0 %4369  ;;  %v4297_v54 = vpop.permute.xlu1 %4296 }
 0x61f   : > { %v4654_v36 = vmul.bf16 %v6215_v14, %v4370_v8  ;;  %v4638_v18 = vmul.bf16 %v6216_v28, %v4297_v54 }
 0x620   : > { %4362 = vbcast.lane.c.b16.xlu0 %v4332_v24, 368  ;;  %4568 = vbcast.lane.c.b16.xlu1 %v9002_v40, 352 }
 0x621   : > { %v4734_v59 = vunpack.c.l.bf16 %v4654_v36  ;;  %v4735_v47 = vunpack.c.h.bf16 %v4654_v36  ;;  %v4702_v49 = vunpack.c.l.bf16 %v4638_v18  ;;  %v4703_v11 = vunpack.c.h.bf16 %v4638_v18  ;;  %v6224_v18 = vld [vmem:[%s6599_s26 + $0x188] sm:$0xff]  }
 0x622   : > { %v4374_v41 = vpop.permute.xlu0 %4373  ;;  %v4301_v19 = vpop.permute.xlu1 %4300 }
 0x623   : > { %v4904_v0 = vsel %vm9692_vm1, %v4734_v59, 0.0  ;;  %v4905_v33 = vsel %vm9693_vm3, %v4735_v47, 0.0  ;;  %v4655_v22 = vmul.bf16 %v6217_v21, %v4374_v41  ;;  %v4830_v34 = vsel %vm9694_vm4, %v4702_v49, 0.0  ;;  %vm9703_vm1 = vmmov %vm9702_vm0  ;;  %v5126_v47 = vld [vmem:[%s9374_s5] sm:$0xff]  ;;  %v5127_v49 = vld [vmem:[%s9374_s5 + $0x8] sm:$0xff] }
 0x624   : > { %v4831_v3 = vsel %vm9695_vm5, %v4703_v11, 0.0  ;;  %v4639_v30 = vmul.bf16 %v6218_v45, %v4301_v19  ;;  %4432 = vbcast.lane.c.b16.xlu0 %v4402_v1, 368  ;;  %4502 = vbcast.lane.c.b16.xlu1 %v4472_v20, 368  ;;  %v4906_v17 = vadd.f32 %v4905_v33, %v4904_v0  ;;  %vm9704_vm3 = vmmov %vm9702_vm0  ;;  %v5128_v21 = vld [vmem:[%s9374_s5 + $0x10] sm:$0xff] }
 0x625   : > { %v4736_v46 = vunpack.c.l.bf16 %v4655_v22  ;;  %v4737_v25 = vunpack.c.h.bf16 %v4655_v22  ;;  %v4832_v10 = vadd.f32 %v4831_v3, %v4830_v34  ;;  %vm9705_vm4 = vmmov %vm9702_vm0  ;;  %v5129_v22 = vld [vmem:[%s9374_s5 + $0x18] sm:$0xff] }
 0x626   : > { %v4704_v31 = vunpack.c.l.bf16 %v4639_v30  ;;  %v4705_v57 = vunpack.c.h.bf16 %v4639_v30  ;;  %v4444_v35 = vpop.permute.xlu0 %4443  ;;  %v4440_v38 = vpop.permute.xlu1 %4439  ;;  %vm9706_vm5 = vmmov %vm9702_vm0  ;;  %v5802_v30 = vpack.c.bf16 %v5127_v49, %v5126_v47  ;;  %v6230_v47 = vld [vmem:[%s6599_s26 + $0x20] sm:$0xff]  }
 0x627   : > { %v4907_v48 = vsel %vm9696_vm2, %v4736_v46, 0.0  ;;  %v4671_v52 = vmul.bf16 %v6219_v56, %v4444_v35  ;;  %v4670_v9 = vmul.bf16 %v6220_v42, %v4440_v38  ;;  %v4909_v58 = vsel %vm9698_vm7, %v4737_v25, 0.0  ;;  %vm9707_vm2 = vmmov %vm9702_vm0 }
 0x628   : > { %v4908_v26 = vadd.f32 %v4907_v48, %v4906_v17  ;;  %v4833_v6 = vsel %vm9697_vm6, %v4704_v31, 0.0  ;;  %4537 = vbcast.lane.c.b16.xlu0 %v8990_v44, 368  ;;  %v4835_v50 = vsel %vm9699_vm8, %v4705_v57, 0.0  ;;  %4572 = vbcast.lane.c.b16.xlu1 %v9002_v40, 368  ;;  %v6223_v40 = vld [vmem:[%s6599_s26 + $0x90] sm:$0xff]   ;;  %vm9708_vm6 = vmmov %vm9702_vm0  ;;  %v6226_v48 = vld [vmem:[%s6599_s26 + $0x18] sm:$0xff]  }
 0x629   : > { %v4834_v23 = vadd.f32 %v4833_v6, %v4832_v10  ;;  %v4768_v55 = vunpack.c.l.bf16 %v4671_v52  ;;  %v4766_v32 = vunpack.c.l.bf16 %v4670_v9  ;;  %v4767_v15 = vunpack.c.h.bf16 %v4670_v9  ;;  %v6225_v17 = vld [vmem:[%s6599_s26 + $0x110] sm:$0xff]   ;;  %vm9709_vm7 = vmmov %vm9702_vm0  ;;  %5803 = vmatpush3.bf16.msra.mxu1 %v5802_v30 }
 0x62a   : > { %v4910_v5 = vadd.f32 %v4909_v58, %v4908_v26  ;;  %v4305_v12 = vpop.permute.xlu0 %4304  ;;  %v4769_v37 = vunpack.c.h.bf16 %v4671_v52  ;;  %v4510_v51 = vpop.permute.xlu1 %4509  ;;  %v5805_v52 = vpack.c.bf16 %v5129_v22, %v5128_v21  ;;  %vm9710_vm8 = vmmov %vm9702_vm0  ;;  %v9711_v9 = vmov 0.0|0.0   ;;  %v5130_v58 = vld [vmem:[%s9374_s5 + $0x20] sm:$0xff] }
 0x62b   : > { %v4836_v61 = vadd.f32 %v4835_v50, %v4834_v23  ;;  %v4640_v27 = vmul.bf16 %v6221_v13, %v4305_v12  ;;  %v4978_v4 = vsel %vm9700_vm9, %v4766_v32, 0.0  ;;  %v4979_v29 = vsel %vm9701_vm10, %v4767_v15, 0.0  ;;  %5804 = vmatprep.subr.bf16.mxu1 %v9711_v9  ;;  %v5131_v23 = vld [vmem:[%s9374_s5 + $0x28] sm:$0xff]  ;;  %vm9712_vm9 = vmmov %vm9702_vm0 }
 0x62c   : > { %v4686_v16 = vmul.bf16 %v6222_v43, %v4510_v51  ;;  %v4980_v39 = vadd.f32 %v4979_v29, %v4978_v4  ;;  %v4981_v63 = vsel %vm9702_vm0, %v4768_v55, 0.0  ;;  %v4983_v1 = vsel %vm9703_vm1, %v4769_v37, 0.0  ;;  %vm9713_vm10 = vmmov %vm9702_vm0  ;;  %v6227_v37 = vld [vmem:[%s6599_s26 + $0x98] sm:$0xff]   ;;  %v6228_v29 = vld [vmem:[%s6599_s26 + $0x190] sm:$0xff]  }
 0x62d   : > { %v4706_v62 = vunpack.c.l.bf16 %v4640_v27  ;;  %v4707_v2 = vunpack.c.h.bf16 %v4640_v27  ;;  %5806 = vmatpush3.bf16.msra.mxu1 %v5805_v52  ;;  %vm9714_vm1 = vmmov %vm9702_vm0 }
 0x62e   : > { %v4798_v44 = vunpack.c.l.bf16 %v4686_v16  ;;  %v4799_v53 = vunpack.c.h.bf16 %v4686_v16  ;;  %v4378_v60 = vpop.permute.xlu0 %4377  ;;  %v4982_v24 = vadd.f32 %v4981_v63, %v4980_v39  ;;  %v4514_v14 = vpop.permute.xlu1 %4513  ;;  %v5808_v16 = vpack.c.bf16 %v5131_v23, %v5130_v58  ;;  %5807 = vmatprep.subr.bf16.mxu1 %v9711_v9 }
 0x62f   : > { %v4837_v20 = vsel %vm9704_vm3, %v4706_v62, 0.0  ;;  %v4656_v8 = vmul.bf16 %v6223_v40, %v4378_v60  ;;  %v4687_v59 = vmul.bf16 %v6224_v18, %v4514_v14  ;;  %v4839_v11 = vsel %vm9707_vm2, %v4707_v2, 0.0  ;;  %vm9715_vm3 = vmmov %vm9702_vm0 }
 0x630   : > { %v4838_v36 = vadd.f32 %v4837_v20, %v4836_v61  ;;  %v5052_v54 = vsel %vm9705_vm4, %v4798_v44, 0.0  ;;  %v5053_v28 = vsel %vm9706_vm5, %v4799_v53, 0.0  ;;  %v4984_v33 = vadd.f32 %v4983_v1, %v4982_v24  ;;  %v5132_v44 = vld [vmem:[%s9374_s5 + $0x30] sm:$0xff]  ;;  %v5133_v53 = vld [vmem:[%s9374_s5 + $0x38] sm:$0xff]  ;;  %vm9716_vm4 = vmmov %vm9702_vm0 }
 0x631   : > { %v4738_v41 = vunpack.c.l.bf16 %v4656_v8  ;;  %v4739_v0 = vunpack.c.h.bf16 %v4656_v8  ;;  %v4800_v34 = vunpack.c.l.bf16 %v4687_v59  ;;  %v4801_v3 = vunpack.c.h.bf16 %v4687_v59  ;;  %vm9717_vm5 = vmmov %vm9702_vm0  ;;  %5809 = vmatpush3.bf16.msra.mxu1 %v5808_v16 }
 0x632   : > { %v4840_v19 = vadd.f32 %v4839_v11, %v4838_v36  ;;  %v4448_v45 = vpop.permute.xlu0 %4447  ;;  %v5054_v46 = vadd.f32 %v5053_v28, %v5052_v54  ;;  %v4309_v57 = vpop.permute.xlu1 %4308  ;;  %v6229_v36 = vld [vmem:[%s6599_s26 + $0x118] sm:$0xff]   ;;  %v5811_v11 = vpack.c.bf16 %v5133_v53, %v5132_v44  ;;  %vm9718_vm2 = vmmov %vm9702_vm0  ;;  %5810 = vmatprep.subr.bf16.mxu1 %v9711_v9  ;;  %v6235_v53 = vld [vmem:[%s6599_s26 + $0xa8] sm:$0xff]  }
 0x633   : > { %v4911_v25 = vsel %vm9708_vm6, %v4738_v41, 0.0  ;;  %v4672_v31 = vmul.bf16 %v6225_v17, %v4448_v45  ;;  %v5055_v10 = vsel %vm9709_vm7, %v4800_v34, 0.0  ;;  %v4641_v56 = vmul.bf16 %v6226_v48, %v4309_v57  ;;  %vm9719_vm6 = vmmov %vm9702_vm0 }
 0x634   : > { %v4912_v35 = vadd.f32 %v4911_v25, %v4910_v5  ;;  %v4913_v38 = vsel %vm9710_vm8, %v4739_v0, 0.0  ;;  %v5056_v26 = vadd.f32 %v5055_v10, %v5054_v46  ;;  %v5057_v5 = vsel %vm9712_vm9, %v4801_v3, 0.0  ;;  %vm9720_vm7 = vmmov %vm9702_vm0  ;;  %v6231_v25 = vld [vmem:[%s6599_s26 + $0xa0] sm:$0xff]   ;;  %v6232_v10 = vld [vmem:[%s6599_s26 + $0x198] sm:$0xff]  }
 0x635   : > { %v4770_v6 = vunpack.c.l.bf16 %v4672_v31  ;;  %v4771_v42 = vunpack.c.h.bf16 %v4672_v31  ;;  %v4708_v55 = vunpack.c.l.bf16 %v4641_v56  ;;  %v4709_v32 = vunpack.c.h.bf16 %v4641_v56  ;;  %vm9721_vm8 = vmmov %vm9702_vm0  ;;  %5812 = vmatpush3.bf16.msra.mxu1 %v5811_v11 }
 0x636   : > { %v4914_v50 = vadd.f32 %v4913_v38, %v4912_v35  ;;  %v4382_v15 = vpop.permute.xlu0 %4381  ;;  %v5058_v12 = vadd.f32 %v5057_v5, %v5056_v26  ;;  %v4518_v27 = vpop.permute.xlu1 %4517  ;;  %vm9722_vm9 = vmmov %vm9702_vm0 }
 0x637   : > { %v4985_v61 = vsel %vm9713_vm10, %v4770_v6, 0.0  ;;  %v4657_v13 = vmul.bf16 %v6227_v37, %v4382_v15  ;;  %v4841_v4 = vsel %vm9702_vm0, %v4708_v55, 0.0  ;;  %v4688_v43 = vmul.bf16 %v6228_v29, %v4518_v27  ;;  %vm9723_vm10 = vmmov %vm9702_vm0  ;;  %v6233_v55 = vld [vmem:[%s6599_s26 + $0x120] sm:$0xff]   ;;  %v6234_v37 = vld [vmem:[%s6599_s26 + $0x28] sm:$0xff]  }
 0x638   : > { %v4986_v51 = vadd.f32 %v4985_v61, %v4984_v33  ;;  %v4987_v39 = vsel %vm9714_vm1, %v4771_v42, 0.0  ;;  %v4842_v62 = vadd.f32 %v4841_v4, %v4840_v19  ;;  %v4843_v1 = vsel %vm9715_vm3, %v4709_v32, 0.0  ;;  %vm9724_vm1 = vmmov %vm9702_vm0 }
 0x639   : > { %v4740_v2 = vunpack.c.l.bf16 %v4657_v13  ;;  %v4741_v63 = vunpack.c.h.bf16 %v4657_v13  ;;  %v4802_v24 = vunpack.c.l.bf16 %v4688_v43  ;;  %v4803_v20 = vunpack.c.h.bf16 %v4688_v43  ;;  %vm9725_vm3 = vmmov %vm9702_vm0 }
 0x63a   : > { %v4988_v60 = vadd.f32 %v4987_v39, %v4986_v51  ;;  %v4452_v40 = vpop.permute.xlu0 %4451  ;;  %v4844_v8 = vadd.f32 %v4843_v1, %v4842_v62  ;;  %v4313_v28 = vpop.permute.xlu1 %4312 }
 0x63b   : > { %v4915_v14 = vsel %vm9716_vm4, %v4740_v2, 0.0  ;;  %v4673_v54 = vmul.bf16 %v6229_v36, %v4452_v40  ;;  %v5059_v59 = vsel %vm9717_vm5, %v4802_v24, 0.0  ;;  %v4642_v49 = vmul.bf16 %v6230_v47, %v4313_v28  ;;  %vm9726_vm4 = vmmov %vm9702_vm0  ;;  %v6236_v40 = vld [vmem:[%s6599_s26 + $0x1a0] sm:$0xff]  }
 0x63c   : > { %v4916_v18 = vadd.f32 %v4915_v14, %v4914_v50  ;;  %v4917_v41 = vsel %vm9718_vm2, %v4741_v63, 0.0  ;;  %v5060_v0 = vadd.f32 %v5059_v59, %v5058_v12  ;;  %v5061_v19 = vsel %vm9719_vm6, %v4803_v20, 0.0  ;;  %vm9727_vm5 = vmmov %vm9702_vm0 }
 0x63d   : > { %v4772_v33 = vunpack.c.l.bf16 %v4673_v54  ;;  %v4773_v21 = vunpack.c.h.bf16 %v4673_v54  ;;  %v4710_v34 = vunpack.c.l.bf16 %v4642_v49  ;;  %v4711_v3 = vunpack.c.h.bf16 %v4642_v49  ;;  %vm9728_vm2 = vmmov %vm9702_vm0 }
 0x63e   : > { %v4918_v22 = vadd.f32 %v4917_v41, %v4916_v18  ;;  %v4386_v45 = vpop.permute.xlu0 %4385  ;;  %v5062_v30 = vadd.f32 %v5061_v19, %v5060_v0  ;;  %v4522_v31 = vpop.permute.xlu1 %4521  ;;  %vm9729_vm6 = vmmov %vm9702_vm0 }
 0x63f   : > { %v4989_v46 = vsel %vm9720_vm7, %v4772_v33, 0.0  ;;  %v4658_v17 = vmul.bf16 %v6231_v25, %v4386_v45  ;;  %v4845_v35 = vsel %vm9721_vm8, %v4710_v34, 0.0  ;;  %v4689_v48 = vmul.bf16 %v6232_v10, %v4522_v31  ;;  %vm9730_vm7 = vmmov %vm9702_vm0  ;;  %v6237_v33 = vld [vmem:[%s6599_s26 + $0x128] sm:$0xff]  }
 0x640   : > { %v4990_v57 = vadd.f32 %v4989_v46, %v4988_v60  ;;  %v4991_v56 = vsel %vm9722_vm9, %v4773_v21, 0.0  ;;  %v4846_v52 = vadd.f32 %v4845_v35, %v4844_v8  ;;  %v4847_v42 = vsel %vm9723_vm10, %v4711_v3, 0.0  ;;  %vm9731_vm8 = vmmov %vm9702_vm0  ;;  %v6238_v3 = vld [vmem:[%s6599_s26 + $0x30] sm:$0xff]  }
 0x641   : > { %v4742_v38 = vunpack.c.l.bf16 %v4658_v17  ;;  %v4743_v26 = vunpack.c.h.bf16 %v4658_v17  ;;  %v4804_v9 = vunpack.c.l.bf16 %v4689_v48  ;;  %v4805_v58 = vunpack.c.h.bf16 %v4689_v48  ;;  %vm9732_vm9 = vmmov %vm9702_vm0 }
 0x642   : > { %v4992_v6 = vadd.f32 %v4991_v56, %v4990_v57  ;;  %v4456_v23 = vpop.permute.xlu0 %4455  ;;  %v4848_v50 = vadd.f32 %v4847_v42, %v4846_v52  ;;  %v4317_v15 = vpop.permute.xlu1 %4316  ;;  %vm9733_vm10 = vmmov %vm9702_vm0 }
 0x643   : > { %v4919_v5 = vsel %vm9702_vm0, %v4742_v38, 0.0  ;;  %v4674_v32 = vmul.bf16 %v6233_v55, %v4456_v23  ;;  %v5063_v61 = vsel %vm9724_vm1, %v4804_v9, 0.0  ;;  %v4643_v13 = vmul.bf16 %v6234_v37, %v4317_v15  ;;  %vm9734_vm1 = vmmov %vm9702_vm0  ;;  %v6239_v38 = vld [vmem:[%s6599_s26 + $0xb0] sm:$0xff]  }
 0x644   : > { %v4920_v12 = vadd.f32 %v4919_v5, %v4918_v22  ;;  %v4921_v27 = vsel %vm9725_vm3, %v4743_v26, 0.0  ;;  %v5064_v51 = vadd.f32 %v5063_v61, %v5062_v30  ;;  %v5065_v16 = vsel %vm9726_vm4, %v4805_v58, 0.0  ;;  %vm9735_vm3 = vmmov %vm9702_vm0  ;;  %v6240_v58 = vld [vmem:[%s6599_s26 + $0x1a8] sm:$0xff]  }
 0x645   : > { %v4774_v4 = vunpack.c.l.bf16 %v4674_v32  ;;  %v4775_v29 = vunpack.c.h.bf16 %v4674_v32  ;;  %v4712_v39 = vunpack.c.l.bf16 %v4643_v13  ;;  %v4713_v62 = vunpack.c.h.bf16 %v4643_v13  ;;  %vm9736_vm4 = vmmov %vm9702_vm0 }
 0x646   : > { %v4922_v43 = vadd.f32 %v4921_v27, %v4920_v12  ;;  %v4390_v2 = vpop.permute.xlu0 %4389  ;;  %v5066_v63 = vadd.f32 %v5065_v16, %v5064_v51  ;;  %v4526_v1 = vpop.permute.xlu1 %4525 }
 0x647   : > { %v4993_v44 = vsel %vm9727_vm5, %v4774_v4, 0.0  ;;  %v4659_v60 = vmul.bf16 %v6235_v53, %v4390_v2  ;;  %v4849_v20 = vsel %vm9728_vm2, %v4712_v39, 0.0  ;;  %v4690_v8 = vmul.bf16 %v6236_v40, %v4526_v1  ;;  %vm9737_vm5 = vmmov %vm9702_vm0  ;;  %v6241_v4 = vld [vmem:[%s6599_s26 + $0x130] sm:$0xff]  }
 0x648   : > { %v4994_v24 = vadd.f32 %v4993_v44, %v4992_v6  ;;  %v4995_v14 = vsel %vm9729_vm6, %v4775_v29, 0.0  ;;  %v4850_v36 = vadd.f32 %v4849_v20, %v4848_v50  ;;  %v4851_v59 = vsel %vm9730_vm7, %v4713_v62, 0.0  ;;  %vm9738_vm2 = vmmov %vm9702_vm0  ;;  %v6242_v62 = vld [vmem:[%s6599_s26 + $0x38] sm:$0xff]  }
 0x649   : > { %v4744_v54 = vunpack.c.l.bf16 %v4659_v60  ;;  %v4745_v28 = vunpack.c.h.bf16 %v4659_v60  ;;  %v4806_v47 = vunpack.c.l.bf16 %v4690_v8  ;;  %v4807_v49 = vunpack.c.h.bf16 %v4690_v8  ;;  %vm9739_vm6 = vmmov %vm9702_vm0 }
 0x64a   : > { %v4996_v18 = vadd.f32 %v4995_v14, %v4994_v24  ;;  %v4460_v11 = vpop.permute.xlu0 %4459  ;;  %v4852_v41 = vadd.f32 %v4851_v59, %v4850_v36  ;;  %v4321_v22 = vpop.permute.xlu1 %4320  ;;  %vm9740_vm7 = vmmov %vm9702_vm0 }
 0x64b   : > { %v4923_v0 = vsel %vm9731_vm8, %v4744_v54, 0.0  ;;  %v4675_v21 = vmul.bf16 %v6237_v33, %v4460_v11  ;;  %v5067_v34 = vsel %vm9732_vm9, %v4806_v47, 0.0  ;;  %v4644_v45 = vmul.bf16 %v6238_v3, %v4321_v22  ;;  %vm9741_vm8 = vmmov %vm9702_vm0  ;;  %v6243_v54 = vld [vmem:[%s6599_s26 + $0xb8] sm:$0xff]  }
 0x64c   : > { %v4924_v19 = vadd.f32 %v4923_v0, %v4922_v43  ;;  %v4925_v30 = vsel %vm9733_vm10, %v4745_v28, 0.0  ;;  %v5068_v46 = vadd.f32 %v5067_v34, %v5066_v63  ;;  %v5069_v57 = vsel %vm9702_vm0, %v4807_v49, 0.0  ;;  %vm9742_vm9 = vmmov %vm9702_vm0 }
 0x64d   : > { %v4776_v25 = vunpack.c.l.bf16 %v4675_v21  ;;  %v4777_v17 = vunpack.c.h.bf16 %v4675_v21  ;;  %v4714_v35 = vunpack.c.l.bf16 %v4644_v45  ;;  %v4715_v10 = vunpack.c.h.bf16 %v4644_v45  ;;  %vm9743_vm10 = vmmov %vm9702_vm0 }
 0x64e   : > { %v4926_v31 = vadd.f32 %v4925_v30, %v4924_v19  ;;  %v4394_v48 = vpop.permute.xlu0 %4393  ;;  %v5070_v56 = vadd.f32 %v5069_v57, %v5068_v46  ;;  %v4530_v6 = vpop.permute.xlu1 %4529  ;;  %v6244_v30 = vld [vmem:[%s6599_s26 + $0x1b0] sm:$0xff]  }
 0x64f   : > { %v4997_v52 = vsel %vm9734_vm1, %v4776_v25, 0.0  ;;  %v4660_v26 = vmul.bf16 %v6239_v38, %v4394_v48  ;;  %v4853_v9 = vsel %vm9735_vm3, %v4714_v35, 0.0  ;;  %v4691_v23 = vmul.bf16 %v6240_v58, %v4530_v6  ;;  %vm9744_vm1 = vmmov %vm9702_vm0  ;;  %v6247_v38 = vld [vmem:[%s6599_s26 + $0xc0] sm:$0xff]  }
 0x650   : > { %v4998_v42 = vadd.f32 %v4997_v52, %v4996_v18  ;;  %v4999_v50 = vsel %vm9736_vm4, %v4777_v17, 0.0  ;;  %v4854_v5 = vadd.f32 %v4853_v9, %v4852_v41  ;;  %v4855_v12 = vsel %vm9737_vm5, %v4715_v10, 0.0  ;;  %vm9745_vm3 = vmmov %vm9702_vm0  ;;  %v6245_v10 = vld [vmem:[%s6599_s26 + $0x138] sm:$0xff]  }
 0x651   : > { %v4746_v55 = vunpack.c.l.bf16 %v4660_v26  ;;  %v4747_v32 = vunpack.c.h.bf16 %v4660_v26  ;;  %v4808_v61 = vunpack.c.l.bf16 %v4691_v23  ;;  %v4809_v37 = vunpack.c.h.bf16 %v4691_v23  ;;  %vm9746_vm4 = vmmov %vm9702_vm0 }
 0x652   : > { %v5000_v15 = vadd.f32 %v4999_v50, %v4998_v42  ;;  %v4464_v13 = vpop.permute.xlu0 %4463  ;;  %v4856_v27 = vadd.f32 %v4855_v12, %v4854_v5  ;;  %v4325_v43 = vpop.permute.xlu1 %4324  ;;  %vm9747_vm5 = vmmov %vm9702_vm0 }
 0x653   : > { %v4927_v51 = vsel %vm9738_vm2, %v4746_v55, 0.0  ;;  %v4676_v29 = vmul.bf16 %v6241_v4, %v4464_v13  ;;  %v5071_v39 = vsel %vm9739_vm6, %v4808_v61, 0.0  ;;  %v4645_v2 = vmul.bf16 %v6242_v62, %v4325_v43  ;;  %v6248_v55 = vld [vmem:[%s6599_s26 + $0x140] sm:$0xff]   ;;  %vm9748_vm2 = vmmov %vm9702_vm0 }
 0x654   : > { %v4928_v16 = vadd.f32 %v4927_v51, %v4926_v31  ;;  %v4929_v63 = vsel %vm9740_vm7, %v4747_v32, 0.0  ;;  %v5072_v44 = vadd.f32 %v5071_v39, %v5070_v56  ;;  %v5073_v24 = vsel %vm9741_vm8, %v4809_v37, 0.0  ;;  %v6246_v56 = vld [vmem:[%s6599_s26 + $0x40] sm:$0xff]   ;;  %vm9749_vm6 = vmmov %vm9702_vm0 }
 0x655   : > { %v4778_v53 = vunpack.c.l.bf16 %v4676_v29  ;;  %v4779_v60 = vunpack.c.h.bf16 %v4676_v29  ;;  %v4716_v20 = vunpack.c.l.bf16 %v4645_v2  ;;  %v4717_v40 = vunpack.c.h.bf16 %v4645_v2  ;;  %vm9750_vm7 = vmmov %vm9702_vm0 }
 0x656   : > { %v4930_v1 = vadd.f32 %v4929_v63, %v4928_v16  ;;  %v4398_v8 = vpop.permute.xlu0 %4397  ;;  %v5074_v14 = vadd.f32 %v5073_v24, %v5072_v44  ;;  %v4534_v18 = vpop.permute.xlu1 %4533  ;;  %vm9751_vm8 = vmmov %vm9702_vm0  ;;  %v6250_v44 = vld [vmem:[%s6599_s26 + $0xc8] sm:$0xff]  }
 0x657   : > { %v5001_v36 = vsel %vm9742_vm9, %v4778_v53, 0.0  ;;  %v4661_v28 = vmul.bf16 %v6243_v54, %v4398_v8  ;;  %v4857_v47 = vsel %vm9743_vm10, %v4716_v20, 0.0  ;;  %v5003_v49 = vsel %vm9702_vm0, %v4779_v60, 0.0  ;;  %vm9752_vm9 = vmmov %vm9702_vm0  ;;  %v6251_v20 = vld [vmem:[%s6599_s26 + $0x1c0] sm:$0xff]   ;;  %v6252_v54 = vld [vmem:[%s6599_s26 + $0x50] sm:$0xff]  }
 0x658   : > { %v5002_v59 = vadd.f32 %v5001_v36, %v5000_v15  ;;  %v4858_v11 = vadd.f32 %v4857_v47, %v4856_v27  ;;  %v4859_v21 = vsel %vm9744_vm1, %v4717_v40, 0.0  ;;  %v4692_v46 = vmul.bf16 %v6244_v30, %v4534_v18  ;;  %v6249_v15 = vld [vmem:[%s6599_s26 + $0x48] sm:$0xff]   ;;  %vm9753_vm10 = vmmov %vm9702_vm0 }
 0x659   : > { %v4748_v41 = vunpack.c.l.bf16 %v4661_v28  ;;  %v4749_v0 = vunpack.c.h.bf16 %v4661_v28  ;;  %vm9754_vm1 = vmmov %vm9702_vm0 }
 0x65a   : > { %v9124_v33 = vadd.f32 %v5003_v49, %v5002_v59  ;;  %v4468_v22 = vpop.permute.xlu0 %4467  ;;  %v4860_v19 = vadd.f32 %v4859_v21, %v4858_v11  ;;  %v4405_v3 = vpop.permute.xlu1 %4404  ;;  %v4810_v35 = vunpack.c.l.bf16 %v4692_v46  ;;  %v4811_v42 = vunpack.c.h.bf16 %v4692_v46 }
 0x65b   : > { %v4931_v34 = vsel %vm9745_vm3, %v4748_v41, 0.0  ;;  %v4933_v25 = vsel %vm9746_vm4, %v4749_v0, 0.0  ;;  %v4677_v48 = vmul.bf16 %v6245_v10, %v4468_v22  ;;  %v4662_v26 = vmul.bf16 %v6247_v38, %v4405_v3  ;;  %vm9755_vm3 = vmmov %vm9702_vm0  ;;  %v6253_v10 = vld [vmem:[%s6599_s26 + $0x148] sm:$0xff]   ;;  %v6255_v38 = vld [vmem:[%s6599_s26 + $0xd0] sm:$0xff]  }
 0x65c   : > { %v4932_v45 = vadd.f32 %v4931_v34, %v4930_v1  ;;  %v5075_v50 = vsel %vm9747_vm5, %v4810_v35, 0.0  ;;  %v4861_v4 = vrot.slane %v4860_v19, 4  ;;  %v5077_v43 = vsel %vm9750_vm7, %v4811_v42, 0.0  ;;  %vm9756_vm4 = vmmov %vm9702_vm0 }
 0x65d   : > { %v4780_v5 = vunpack.c.l.bf16 %v4677_v48  ;;  %v4750_v61 = vunpack.c.l.bf16 %v4662_v26  ;;  %v4751_v37 = vunpack.c.h.bf16 %v4662_v26  ;;  %v5076_v29 = vadd.f32 %v5075_v50, %v5074_v14  ;;  %vm9757_vm5 = vmmov %vm9702_vm0 }
 0x65e   : > { %v9130_v17 = vadd.f32 %v4933_v25, %v4932_v45  ;;  %v4335_v31 = vpop.permute.xlu0 %4334  ;;  %v4475_v57 = vpop.permute.xlu1 %4474  ;;  %v4781_v62 = vunpack.c.h.bf16 %v4677_v48  ;;  %v9150_v59 = vadd.f32 %v4861_v4, %v4860_v19  ;;  %vm9760_vm7 = vmmov %vm9702_vm0 }
 0x65f   : > { %v4646_v52 = vmul.bf16 %v6246_v56, %v4335_v31  ;;  %v4678_v32 = vmul.bf16 %v6248_v55, %v4475_v57  ;;  %v5005_v2 = vsel %vm9751_vm8, %v4780_v5, 0.0  ;;  %v4941_v8 = vsel %vm9753_vm10, %v4750_v61, 0.0  ;;  %v6254_v56 = vld [vmem:[%s6599_s26 + $0x1c8] sm:$0xff]   ;;  %vm9761_vm8 = vmmov %vm9702_vm0 }
 0x660   : > { %v4942_v14 = vsel %vm9702_vm0, %v4751_v37, 0.0  ;;  %v9152_v47 = vadd.f32 %v5077_v43, %v5076_v29  ;;  %v4935_v0 = vrot.slane %v9130_v17, 4  ;;  %v9156_v21 = vadd.f32 %v5005_v2, %v9124_v33  ;;  %vm9763_vm10 = vmmov %vm9702_vm0 }
 0x661   : > { %v4718_v9 = vunpack.c.l.bf16 %v4646_v52  ;;  %v4719_v58 = vunpack.c.h.bf16 %v4646_v52  ;;  %v4782_v63 = vunpack.c.l.bf16 %v4678_v32  ;;  %v4783_v1 = vunpack.c.h.bf16 %v4678_v32 }
 0x662   : > { %v4339_v6 = vpop.permute.xlu0 %4338  ;;  %v4343_v23 = vpop.permute.xlu1 %4342  ;;  %v9159_v22 = vsel %vm9754_vm1, %v4781_v62, 0.0  ;;  %v4943_v3 = vadd.f32 %v4942_v14, %v4941_v8  ;;  %v4863_v42 = vrot.slane %v9150_v59, 2  ;;  %vm9764_vm1 = vmmov %vm9702_vm0  ;;  %v6258_v8 = vld [vmem:[%s6599_s26 + $0x1d0] sm:$0xff]  }
 0x663   : > { %v4647_v12 = vmul.bf16 %v6249_v15, %v4339_v6  ;;  %v4867_v13 = vsel %vm9748_vm2, %v4718_v9, 0.0  ;;  %v4868_v27 = vsel %vm9749_vm6, %v4719_v58, 0.0  ;;  %v9148_v28 = vmul.bf16 %v6252_v54, %v4343_v23  ;;  %vm9758_vm2 = vmmov %vm9702_vm0  ;;  %v6256_v23 = vld [vmem:[%s6599_s26 + $0x150] sm:$0xff]  }
 0x664   : > { %v4869_v60 = vadd.f32 %v4868_v27, %v4867_v13  ;;  %v5015_v19 = vsel %vm9755_vm3, %v4782_v63, 0.0  ;;  %v5016_v45 = vsel %vm9756_vm4, %v4783_v1, 0.0  ;;  %v9171_v9 = vadd.f32 %v4935_v0, %v9130_v17  ;;  %vm9759_vm6 = vmmov %vm9702_vm0 }
 0x665   : > { %v4720_v16 = vunpack.c.l.bf16 %v4647_v12  ;;  %v4721_v36 = vunpack.c.h.bf16 %v4647_v12  ;;  %v4722_v25 = vunpack.c.l.bf16 %v9148_v28  ;;  %v5017_v12 = vadd.f32 %v5016_v45, %v5015_v19  ;;  %vm9765_vm3 = vmmov %vm9702_vm0  ;;  %v6260_v19 = vld [vmem:[%s6599_s26 + $0x158] sm:$0xff]  }
 0x666   : > { %v4409_v51 = vpop.permute.xlu0 %4408  ;;  %v4545_v39 = vpop.permute.xlu1 %4544  ;;  %vm9766_vm4 = vmmov %vm9702_vm0 }
 0x667   : > { %v4663_v53 = vmul.bf16 %v6250_v44, %v4409_v51  ;;  %v4870_v24 = vsel %vm9752_vm9, %v4720_v16, 0.0  ;;  %v4694_v40 = vmul.bf16 %v6251_v20, %v4545_v39  ;;  %v4872_v46 = vsel %vm9757_vm5, %v4721_v36, 0.0  ;;  %vm9762_vm9 = vmmov %vm9702_vm0 }
 0x668   : > { %v4871_v49 = vadd.f32 %v4870_v24, %v4869_v60  ;;  %v4874_v61 = vsel %vm9761_vm8, %v4722_v25, 0.0  ;;  %v4723_v51 = vunpack.c.h.bf16 %v9148_v28  ;;  %v6257_v60 = vld [vmem:[%s6599_s26 + $0x58] sm:$0xff]   ;;  %vm9767_vm5 = vmmov %vm9702_vm0 }
 0x669   : > { %v4752_v11 = vunpack.c.l.bf16 %v4663_v53  ;;  %v4814_v34 = vunpack.c.l.bf16 %v4694_v40  ;;  %v4815_v30 = vunpack.c.h.bf16 %v4694_v40  ;;  %v4753_v31 = vunpack.c.h.bf16 %v4663_v53  ;;  %vm9771_vm8 = vmmov %vm9702_vm0 }
 0x66a   : > { %v4479_v18 = vpop.permute.xlu0 %4478  ;;  %v4549_v41 = vpop.permute.xlu1 %4548  ;;  %v4873_v35 = vadd.f32 %v4872_v46, %v4871_v49  ;;  %v6259_v49 = vld [vmem:[%s6599_s26 + $0xd8] sm:$0xff]   ;;  %v9193_v46 = vadd.f32 %v9159_v22, %v9156_v21  ;;  %v4876_v25 = vsel %vm9767_vm5, %v4723_v51, 0.0  ;;  %vm9777_vm5 = vmmov %vm9702_vm0 }
 0x66b   : > { %v4944_v33 = vsel %vm9758_vm2, %v4752_v11, 0.0  ;;  %v4679_v48 = vmul.bf16 %v6253_v10, %v4479_v18  ;;  %v4695_v52 = vmul.bf16 %v6254_v56, %v4549_v41  ;;  %v5089_v58 = vsel %vm9759_vm6, %v4814_v34, 0.0  ;;  %vm9768_vm2 = vmmov %vm9702_vm0 }
 0x66c   : > { %v4945_v5 = vadd.f32 %v4944_v33, %v4943_v3  ;;  %v5090_v55 = vsel %vm9760_vm7, %v4815_v30, 0.0  ;;  %v4875_v17 = vadd.f32 %v4874_v61, %v4873_v35  ;;  %v4946_v4 = vsel %vm9762_vm9, %v4753_v31, 0.0  ;;  %vm9769_vm6 = vmmov %vm9702_vm0 }
 0x66d   : > { %v4784_v32 = vunpack.c.l.bf16 %v4679_v48  ;;  %v4816_v15 = vunpack.c.l.bf16 %v4695_v52  ;;  %v4785_v37 = vunpack.c.h.bf16 %v4679_v48  ;;  %v5091_v16 = vadd.f32 %v5090_v55, %v5089_v58  ;;  %vm9770_vm7 = vmmov %vm9702_vm0  ;;  %v6262_v55 = vld [vmem:[%s6599_s26 + $0x1d8] sm:$0xff]  }
 0x66e   : > { %v4413_v57 = vpop.permute.xlu0 %4412  ;;  %v4483_v6 = vpop.permute.xlu1 %4482  ;;  %v4947_v63 = vadd.f32 %v4946_v4, %v4945_v5  ;;  %v4817_v44 = vunpack.c.h.bf16 %v4695_v52  ;;  %v9189_v30 = vadd.f32 %v4863_v42, %v9150_v59  ;;  %v4877_v33 = vadd.f32 %v4876_v25, %v4875_v17  ;;  %vm9772_vm9 = vmmov %vm9702_vm0  ;;  %v6261_v42 = vld [vmem:[%s6599_s26 + $0x60] sm:$0xff]  }
 0x66f   : > { %v4664_v26 = vmul.bf16 %v6255_v38, %v4413_v57  ;;  %v4680_v50 = vmul.bf16 %v6256_v23, %v4483_v6  ;;  %v5018_v29 = vsel %vm9763_vm10, %v4784_v32, 0.0  ;;  %v5092_v62 = vsel %vm9702_vm0, %v4816_v15, 0.0  ;;  %vm9773_vm10 = vmmov %vm9702_vm0  ;;  %v6263_v4 = vld [vmem:[%s6599_s26 + $0xe0] sm:$0xff]  }
 0x670   : > { %v5019_v39 = vadd.f32 %v5018_v29, %v5017_v12  ;;  %v5020_v24 = vsel %vm9765_vm3, %v4785_v37, 0.0  ;;  %v5093_v28 = vadd.f32 %v5092_v62, %v5091_v16  ;;  %v5094_v57 = vsel %vm9768_vm2, %v4817_v44, 0.0  ;;  %vm9775_vm3 = vmmov %vm9702_vm0 }
 0x671   : > { %v4754_v13 = vunpack.c.l.bf16 %v4664_v26  ;;  %v4786_v2 = vunpack.c.l.bf16 %v4680_v50  ;;  %v4755_v20 = vunpack.c.h.bf16 %v4664_v26  ;;  %v4787_v40 = vunpack.c.h.bf16 %v4680_v50  ;;  %vm9778_vm2 = vmmov %vm9702_vm0 }
 0x672   : > { %v4347_v27 = vpop.permute.xlu0 %4346  ;;  %v4553_v43 = vpop.permute.xlu1 %4552  ;;  %v5021_v54 = vadd.f32 %v5020_v24, %v5019_v39  ;;  %v5095_v22 = vadd.f32 %v5094_v57, %v5093_v28  ;;  %v4937_v44 = vrot.slane %v9171_v9, 2 }
 0x673   : > { %v4948_v53 = vsel %vm9764_vm1, %v4754_v13, 0.0  ;;  %v4649_v1 = vmul.bf16 %v6257_v60, %v4347_v27  ;;  %v4696_v14 = vmul.bf16 %v6258_v8, %v4553_v43  ;;  %v5022_v34 = vsel %vm9766_vm4, %v4786_v2, 0.0  ;;  %vm9774_vm1 = vmmov %vm9702_vm0  ;;  %v6264_v2 = vld [vmem:[%s6599_s26 + $0x160] sm:$0xff]  }
 0x674   : > { %v4949_v0 = vadd.f32 %v4948_v53, %v4947_v63  ;;  %v4950_v56 = vsel %vm9770_vm7, %v4755_v20, 0.0  ;;  %v5023_v59 = vadd.f32 %v5022_v34, %v5021_v54  ;;  %v5024_v52 = vsel %vm9771_vm8, %v4787_v40, 0.0  ;;  %vm9776_vm4 = vmmov %vm9702_vm0 }
 0x675   : > { %v4724_v18 = vunpack.c.l.bf16 %v4649_v1  ;;  %v4818_v3 = vunpack.c.l.bf16 %v4696_v14  ;;  %v4725_v35 = vunpack.c.h.bf16 %v4649_v1  ;;  %v4819_v50 = vunpack.c.h.bf16 %v4696_v14  ;;  %vm9780_vm7 = vmmov %vm9702_vm0 }
 0x676   : > { %v4417_v36 = vpop.permute.xlu0 %4416  ;;  %v4487_v41 = vpop.permute.xlu1 %4486  ;;  %v4951_v26 = vadd.f32 %v4950_v56, %v4949_v0  ;;  %v5025_v27 = vadd.f32 %v5024_v52, %v5023_v59  ;;  %vm9781_vm8 = vmmov %vm9702_vm0 }
 0x677   : > { %v4665_v11 = vmul.bf16 %v6259_v49, %v4417_v36  ;;  %v4681_v45 = vmul.bf16 %v6260_v19, %v4487_v41  ;;  %v4878_v10 = vsel %vm9769_vm6, %v4724_v18, 0.0  ;;  %v5096_v6 = vsel %vm9772_vm9, %v4818_v3, 0.0  ;;  %v6265_v18 = vld [vmem:[%s6599_s26 + $0x68] sm:$0xff]   ;;  %vm9779_vm6 = vmmov %vm9702_vm0 }
 0x678   : > { %v4879_v23 = vadd.f32 %v4878_v10, %v4877_v33  ;;  %v4880_v15 = vsel %vm9702_vm0, %v4725_v35, 0.0  ;;  %v5097_v51 = vadd.f32 %v5096_v6, %v5095_v22  ;;  %v5098_v24 = vsel %vm9776_vm4, %v4819_v50, 0.0  ;;  %vm9782_vm9 = vmmov %vm9702_vm0  ;;  %v6266_v10 = vld [vmem:[%s6599_s26 + $0x1e0] sm:$0xff]  }
 0x679   : > { %v4756_v31 = vunpack.c.l.bf16 %v4665_v11  ;;  %v4788_v38 = vunpack.c.l.bf16 %v4681_v45  ;;  %v4757_v12 = vunpack.c.h.bf16 %v4665_v11  ;;  %v4789_v39 = vunpack.c.h.bf16 %v4681_v45  ;;  %vm9786_vm4 = vmmov %vm9702_vm0 }
 0x67a   : > { %v4351_v48 = vpop.permute.xlu0 %4350  ;;  %v4557_v21 = vpop.permute.xlu1 %4556  ;;  %v4881_v53 = vadd.f32 %v4880_v15, %v4879_v23  ;;  %v5099_v36 = vadd.f32 %v5098_v24, %v5097_v51  ;;  %v5009_v6 = vrot.slane %v9193_v46, 4 }
 0x67b   : > { %v4650_v58 = vmul.bf16 %v6261_v42, %v4351_v48  ;;  %v4952_v5 = vsel %vm9773_vm10, %v4756_v31, 0.0  ;;  %v4697_v32 = vmul.bf16 %v6262_v55, %v4557_v21  ;;  %v5026_v61 = vsel %vm9774_vm1, %v4788_v38, 0.0  ;;  %vm9783_vm10 = vmmov %vm9702_vm0  ;;  %v6267_v21 = vld [vmem:[%s6599_s26 + $0xe8] sm:$0xff]  }
 0x67c   : > { %v4953_v16 = vadd.f32 %v4952_v5, %v4951_v26  ;;  %v5027_v60 = vadd.f32 %v5026_v61, %v5025_v27  ;;  %v4954_v54 = vsel %vm9778_vm2, %v4757_v12, 0.0  ;;  %v5028_v0 = vsel %vm9779_vm6, %v4789_v39, 0.0  ;;  %vm9784_vm1 = vmmov %vm9702_vm0 }
 0x67d   : > { %v4726_v37 = vunpack.c.l.bf16 %v4650_v58  ;;  %v4820_v17 = vunpack.c.l.bf16 %v4697_v32  ;;  %v4727_v1 = vunpack.c.h.bf16 %v4650_v58  ;;  %v4821_v34 = vunpack.c.h.bf16 %v4697_v32  ;;  %v6268_v32 = vld [vmem:[%s6599_s26 + $0x168] sm:$0xff]   ;;  %vm9788_vm2 = vmmov %vm9702_vm0 }
 0x67e   : > { %v4421_v13 = vpop.permute.xlu0 %4420  ;;  %v4491_v43 = vpop.permute.xlu1 %4490  ;;  %v4955_v41 = vadd.f32 %v4954_v54, %v4953_v16  ;;  %v5029_v19 = vadd.f32 %v5028_v0, %v5027_v60  ;;  %v4865_v12 = vrot.slane %v9189_v30, 1  ;;  %v9233_v60 = vadd.f32 %v4937_v44, %v9171_v9  ;;  %vm9789_vm6 = vmmov %vm9702_vm0 }
 0x67f   : > { %v4666_v29 = vmul.bf16 %v6263_v4, %v4421_v13  ;;  %v4882_v62 = vsel %vm9775_vm3, %v4726_v37, 0.0  ;;  %v4682_v63 = vmul.bf16 %v6264_v2, %v4491_v43  ;;  %v5100_v20 = vsel %vm9777_vm5, %v4820_v17, 0.0  ;;  %vm9785_vm3 = vmmov %vm9702_vm0 }
 0x680   : > { %v4883_v28 = vadd.f32 %v4882_v62, %v4881_v53  ;;  %v4884_v45 = vsel %vm9781_vm8, %v4727_v1, 0.0  ;;  %v5101_v25 = vadd.f32 %v5100_v20, %v5099_v36  ;;  %v5102_v42 = vsel %vm9702_vm0, %v4821_v34, 0.0  ;;  %vm9787_vm5 = vmmov %vm9702_vm0  ;;  %v6269_v62 = vld [vmem:[%s6599_s26 + $0x70] sm:$0xff]  }
 0x681   : > { %v4758_v40 = vunpack.c.l.bf16 %v4666_v29  ;;  %v4790_v8 = vunpack.c.l.bf16 %v4682_v63  ;;  %v4759_v33 = vunpack.c.h.bf16 %v4666_v29  ;;  %v4791_v57 = vunpack.c.h.bf16 %v4682_v63  ;;  %v6270_v63 = vld [vmem:[%s6599_s26 + $0x1e8] sm:$0xff]   ;;  %vm9791_vm8 = vmmov %vm9702_vm0 }
 0x682   : > { %v4355_v14 = vpop.permute.xlu0 %4354  ;;  %v4561_v11 = vpop.permute.xlu1 %4560  ;;  %v4885_v59 = vadd.f32 %v4884_v45, %v4883_v28  ;;  %v5103_v61 = vadd.f32 %v5102_v42, %v5101_v25  ;;  %v9238_v34 = vadd.f32 %v5009_v6, %v9193_v46 }
 0x683   : > { %v4651_v49 = vmul.bf16 %v6265_v18, %v4355_v14  ;;  %v4956_v3 = vsel %vm9780_vm7, %v4758_v40, 0.0  ;;  %v5030_v35 = vsel %vm9782_vm9, %v4790_v8, 0.0  ;;  %v4698_v48 = vmul.bf16 %v6266_v10, %v4561_v11  ;;  %v6271_v11 = vld [vmem:[%s6599_s26 + $0xf0] sm:$0xff]   ;;  %vm9790_vm7 = vmmov %vm9702_vm0 }
 0x684   : > { %v4957_v52 = vadd.f32 %v4956_v3, %v4955_v41  ;;  %v5031_v50 = vadd.f32 %v5030_v35, %v5029_v19  ;;  %v4958_v37 = vsel %vm9784_vm1, %v4759_v33, 0.0  ;;  %v5032_v13 = vsel %vm9785_vm3, %v4791_v57, 0.0  ;;  %v6272_v3 = vld [vmem:[%s6599_s26 + $0x170] sm:$0xff]   ;;  %vm9792_vm9 = vmmov %vm9702_vm0 }
 0x685   : > { %v4728_v31 = vunpack.c.l.bf16 %v4651_v49  ;;  %v4729_v58 = vunpack.c.h.bf16 %v4651_v49  ;;  %v4822_v23 = vunpack.c.l.bf16 %v4698_v48  ;;  %v4823_v39 = vunpack.c.h.bf16 %v4698_v48  ;;  %vm9794_vm1 = vmmov %vm9702_vm0 }
 0x686   : > { %v4425_v56 = vpop.permute.xlu0 %4424  ;;  %v4495_v26 = vpop.permute.xlu1 %4494  ;;  %v4959_v51 = vadd.f32 %v4958_v37, %v4957_v52  ;;  %v5033_v1 = vadd.f32 %v5032_v13, %v5031_v50  ;;  %vm9795_vm3 = vmmov %vm9702_vm0  ;;  %v6274_v37 = vld [vmem:[%s6599_s26 + $0x1f0] sm:$0xff]  }
 0x687   : > { %v4886_v38 = vsel %vm9783_vm10, %v4728_v31, 0.0  ;;  %v4667_v22 = vmul.bf16 %v6267_v21, %v4425_v56  ;;  %v4683_v15 = vmul.bf16 %v6268_v32, %v4495_v26  ;;  %v5104_v17 = vsel %vm9786_vm4, %v4822_v23, 0.0  ;;  %vm9793_vm10 = vmmov %vm9702_vm0 }
 0x688   : > { %v4887_v5 = vadd.f32 %v4886_v38, %v4885_v59  ;;  %v4888_v16 = vsel %vm9788_vm2, %v4729_v58, 0.0  ;;  %v5105_v40 = vadd.f32 %v5104_v17, %v5103_v61  ;;  %v5106_v9 = vsel %vm9790_vm7, %v4823_v39, 0.0  ;;  %v6273_v38 = vld [vmem:[%s6599_s26 + $0x78] sm:$0xff]   ;;  %vm9796_vm4 = vmmov %vm9702_vm0 }
 0x689   : > { %v4760_v55 = vunpack.c.l.bf16 %v4667_v22  ;;  %v4792_v29 = vunpack.c.l.bf16 %v4683_v15  ;;  %v4761_v20 = vunpack.c.h.bf16 %v4667_v22  ;;  %v4793_v28 = vunpack.c.h.bf16 %v4683_v15  ;;  %vm9798_vm2 = vmmov %vm9702_vm0 }
 0x68a   : > { %v4359_v27 = vpop.permute.xlu0 %4358  ;;  %v4565_v43 = vpop.permute.xlu1 %4564  ;;  %v4889_v24 = vadd.f32 %v4888_v16, %v4887_v5  ;;  %v5107_v57 = vadd.f32 %v5106_v9, %v5105_v40  ;;  %v5011_v23 = vrot.slane %v9238_v34, 2  ;;  %vm9800_vm7 = vmmov %vm9702_vm0 }
 0x68b   : > { %v4960_v4 = vsel %vm9787_vm5, %v4760_v55, 0.0  ;;  %v4652_v2 = vmul.bf16 %v6269_v62, %v4359_v27  ;;  %v4699_v53 = vmul.bf16 %v6270_v63, %v4565_v43  ;;  %v5034_v14 = vsel %vm9789_vm6, %v4792_v29, 0.0  ;;  %vm9797_vm5 = vmmov %vm9702_vm0  ;;  %v6275_v29 = vld [vmem:[%s6599_s26 + $0xf8] sm:$0xff]  }
 0x68c   : > { %v4961_v8 = vadd.f32 %v4960_v4, %v4959_v51  ;;  %v4962_v45 = vsel %vm9792_vm9, %v4761_v20, 0.0  ;;  %v5035_v25 = vadd.f32 %v5034_v14, %v5033_v1  ;;  %v5036_v46 = vsel %vm9702_vm0, %v4793_v28, 0.0  ;;  %vm9799_vm6 = vmmov %vm9702_vm0  ;;  %v6276_v20 = vld [vmem:[%s6599_s26 + $0x178] sm:$0xff]  }
 0x68d   : > { %v4730_v36 = vunpack.c.l.bf16 %v4652_v2  ;;  %v4731_v18 = vunpack.c.h.bf16 %v4652_v2  ;;  %v4824_v49 = vunpack.c.l.bf16 %v4699_v53  ;;  %v4825_v52 = vunpack.c.h.bf16 %v4699_v53  ;;  %vm9802_vm9 = vmmov %vm9702_vm0 }
 0x68e   : > { %v4429_v54 = vpop.permute.xlu0 %4428  ;;  %v4499_v0 = vpop.permute.xlu1 %4498  ;;  %v4963_v35 = vadd.f32 %v4962_v45, %v4961_v8  ;;  %v5037_v50 = vadd.f32 %v5036_v46, %v5035_v25 }
 0x68f   : > { %v4668_v41 = vmul.bf16 %v6271_v11, %v4429_v54  ;;  %v4890_v44 = vsel %vm9791_vm8, %v4730_v36, 0.0  ;;  %v4684_v19 = vmul.bf16 %v6272_v3, %v4499_v0  ;;  %v5108_v33 = vsel %vm9793_vm10, %v4824_v49, 0.0  ;;  %vm9801_vm8 = vmmov %vm9702_vm0 }
 0x690   : > { %v4891_v31 = vadd.f32 %v4890_v44, %v4889_v24  ;;  %v4892_v59 = vsel %vm9794_vm1, %v4731_v18, 0.0  ;;  %v5109_v26 = vadd.f32 %v5108_v33, %v5107_v57  ;;  %v5110_v51 = vsel %vm9797_vm5, %v4825_v52, 0.0  ;;  %vm9803_vm10 = vmmov %vm9702_vm0  ;;  %v6278_v57 = vld [vmem:[%s6599_s26 + $0x1f8] sm:$0xff]  }
 0x691   : > { %v4762_v10 = vunpack.c.l.bf16 %v4668_v41  ;;  %v4794_v48 = vunpack.c.l.bf16 %v4684_v19  ;;  %v4763_v6 = vunpack.c.h.bf16 %v4668_v41  ;;  %v4795_v15 = vunpack.c.h.bf16 %v4684_v19  ;;  %v6277_v19 = vld [vmem:[%s6599_s26 + $0x1b8] sm:$0xff]   ;;  %vm9804_vm1 = vmmov %vm9702_vm0  ;;  %s9394_s26 = sshll.u32 %s6451_s9, 7 }
 0x692   : > { %v4363_v56 = vpop.permute.xlu0 %4362  ;;  %v4569_v22 = vpop.permute.xlu1 %4568  ;;  %v4893_v5 = vadd.f32 %v4892_v59, %v4891_v31  ;;  %v5111_v39 = vadd.f32 %v5110_v51, %v5109_v26  ;;  %vm9807_vm5 = vmmov %vm9702_vm0  ;;  %s9294_s22 = scalar_lea.hbm %s9377_s8, %s9394_s26 }
 0x693   : > { %v4653_v21 = vmul.bf16 %v6273_v38, %v4363_v56  ;;  %v4964_v42 = vsel %vm9795_vm3, %v4762_v10, 0.0  ;;  %v5038_v58 = vsel %vm9796_vm4, %v4794_v48, 0.0  ;;  %v4700_v13 = vmul.bf16 %v6274_v37, %v4569_v22  ;;  %vm9805_vm3 = vmmov %vm9702_vm0 }
 0x694   : > { %v4965_v32 = vadd.f32 %v4964_v42, %v4963_v35  ;;  %v5039_v17 = vadd.f32 %v5038_v58, %v5037_v50  ;;  %v4966_v62 = vsel %vm9799_vm6, %v4763_v6, 0.0  ;;  %v5040_v14 = vsel %vm9801_vm8, %v4795_v15, 0.0  ;;  %vm9806_vm4 = vmmov %vm9702_vm0 }
 0x695   : > { %v4732_v55 = vunpack.c.l.bf16 %v4653_v21  ;;  %v4733_v61 = vunpack.c.h.bf16 %v4653_v21  ;;  %v4826_v63 = vunpack.c.l.bf16 %v4700_v13  ;;  %v4827_v49 = vunpack.c.h.bf16 %v4700_v13  ;;  %vm9809_vm6 = vmmov %vm9702_vm0 }
 0x696   : > { %v4433_v27 = vpop.permute.xlu0 %4432  ;;  %v4503_v16 = vpop.permute.xlu1 %4502  ;;  %v4967_v8 = vadd.f32 %v4966_v62, %v4965_v32  ;;  %v5041_v18 = vadd.f32 %v5040_v14, %v5039_v17  ;;  %v4939_v58 = vrot.slane %v9233_v60, 1  ;;  %v5012_v13 = vadd.f32 %v5011_v23, %v9238_v34 }
 0x697   : > { %v4894_v4 = vsel %vm9798_vm2, %v4732_v55, 0.0  ;;  %v4669_v43 = vmul.bf16 %v6275_v29, %v4433_v27  ;;  %v4896_v53 = vsel %vm9800_vm7, %v4733_v61, 0.0  ;;  %v4685_v40 = vmul.bf16 %v6276_v20, %v4503_v16  ;;  %vm9808_vm2 = vmmov %vm9702_vm0 }
 0x698   : > { %v4895_v2 = vadd.f32 %v4894_v4, %v4893_v5  ;;  %v5112_v54 = vsel %vm9802_vm9, %v4826_v63, 0.0  ;;  %v5114_v26 = vsel %vm9806_vm4, %v4827_v49, 0.0  ;;  %vm9810_vm7 = vmmov %vm9702_vm0  ;;  %v4940_v34 = vadd.f32 %v4939_v58, %v9233_v60 }
 0x699   : > { %v4764_v1 = vunpack.c.l.bf16 %v4669_v43  ;;  %v4765_v24 = vunpack.c.h.bf16 %v4669_v43  ;;  %v4796_v41 = vunpack.c.l.bf16 %v4685_v40  ;;  %v4797_v3 = vunpack.c.h.bf16 %v4685_v40 }
 0x69a   : > { %v4897_v36 = vadd.f32 %v4896_v53, %v4895_v2  ;;  %v4538_v28 = vpop.permute.xlu0 %4537  ;;  %v4573_v0 = vpop.permute.xlu1 %4572  ;;  %v5113_v25 = vadd.f32 %v5112_v54, %v5111_v39  ;;  %v4866_v39 = vadd.f32 %v4865_v12, %v9189_v30  ;;  %v5013_v23 = vrot.slane %v5012_v13, 1 }
 0x69b   : > { %v4968_v11 = vsel %vm9803_vm10, %v4764_v1, 0.0  ;;  %v4693_v45 = vmul.bf16 %v6277_v19, %v4538_v28  ;;  %v4970_v31 = vsel %vm9702_vm0, %v4765_v24, 0.0  ;;  %v5042_v33 = vsel %vm9804_vm1, %v4796_v41, 0.0  ;;  %vm9813_vm10 = vmmov %vm9702_vm0 }
 0x69c   : > { %v4898_v9 = vrot.slane %v4897_v36, 4  ;;  %v4969_v44 = vadd.f32 %v4968_v11, %v4967_v8  ;;  %v4701_v35 = vmul.bf16 %v6278_v57, %v4573_v0  ;;  %v5043_v56 = vadd.f32 %v5042_v33, %v5041_v18 }
 0x69d   : > { %v5044_v46 = vsel %vm9805_vm3, %v4797_v3, 0.0  ;;  %v4812_v59 = vunpack.c.l.bf16 %v4693_v45  ;;  %v4813_v52 = vunpack.c.h.bf16 %v4693_v45  ;;  %v5115_v50 = vadd.f32 %v5114_v26, %v5113_v25 }
 0x69e   : > { %v4899_v10 = vadd.f32 %v4898_v9, %v4897_v36  ;;  %v4971_v48 = vadd.f32 %v4970_v31, %v4969_v44  ;;  %v4828_v38 = vunpack.c.l.bf16 %v4701_v35  ;;  %v4829_v21 = vunpack.c.h.bf16 %v4701_v35 }
 0x69f   : > { %v5045_v42 = vadd.f32 %v5044_v46, %v5043_v56  ;;  %v5079_v5 = vsel %vm9807_vm5, %v4812_v59, 0.0  ;;  %v5081_v27 = vsel %vm9809_vm6, %v4813_v52, 0.0  ;;  %vm9811_vm8 = vcmask 1041409  }
 0x6a0   : > { %v4900_v22 = vrot.slane %v4899_v10, 2  ;;  %v4972_v6 = vrot.slane %v4971_v48, 4  ;;  %v5116_v55 = vsel %vm9808_vm2, %v4828_v38, 0.0  ;;  %v5080_v37 = vadd.f32 %v5079_v5, %v9152_v47 }
 0x6a1   : > { %v5046_v61 = vrot.slane %v5045_v42, 4  ;;  %v5117_v51 = vadd.f32 %v5116_v55, %v5115_v50  ;;  %v5118_v17 = vsel %vm9810_vm7, %v4829_v21, 0.0  ;;  %vm9812_vm9 = vcmask 1042434  }
 0x6a2   : > { %v4901_v32 = vadd.f32 %v4900_v22, %v4899_v10  ;;  %v4973_v15 = vadd.f32 %v4972_v6, %v4971_v48  ;;  %v5082_v16 = vadd.f32 %v5081_v27, %v5080_v37  ;;  %v5014_v12 = vadd.f32 %v5013_v23, %v5012_v13 }
 0x6a3   : > { %v5047_v43 = vadd.f32 %v5046_v61, %v5045_v42  ;;  %v5119_v62 = vadd.f32 %v5118_v17, %v5117_v51 }
 0x6a4   : > { %v4902_v4 = vrot.slane %v4901_v32, 1  ;;  %v4974_v29 = vrot.slane %v4973_v15, 2  ;;  %v5083_v53 = vrot.slane %v5082_v16, 4 }
 0x6a5   : > { %v5048_v63 = vrot.slane %v5047_v43, 2  ;;  %v5120_v1 = vrot.slane %v5119_v62, 4 }
 0x6a6   : > { %v4903_v2 = vadd.f32 %v4902_v4, %v4901_v32  ;;  %v4975_v47 = vadd.f32 %v4974_v29, %v4973_v15  ;;  %v5084_v8 = vadd.f32 %v5083_v53, %v5082_v16 }
 0x6a7   : > { %v5049_v40 = vadd.f32 %v5048_v63, %v5047_v43  ;;  %v5121_v14 = vadd.f32 %v5120_v1, %v5119_v62 }
 0x6a8   : > { %v5146_v24 = vsel %vm9811_vm8, %v4903_v2, %v4866_v39  ;;  %v4976_v20 = vrot.slane %v4975_v47, 1  ;;  %v5085_v30 = vrot.slane %v5084_v8, 2 }
 0x6a9   : > { %v5147_v36 = vsel %vm9812_vm9, %v4940_v34, %v5146_v24  ;;  %v5050_v28 = vrot.slane %v5049_v40, 1  ;;  %v5122_v18 = vrot.slane %v5121_v14, 2 }
 0x6aa   : > { %v4977_v54 = vadd.f32 %v4976_v20, %v4975_v47  ;;  %v5086_v49 = vadd.f32 %v5085_v30, %v5084_v8 }
 0x6ab   : > { %v5051_v11 = vadd.f32 %v5050_v28, %v5049_v40  ;;  %v5123_v41 = vadd.f32 %v5122_v18, %v5121_v14 }
 0x6ac   : > { %v5148_v60 = vsel %vm4264_vm11, %v4977_v54, %v5147_v36  ;;  %v5087_v9 = vrot.slane %v5086_v49, 1 }
 0x6ad   : > { %v5149_v0 = vsel %vm4266_vm12, %v5014_v12, %v5148_v60  ;;  %v5124_v44 = vrot.slane %v5123_v41, 1 }
 0x6ae   : > { %v5150_v3 = vsel %vm4268_vm13, %v5051_v11, %v5149_v0  ;;  %v5088_v19 = vadd.f32 %v5087_v9, %v5086_v49 }
 0x6af   : > { %v5125_v45 = vadd.f32 %v5124_v44, %v5123_v41 }
 0x6b0   : > { %v5151_v25 = vsel %vm4270_vm14, %v5088_v19, %v5150_v3 }
 0x6b1   : > { %v5152_v31 = vsel %vm4272_vm15, %v5125_v45, %v5151_v25 }
 0x6b2   : > { %5793 = vmatmul.mubr.msk.f32.vlgmr.msra.gmra.mrb[58].mxu1 %vm9813_vm10, %v5152_v31 }
 0x6b3   : > { %6293 = shalt.err (!%p6290_p4)
}
 0x6b4   : > { %s6294_s20 = scalar_lea.hbm %s9294_s22, 128  ;;  %s6298_s10 = scalar_lea.hbm %s9377_s8, 256 }
 0x6b5   : > { %p6295_p7 = scmp.ne.s32.totalorder %s9294_s22, %s6294_s20  ;;  %p6299_p10 = scmp.lt.u32.totalorder %s9294_s22, %s9377_s8 }
 0x6b6   : > { %p6300_p11 = scmp.lt.u32.totalorder %s6298_s10, %s6294_s20  ;;  %p6302_p13 = scmp.lt.u32.totalorder %s6294_s20, %s9294_s22 }
 0x6b7   : > { %p6296_p8 = pnand %p6295_p7, %p6468_p5 }
 0x6b8   : > { %p6301_p12 = por %p6300_p11, %p6299_p10 }
 0x6b9   : > { %p6297_p9 = pneg %p6296_p8 }
 0x6ba   : > { %p6303_p0 = por %p6302_p13, %p6301_p12 }
 0x6bc   : > { %p6304_p1 = pnand %p6303_p0, %p6297_p9 }
 0x6be   : > { %6307 = shalt.err (!%p6304_p1)
}
 0x6bf   : > { %5826 = dma.vmem_to_hbm [thread:$0]  (%p6468_p5), %s5261_s23, 128, %s9294_s22, %s5234_s24   ;;  %v6279_v33 = vld [vmem:[%s9375_s6] sm:$0x7]  ;;  %vm5225_vm11 = vcmask 130048  }
 0x6c0   : > { %v5137_v57 = vrot.slane %v6279_v33, %v8986_v7  ;;  %s331_s26 = scalar_lea.vmem [#allocation2], %s5379_s19  ;;  %s9814_s17 = sshll.u32 %s6451_s9, 7 }
 0x6c1   : > { %s5247_s20 = sshll.u32 %s331_s26, 4  ;;  %s9326_s12 = scalar_lea.hbm %s9376_s7, %s9814_s17  ;;  %s9328_s20 = int_to_ptr.vmem [resolvable:$true] %s5247_s20 }
 0x6c2   : > { %s5229_s22 = scalar_lea.sflag [#allocation3], %s8973_s21  ;;  %s6308_s23 = scalar_lea.vmem %s9328_s20, 128 }
 0x6c3   : > { %p6309_p2 = scmp.ne.s32.totalorder %s9328_s20, %s6308_s23  ;;  %s6384_s19 = smov [#allocation2]  }
 0x6c4   : > { %s6312_s24 = sshll.u32 %s6384_s19, 4  ;;  %s6313_s24 = int_to_ptr.vmem [resolvable:$false] %s6312_s24 }
 0x6c5   : > { %p6310_p3 = pnand %p6309_p2, %p6468_p5  ;;  %s6314_s9 = scalar_lea.vmem %s6313_s24, 256 }
 0x6c6   : > { %p6315_p7 = scmp.lt.s32.totalorder %s9328_s20, %s6313_s24  ;;  %p6316_p8 = scmp.lt.s32.totalorder %s6314_s9, %s6308_s23 }
 0x6c7   : > { %p6311_p4 = pneg %p6310_p3 }
 0x6c8   : > { %p6317_p9 = por %p6316_p8, %p6315_p7 }
 0x6ca   : > { %p6318_p10 = pnand %p6317_p9, %p6311_p4 }
 0x785   : > { %v5221_v35 = vpop.f32.mrb[58].mxu1 }
 0x786   : > { %v5222_v10 = vadd.f32 %v5221_v35, %v5137_v57  ;;  %v5794_v48 = vpop.f32.mrb[59].mxu1 }
 0x788   : > { %5226 = vst.msk [vmem:[%s331_s26] sm:$0xff] %vm5225_vm11, %v5222_v10 }
 0x789   : > { %6321 = shalt.err (!%p6318_p10)
}
 0x78a   : > { %s6322_s21 = scalar_lea.hbm %s9326_s12, 128  ;;  %s6326_s26 = scalar_lea.hbm %s9376_s7, 256 }
 0x78b   : > { %p6323_p11 = scmp.ne.s32.totalorder %s9326_s12, %s6322_s21  ;;  %p6327_p0 = scmp.lt.u32.totalorder %s9326_s12, %s9376_s7 }
 0x78c   : > { %p6328_p1 = scmp.lt.u32.totalorder %s6326_s26, %s6322_s21  ;;  %p6330_p3 = scmp.lt.u32.totalorder %s6322_s21, %s9326_s12 }
 0x78d   : > { %p6324_p12 = pnand %p6323_p11, %p6468_p5 }
 0x78e   : > { %p6329_p2 = por %p6328_p1, %p6327_p0 }
 0x78f   : > { %p6325_p13 = pneg %p6324_p12 }
 0x790   : > { %p6331_p4 = por %p6330_p3, %p6329_p2 }
 0x792   : > { %p6332_p7 = pnand %p6331_p4, %p6325_p13 }
 0x794   : > { %6335 = shalt.err (!%p6332_p7)
}
 0x795   : > { %5825 = dma.vmem_to_hbm [thread:$0]  (%p6468_p5), %s9328_s20, 128, %s9326_s12, %s5229_s22  }
 0x796 PF: > { %p5836_p8 = scmp.ge.s32.totalorder %s6374_s30, 2  ;;  %s5272_s10 = sand.u32 1, %s6362_s27  }
 0x797   : > { %s5273_s23 = scalar_lea.sflag [#allocation3], %s5272_s10 }
 0x798   : > { %p5830_p9 = pnand %p5836_p8, %p6472_p6 }
 0x79a   : > { %6353 = dma.done.wait (!%p5830_p9), %s5273_s23, 128  }
 0x79b   : > { %6355 = vsyncadd (!%p5830_p9), %s5273_s23, 4294967168  ;;  %s5282_s19 = scalar_lea.sflag [#allocation5], %s5272_s10 }
 0x79c   : > { %6357 = dma.done.wait (!%p5830_p9), %s5282_s19, 128  }
 0x79d   : > { %6359 = vsyncadd (!%p5830_p9), %s5282_s19, 4294967168  ;;  %p22_p5 = scmp.ge.s32.totalorder %s6455_s11, 4   ;;  %s9815_s27 = smov %s6366_s28 }
 0x79e   : > { %s9816_s28 = smov %s6370_s29  ;;  %s9817_s29 = smov %s6466_s14 }
 0x79f   : > { %s9818_s30 = smov %s6455_s11  ;;  %24 = sbr.rel (!%p22_p5) target bundleno = 5 (0x5), region = 106 }
 0x7a6   :  { %5287 = vsyncpa [#allocation3], 1 }
 0x7a7   :  { %5289 = vsyncpa [#allocation3 + $0x1], 1 }
 0x7a8   :  { %5290 = vsyncpa [#allocation5], 1 }
 0x7a9   :  { %5292 = vsyncpa [#allocation5 + $0x1], 1 }

</bundles_post_ra>
